<compile_context>
chip_gen: v7x
topology: tpu7x:2x2x1
jax: 0.10.0
libtpu: 0.0.40
codegen_flags: <defaults>
</compile_context>

<pallas_src>
import functools

import jax
import jax.numpy as jnp
from jax import lax
from jax.experimental import pallas as pl
from jax.experimental.pallas import tpu as pltpu


def _round_up(x, m):
    return ((x + m - 1) // m) * m


# --------------------------------------------------------------------------
# Pallas kernels
# --------------------------------------------------------------------------

def _conv_lat_kernel(x_ref, w_ref, b_ref, lw_ref, lb_ref, *out_refs, want_conv_out):
    """One M-tile of: c = relu(X @ Wc + bc); f = c @ Wlat + blat (FPN lateral fused).
    X:(tm,Kp) bf16, Wc:(Kp,N) bf16, Wlat:(N,Nl) bf16, biases f32."""
    c = jnp.dot(x_ref[...], w_ref[...], preferred_element_type=jnp.float32) + b_ref[...]
    c = jnp.maximum(c, 0.0)                                       # f32 elementwise (v5e friendly)
    f = jnp.dot(c.astype(jnp.bfloat16), lw_ref[...],
                preferred_element_type=jnp.float32) + lb_ref[...]
    if want_conv_out:
        c_ref, f_ref = out_refs
        c_ref[...] = c.astype(c_ref.dtype)
    else:
        (f_ref,) = out_refs
    f_ref[...] = f.astype(f_ref.dtype)


def conv_bias_relu_lat(x, w, b, lat_w, lat_b, *, want_conv_out, tm_max=512):
    """Fused conv-as-matmul (+bias,+relu) and FPN lateral 1x1 conv, tiled over M.

    - K is zero-padded to a multiple of 8 (e.g. conv1's 27 -> 32) for clean sublanes.
    - tm is the whole M up to tm_max (per-step overhead ~600 cyc otherwise).
    - M not divisible by tm handled by zero-padding rows (no single-huge-block fallback).
    NOTE: tm_max=512 keeps the double-buffered footprint tiny even under v7x's 64 MiB
    VMEM; re-derive for real detector resolutions.
    """
    M, K = x.shape
    Kw, N = w.shape
    assert K == Kw, (K, Kw)
    Nl = lat_w.shape[1]
    Kp = _round_up(K, 8)
    tm = min(tm_max, _round_up(M, 8))
    Mp = _round_up(M, tm)

    xb = x.astype(jnp.bfloat16)
    if Mp != M or Kp != K:
        xb = jnp.pad(xb, ((0, Mp - M), (0, Kp - K)))
    wb = w.astype(jnp.bfloat16)
    if Kp != K:
        wb = jnp.pad(wb, ((0, Kp - K), (0, 0)))

    out_shapes, out_specs = [], []
    if want_conv_out:
        out_shapes.append(jax.ShapeDtypeStruct((Mp, N), jnp.bfloat16))
        out_specs.append(pl.BlockSpec((tm, N), lambda i: (i, 0)))
    out_shapes.append(jax.ShapeDtypeStruct((Mp, Nl), jnp.bfloat16))
    out_specs.append(pl.BlockSpec((tm, Nl), lambda i: (i, 0)))

    outs = pl.pallas_call(
        functools.partial(_conv_lat_kernel, want_conv_out=want_conv_out),
        out_shape=tuple(out_shapes),
        grid=(Mp // tm,),
        in_specs=[
            pl.BlockSpec((tm, Kp), lambda i: (i, 0)),
            pl.BlockSpec((Kp, N), lambda i: (0, 0)),
            pl.BlockSpec((1, N), lambda i: (0, 0)),
            pl.BlockSpec((N, Nl), lambda i: (0, 0)),
            pl.BlockSpec((1, Nl), lambda i: (0, 0)),
        ],
        out_specs=tuple(out_specs),
        compiler_params=pltpu.CompilerParams(dimension_semantics=("parallel",)),
    )(xb, wb, b.reshape(1, N).astype(jnp.float32),
      lat_w.astype(jnp.bfloat16), lat_b.reshape(1, Nl).astype(jnp.float32))
    if not isinstance(outs, (tuple, list)):
        outs = (outs,)
    return tuple(o[:M] if Mp != M else o for o in outs)


def _lang_kernel(emb_ref, lw_ref, lb_ref, g_ref, beta_ref, tw_ref, tpb_ref,
                 blang_ref, b0_ref, hid_ref, proj_ref, tokb_ref):
    """Fused language side: hidden = LN(tanh(emb @ Wl + bl)) * g + beta,
    proj = (hidden*0.5) @ Wt + bt, token_bias = hidden @ bias_lang + bias0."""
    h = jnp.dot(emb_ref[...], lw_ref[...], preferred_element_type=jnp.float32) + lb_ref[...]
    h = jnp.tanh(h)                                              # f32 elementwise (v5e)
    mean = jnp.mean(h, axis=-1, keepdims=True)
    var = jnp.mean((h - mean) ** 2, axis=-1, keepdims=True)
    hid = (h - mean) * lax.rsqrt(var + 1e-5) * g_ref[...] + beta_ref[...]
    hid_ref[...] = hid.astype(hid_ref.dtype)

    hb = (hid * 0.5).astype(jnp.bfloat16)                        # /2.0 folded in-kernel
    proj = jnp.dot(hb, tw_ref[...], preferred_element_type=jnp.float32) + tpb_ref[...]
    proj_ref[...] = proj.astype(proj_ref.dtype)

    tokb = jnp.dot(hid, blang_ref[...], preferred_element_type=jnp.float32) + b0_ref[...]
    tokb_ref[...] = tokb.astype(tokb_ref.dtype)


def lang_encode_fused(emb2d, p):
    M, E = emb2d.shape
    C = p["lang_w"].shape[1]
    return pl.pallas_call(
        _lang_kernel,
        out_shape=(jax.ShapeDtypeStruct((M, C), jnp.float32),     # hidden
                   jax.ShapeDtypeStruct((M, C), jnp.bfloat16),    # proj_tokens
                   jax.ShapeDtypeStruct((M, 1), jnp.float32)),    # token bias
        grid=(1,),
        in_specs=[
            pl.BlockSpec((M, E), lambda i: (0, 0)),
            pl.BlockSpec((E, C), lambda i: (0, 0)),
            pl.BlockSpec((1, C), lambda i: (0, 0)),
            pl.BlockSpec((1, C), lambda i: (0, 0)),
            pl.BlockSpec((1, C), lambda i: (0, 0)),
            pl.BlockSpec((C, C), lambda i: (0, 0)),
            pl.BlockSpec((1, C), lambda i: (0, 0)),
            pl.BlockSpec((C, 1), lambda i: (0, 0)),
            pl.BlockSpec((1, 1), lambda i: (0, 0)),
        ],
        out_specs=(pl.BlockSpec((M, C), lambda i: (0, 0)),
                   pl.BlockSpec((M, C), lambda i: (0, 0)),
                   pl.BlockSpec((M, 1), lambda i: (0, 0))),
    )(emb2d.astype(jnp.bfloat16),
      p["lang_w"].astype(jnp.bfloat16), p["lang_b"].reshape(1, C),
      p["ln_g"].reshape(1, C), p["ln_b"].reshape(1, C),
      p["txtproj_w"].astype(jnp.bfloat16), p["txtproj_b"].reshape(1, C),
      p["bias_lang"], p["bias0"].reshape(1, 1))


def _head_kernel(f1_ref, f2_ref, t_ref, tb_ref, mask_ref, hw_ref, hb_ref, invs_ref,
                 heads_ref, logits_ref, *, c_proj, hw_total, hw_pad):
    """Fused RPN VL head for one batch element, both FPN levels concatenated in VMEM.
    f1:(1,HW1,C) bf16, f2:(1,HW2,C) bf16, t:(1,L,C) bf16, tb/mask:(1,L,1) f32,
    hw:(C,128) bf16, hb:(1,128) f32, invs: SMEM f32 scalar
    -> heads:(1,HWp,128) f32 [q|bbox|ctr|pad], logits:(1,L,HWp) f32."""
    C = f1_ref.shape[2]
    parts = [f1_ref[0], f2_ref[0]]
    if hw_pad > hw_total:
        parts.append(jnp.zeros((hw_pad - hw_total, C), jnp.bfloat16))
    v = jnp.concatenate(parts, axis=0)                            # (HWp, C) in VMEM

    # one lane-dense matmul for [imgproj | bbox_reg | centerness | pad]  (N = 128)
    heads = jnp.dot(v, hw_ref[...], preferred_element_type=jnp.float32) + hb_ref[...]
    heads_ref[0] = heads.astype(heads_ref.dtype)

    # VL dot-product logits in transposed (L, HWp) layout: HW on lanes, MXU N = HWp
    q = heads[:, :c_proj].astype(jnp.bfloat16)                    # (HWp, C)
    dots = lax.dot_general(t_ref[0], q, (((1,), (1,)), ((), ())),
                           preferred_element_type=jnp.float32)    # (L, HWp) = t @ q.T
    logits = dots * invs_ref[0] + tb_ref[0]                       # scale + per-token bias
    logits = jnp.clip(logits, -50000.0, 50000.0)
    logits = jnp.where(mask_ref[0] > 0.0, logits, -50000.0)       # mask padded tokens
    logits_ref[0] = logits.astype(logits_ref.dtype)


def vl_head(f1, f2, proj_tokens, token_bias, mask_f, head_w, head_b, inv_scale, c_proj):
    B, HW1, C = f1.shape
    _, HW2, _ = f2.shape
    _, L, _ = proj_tokens.shape
    NP = head_w.shape[1]
    HW = HW1 + HW2
    HWp = _round_up(HW, 128)                                      # lane-dense logits
    return pl.pallas_call(
        functools.partial(_head_kernel, c_proj=c_proj, hw_total=HW, hw_pad=HWp),
        out_shape=(jax.ShapeDtypeStruct((B, HWp, NP), jnp.float32),
                   jax.ShapeDtypeStruct((B, L, HWp), jnp.float32)),
        grid=(B,),  # parallel over batch -> shards across v7x's 2 TensorCores
        in_specs=[
            pl.BlockSpec((1, HW1, C), lambda b: (b, 0, 0)),
            pl.BlockSpec((1, HW2, C), lambda b: (b, 0, 0)),
            pl.BlockSpec((1, L, C), lambda b: (b, 0, 0)),
            pl.BlockSpec((1, L, 1), lambda b: (b, 0, 0)),
            pl.BlockSpec((1, L, 1), lambda b: (b, 0, 0)),
            pl.BlockSpec((C, NP), lambda b: (0, 0)),
            pl.BlockSpec((1, NP), lambda b: (0, 0)),
            pl.BlockSpec(memory_space=pltpu.MemorySpace.SMEM),    # inv_scale scalar
        ],
        out_specs=(pl.BlockSpec((1, HWp, NP), lambda b: (b, 0, 0)),
                   pl.BlockSpec((1, L, HWp), lambda b: (b, 0, 0))),
        compiler_params=pltpu.CompilerParams(dimension_semantics=("parallel",)),
    )(f1, f2, proj_tokens.astype(jnp.bfloat16), token_bias, mask_f,
      head_w, head_b, inv_scale)


# --------------------------------------------------------------------------
# Glue (reshapes / patch extraction / parameter setup)
# --------------------------------------------------------------------------

def im2col(x_nhwc, k, stride, pad):
    """Extract kxk patches -> rows for the Pallas matmul (pure indexing/reshape).
    TODO(synk): at real detector resolutions this should be fused into the conv kernel
    (in-VMEM shifted reads) to avoid the ~9x HBM round-trip of the patch matrix."""
    B, H, W, C = x_nhwc.shape
    xp = jnp.pad(x_nhwc, ((0, 0), (pad, pad), (pad, pad), (0, 0)))
    Ho = (H + 2 * pad - k) // stride + 1
    Wo = (W + 2 * pad - k) // stride + 1
    cols = []
    for dy in range(k):
        for dx in range(k):
            cols.append(xp[:, dy:dy + stride * Ho:stride, dx:dx + stride * Wo:stride, :])
    patches = jnp.concatenate(cols, axis=-1)  # [B, Ho, Wo, k*k*C]
    return patches.reshape(B * Ho * Wo, k * k * C), (B, Ho, Wo)


def init_params(key):
    def w(k, shape, scale=0.05):
        return scale * jax.random.normal(k, shape, jnp.float32)

    ks = jax.random.split(key, 12)
    return {
        # backbone (conv stem + FPN laterals)
        "conv1_w": w(ks[0], (3 * 3 * 3, 32)), "conv1_b": jnp.zeros((32,), jnp.float32),
        "conv2_w": w(ks[1], (3 * 3 * 32, 64)), "conv2_b": jnp.zeros((64,), jnp.float32),
        "lat1_w": w(ks[2], (32, 64)), "lat1_b": jnp.zeros((64,), jnp.float32),
        "lat2_w": w(ks[3], (64, 64)), "lat2_b": jnp.zeros((64,), jnp.float32),
        # language backbone (LayerNorm with learnable gamma/beta)
        "embed": w(ks[4], (1000, 64), 0.02),
        "lang_w": w(ks[5], (64, 64)), "lang_b": jnp.zeros((64,), jnp.float32),
        "ln_g": jnp.ones((64,), jnp.float32), "ln_b": jnp.zeros((64,), jnp.float32),
        # RPN dot-product VL head
        "txtproj_w": w(ks[6], (64, 64)), "txtproj_b": jnp.zeros((64,), jnp.float32),
        "bias_lang": w(ks[7], (64, 1)), "bias0": jnp.zeros((1,), jnp.float32),
        "imgproj_w": w(ks[8], (64, 64)), "imgproj_b": jnp.zeros((64,), jnp.float32),
        "bbox_w": w(ks[9], (64, 4)), "bbox_b": jnp.zeros((4,), jnp.float32),
        "ctr_w": w(ks[10], (64, 1)), "ctr_b": jnp.zeros((1,), jnp.float32),
        "log_scale": jnp.zeros((1,), jnp.float32),
    }


def generalized_vl_rcnn_forward(params, images_nchw, input_ids, attention_mask):
    """Inference forward: returns (proposals-per-level, language_dict_features)."""
    B = images_nchw.shape[0]
    x = jnp.transpose(images_nchw, (0, 2, 3, 1)).astype(jnp.float32)  # NCHW -> NHWC

    # ---- language backbone + RPN text projections (one fused Pallas call) ----
    # TODO(synk): HuggingFace tokenizer / batch_encode_plus has no Pallas equivalent;
    #             inputs are pre-tokenized integer ids.
    emb = jnp.take(params["embed"], input_ids, axis=0)               # [B, L, E]
    L, E = emb.shape[1], emb.shape[2]
    hid2d, proj2d, tokb2d = lang_encode_fused(emb.reshape(B * L, E), params)
    C = hid2d.shape[1]
    hidden = hid2d.reshape(B, L, C)
    proj_tokens = proj2d.reshape(B, L, C)                            # bf16
    token_bias = tokb2d.reshape(B, L, 1)
    mask_f = attention_mask.astype(jnp.float32).reshape(B, L, 1)
    aggregate = (hidden * mask_f).sum(axis=1) / jnp.maximum(mask_f.sum(axis=1), 1.0)
    language_dict_features = {
        "hidden": hidden,
        "embedded": hidden,
        "masks": attention_mask,
        "aggregate": aggregate,
    }

    # ---- visual backbone: conv stem fused with FPN lateral 1x1 convs ----
    cols1, (_, H1, W1) = im2col(x, 3, 2, 1)
    c1_flat, f1_flat = conv_bias_relu_lat(
        cols1, params["conv1_w"], params["conv1_b"],
        params["lat1_w"], params["lat1_b"], want_conv_out=True)
    c1 = c1_flat.reshape(B, H1, W1, -1)                              # needed for next im2col
    f1 = f1_flat.reshape(B, H1 * W1, -1)                             # FPN level 1 (bf16)
    cols2, (_, H2, W2) = im2col(c1, 3, 2, 1)
    (f2_flat,) = conv_bias_relu_lat(
        cols2, params["conv2_w"], params["conv2_b"],
        params["lat2_w"], params["lat2_b"], want_conv_out=False)     # c2 never hits HBM
    f2 = f2_flat.reshape(B, H2 * W2, -1)                             # FPN level 2 (bf16)
    level_sizes = [H1 * W1, H2 * W2]
    HW = sum(level_sizes)

    # ---- RPN VL head: both levels -> one fused per-batch Pallas call ----
    NP = 128                                                         # padded head width
    head_w = jnp.concatenate(
        [params["imgproj_w"], params["bbox_w"], params["ctr_w"],
         jnp.zeros((C, NP - C - 5), jnp.float32)], axis=1).astype(jnp.bfloat16)
    head_b = jnp.concatenate(
        [params["imgproj_b"], params["bbox_b"], params["ctr_b"],
         jnp.zeros((NP - C - 5,), jnp.float32)]).reshape(1, NP)
    inv_scale = (1.0 / jnp.exp(params["log_scale"])).astype(jnp.float32)

    heads, logits_t = vl_head(f1, f2, proj_tokens, token_bias, mask_f,
                              head_w, head_b, inv_scale, C)

    logits_all = jnp.transpose(logits_t[:, :, :HW], (0, 2, 1))       # [B, HW, L]
    bbox_all = heads[:, :HW, C:C + 4]                                # [B, HW, 4]
    ctr_all = heads[:, :HW, C + 4:C + 5]                             # [B, HW, 1]

    proposals = []
    start = 0
    for hw in level_sizes:
        proposals.append({
            "logits": logits_all[:, start:start + hw],
            "bbox_reg": bbox_all[:, start:start + hw],
            "centerness": ctr_all[:, start:start + hw],
        })
        start += hw

    # inference path of the reference module: result = proposals, detector_losses = {}
    # TODO(synk): box decoding / NMS / ROI heads / training losses are not numerical hot
    #             paths here and are omitted (RPN_ONLY inference).
    return proposals, language_dict_features


if __name__ == "__main__":
    key = jax.random.PRNGKey(0)
    k_par, k_img, k_ids = jax.random.split(key, 3)

    params = init_params(k_par)

    # images: PyTorch NCHW convention; small shapes: batch=2, C=3, 32x32
    images = jax.random.normal(k_img, (2, 3, 32, 32), jnp.float32)
    # pre-tokenized captions: batch=2, seq=8, vocab=1000
    input_ids = jax.random.randint(k_ids, (2, 8), 0, 1000, dtype=jnp.int32)
    attention_mask = jnp.ones((2, 8), jnp.int32)

    forward = jax.jit(generalized_vl_rcnn_forward)
    proposals, lang_feats = forward(params, images, input_ids, attention_mask)
    jax.block_until_ready((proposals, lang_feats))

    # quick sanity on shapes (level 0: 16x16=256 locations; level 1: 8x8=64)
    assert proposals[0]["logits"].shape == (2, 256, 8)
    assert proposals[1]["logits"].shape == (2, 64, 8)
    assert proposals[0]["bbox_reg"].shape == (2, 256, 4)
    assert proposals[1]["centerness"].shape == (2, 64, 1)
    assert lang_feats["hidden"].shape == (2, 8, 64)

    print("KERNEL_OK")
</pallas_src>

<mosaic_0001>
module attributes {stable_mosaic.version = 11 : i64} {
  func.func @_conv_lat_kernel(%arg0: i32, %arg1: memref<512x32xbf16, #tpu.memory_space<vmem>>, %arg2: memref<32x32xbf16, #tpu.memory_space<vmem>>, %arg3: memref<1x32xf32, #tpu.memory_space<vmem>>, %arg4: memref<32x64xbf16, #tpu.memory_space<vmem>>, %arg5: memref<1x64xf32, #tpu.memory_space<vmem>>, %arg6: memref<512x32xbf16, #tpu.memory_space<vmem>>, %arg7: memref<512x64xbf16, #tpu.memory_space<vmem>>) attributes {dimension_semantics = [#tpu.dimension_semantics<parallel>], iteration_bounds = array<i64: 1>, scalar_prefetch = 0 : i64, scratch_operands = 0 : i64, tpu.core_type = #tpu.core_type<tc>, window_params = [{transform_indices = @transform_0, window_bounds = array<i64: 512, 32>}, {pipeline_mode = #tpu.pipeline_mode<synchronous>, transform_indices = @transform_1, window_bounds = array<i64: 32, 32>}, {pipeline_mode = #tpu.pipeline_mode<synchronous>, transform_indices = @transform_2, window_bounds = array<i64: 1, 32>}, {pipeline_mode = #tpu.pipeline_mode<synchronous>, transform_indices = @transform_3, window_bounds = array<i64: 32, 64>}, {pipeline_mode = #tpu.pipeline_mode<synchronous>, transform_indices = @transform_4, window_bounds = array<i64: 1, 64>}, {transform_indices = @transform_5, window_bounds = array<i64: 512, 32>}, {transform_indices = @transform_6, window_bounds = array<i64: 512, 64>}]} {
    %c0 = arith.constant 0 : index
    %c0_0 = arith.constant 0 : index
    %0 = vector.load %arg1[%c0, %c0_0] : memref<512x32xbf16, #tpu.memory_space<vmem>>, vector<512x32xbf16>
    %c0_1 = arith.constant 0 : index
    %c0_2 = arith.constant 0 : index
    %1 = vector.load %arg2[%c0_1, %c0_2] : memref<32x32xbf16, #tpu.memory_space<vmem>>, vector<32x32xbf16>
    %cst = arith.constant dense<0.000000e+00> : vector<512x32xf32>
    %2 = tpu.matmul %0, %1, %cst {dimension_numbers = #tpu.dot_dimension_numbers<[1], [0], [0], [1], [0, 0, 1, 1], [], []>} : vector<512x32xbf16>, vector<32x32xbf16>, vector<512x32xf32> -> vector<512x32xf32>
    %c0_3 = arith.constant 0 : index
    %c0_4 = arith.constant 0 : index
    %3 = vector.load %arg3[%c0_3, %c0_4] : memref<1x32xf32, #tpu.memory_space<vmem>>, vector<1x32xf32>
    %4 = vector.broadcast %3 : vector<1x32xf32> to vector<512x32xf32>
    %5 = arith.addf %2, %4 : vector<512x32xf32>
    %cst_5 = arith.constant 0.000000e+00 : f32
    %6 = vector.broadcast %cst_5 : f32 to vector<512x32xf32>
    %7 = arith.maximumf %5, %6 : vector<512x32xf32>
    %8 = arith.truncf %7 : vector<512x32xf32> to vector<512x32xbf16>
    %c0_6 = arith.constant 0 : index
    %c0_7 = arith.constant 0 : index
    %9 = vector.load %arg4[%c0_6, %c0_7] : memref<32x64xbf16, #tpu.memory_space<vmem>>, vector<32x64xbf16>
    %cst_8 = arith.constant dense<0.000000e+00> : vector<512x64xf32>
    %10 = tpu.matmul %8, %9, %cst_8 {dimension_numbers = #tpu.dot_dimension_numbers<[1], [0], [0], [1], [0, 0, 1, 1], [], []>} : vector<512x32xbf16>, vector<32x64xbf16>, vector<512x64xf32> -> vector<512x64xf32>
    %c0_9 = arith.constant 0 : index
    %c0_10 = arith.constant 0 : index
    %11 = vector.load %arg5[%c0_9, %c0_10] : memref<1x64xf32, #tpu.memory_space<vmem>>, vector<1x64xf32>
    %12 = vector.broadcast %11 : vector<1x64xf32> to vector<512x64xf32>
    %13 = arith.addf %10, %12 : vector<512x64xf32>
    %14 = arith.truncf %7 : vector<512x32xf32> to vector<512x32xbf16>
    %c0_11 = arith.constant 0 : index
    %c0_12 = arith.constant 0 : index
    %15 = vector.load %arg6[%c0_11, %c0_12] : memref<512x32xbf16, #tpu.memory_space<vmem>>, vector<512x32xbf16>
    tpu.vector_store %arg6[%c0_11, %c0_12], %14 {strides = array<i32>} : memref<512x32xbf16, #tpu.memory_space<vmem>>, vector<512x32xbf16>,
    %16 = arith.truncf %13 : vector<512x64xf32> to vector<512x64xbf16>
    %c0_13 = arith.constant 0 : index
    %c0_14 = arith.constant 0 : index
    %17 = vector.load %arg7[%c0_13, %c0_14] : memref<512x64xbf16, #tpu.memory_space<vmem>>, vector<512x64xbf16>
    tpu.vector_store %arg7[%c0_13, %c0_14], %16 {strides = array<i32>} : memref<512x64xbf16, #tpu.memory_space<vmem>>, vector<512x64xbf16>,
    return
  }
  func.func @transform_0(%arg0: i32) -> (i32, i32) {
    %c0_i32 = arith.constant 0 : i32
    %c0_i32_0 = arith.constant 0 : i32
    return %arg0, %c0_i32 : i32, i32
  }
  func.func @transform_1(%arg0: i32) -> (i32, i32) {
    %c0_i32 = arith.constant 0 : i32
    %c0_i32_0 = arith.constant 0 : i32
    %c0_i32_1 = arith.constant 0 : i32
    return %c0_i32, %c0_i32_0 : i32, i32
  }
  func.func @transform_2(%arg0: i32) -> (i32, i32) {
    %c0_i32 = arith.constant 0 : i32
    %c0_i32_0 = arith.constant 0 : i32
    %c0_i32_1 = arith.constant 0 : i32
    return %c0_i32, %c0_i32_0 : i32, i32
  }
  func.func @transform_3(%arg0: i32) -> (i32, i32) {
    %c0_i32 = arith.constant 0 : i32
    %c0_i32_0 = arith.constant 0 : i32
    %c0_i32_1 = arith.constant 0 : i32
    return %c0_i32, %c0_i32_0 : i32, i32
  }
  func.func @transform_4(%arg0: i32) -> (i32, i32) {
    %c0_i32 = arith.constant 0 : i32
    %c0_i32_0 = arith.constant 0 : i32
    %c0_i32_1 = arith.constant 0 : i32
    return %c0_i32, %c0_i32_0 : i32, i32
  }
  func.func @transform_5(%arg0: i32) -> (i32, i32) {
    %c0_i32 = arith.constant 0 : i32
    %c0_i32_0 = arith.constant 0 : i32
    return %arg0, %c0_i32 : i32, i32
  }
  func.func @transform_6(%arg0: i32) -> (i32, i32) {
    %c0_i32 = arith.constant 0 : i32
    %c0_i32_0 = arith.constant 0 : i32
    return %arg0, %c0_i32 : i32, i32
  }
}

module attributes {stable_mosaic.version = 11 : i64} {
  func.func @_conv_lat_kernel(%arg0: i32, %arg1: memref<128x288xbf16, #tpu.memory_space<vmem>>, %arg2: memref<288x64xbf16, #tpu.memory_space<vmem>>, %arg3: memref<1x64xf32, #tpu.memory_space<vmem>>, %arg4: memref<64x64xbf16, #tpu.memory_space<vmem>>, %arg5: memref<1x64xf32, #tpu.memory_space<vmem>>, %arg6: memref<128x64xbf16, #tpu.memory_space<vmem>>) attributes {dimension_semantics = [#tpu.dimension_semantics<parallel>], iteration_bounds = array<i64: 1>, scalar_prefetch = 0 : i64, scratch_operands = 0 : i64, tpu.core_type = #tpu.core_type<tc>, window_params = [{transform_indices = @transform_0, window_bounds = array<i64: 128, 288>}, {pipeline_mode = #tpu.pipeline_mode<synchronous>, transform_indices = @transform_1, window_bounds = array<i64: 288, 64>}, {pipeline_mode = #tpu.pipeline_mode<synchronous>, transform_indices = @transform_2, window_bounds = array<i64: 1, 64>}, {pipeline_mode = #tpu.pipeline_mode<synchronous>, transform_indices = @transform_3, window_bounds = array<i64: 64, 64>}, {pipeline_mode = #tpu.pipeline_mode<synchronous>, transform_indices = @transform_4, window_bounds = array<i64: 1, 64>}, {transform_indices = @transform_5, window_bounds = array<i64: 128, 64>}]} {
    %c0 = arith.constant 0 : index
    %c0_0 = arith.constant 0 : index
    %0 = vector.load %arg1[%c0, %c0_0] : memref<128x288xbf16, #tpu.memory_space<vmem>>, vector<128x288xbf16>
    %c0_1 = arith.constant 0 : index
    %c0_2 = arith.constant 0 : index
    %1 = vector.load %arg2[%c0_1, %c0_2] : memref<288x64xbf16, #tpu.memory_space<vmem>>, vector<288x64xbf16>
    %cst = arith.constant dense<0.000000e+00> : vector<128x64xf32>
    %2 = tpu.matmul %0, %1, %cst {dimension_numbers = #tpu.dot_dimension_numbers<[1], [0], [0], [1], [0, 0, 1, 1], [], []>} : vector<128x288xbf16>, vector<288x64xbf16>, vector<128x64xf32> -> vector<128x64xf32>
    %c0_3 = arith.constant 0 : index
    %c0_4 = arith.constant 0 : index
    %3 = vector.load %arg3[%c0_3, %c0_4] : memref<1x64xf32, #tpu.memory_space<vmem>>, vector<1x64xf32>
    %4 = vector.broadcast %3 : vector<1x64xf32> to vector<128x64xf32>
    %5 = arith.addf %2, %4 : vector<128x64xf32>
    %cst_5 = arith.constant 0.000000e+00 : f32
    %6 = vector.broadcast %cst_5 : f32 to vector<128x64xf32>
    %7 = arith.maximumf %5, %6 : vector<128x64xf32>
    %8 = arith.truncf %7 : vector<128x64xf32> to vector<128x64xbf16>
    %c0_6 = arith.constant 0 : index
    %c0_7 = arith.constant 0 : index
    %9 = vector.load %arg4[%c0_6, %c0_7] : memref<64x64xbf16, #tpu.memory_space<vmem>>, vector<64x64xbf16>
    %cst_8 = arith.constant dense<0.000000e+00> : vector<128x64xf32>
    %10 = tpu.matmul %8, %9, %cst_8 {dimension_numbers = #tpu.dot_dimension_numbers<[1], [0], [0], [1], [0, 0, 1, 1], [], []>} : vector<128x64xbf16>, vector<64x64xbf16>, vector<128x64xf32> -> vector<128x64xf32>
    %c0_9 = arith.constant 0 : index
    %c0_10 = arith.constant 0 : index
    %11 = vector.load %arg5[%c0_9, %c0_10] : memref<1x64xf32, #tpu.memory_space<vmem>>, vector<1x64xf32>
    %12 = vector.broadcast %11 : vector<1x64xf32> to vector<128x64xf32>
    %13 = arith.addf %10, %12 : vector<128x64xf32>
    %14 = arith.truncf %13 : vector<128x64xf32> to vector<128x64xbf16>
    %c0_11 = arith.constant 0 : index
    %c0_12 = arith.constant 0 : index
    %15 = vector.load %arg6[%c0_11, %c0_12] : memref<128x64xbf16, #tpu.memory_space<vmem>>, vector<128x64xbf16>
    tpu.vector_store %arg6[%c0_11, %c0_12], %14 {strides = array<i32>} : memref<128x64xbf16, #tpu.memory_space<vmem>>, vector<128x64xbf16>,
    return
  }
  func.func @transform_0(%arg0: i32) -> (i32, i32) {
    %c0_i32 = arith.constant 0 : i32
    %c0_i32_0 = arith.constant 0 : i32
    return %arg0, %c0_i32 : i32, i32
  }
  func.func @transform_1(%arg0: i32) -> (i32, i32) {
    %c0_i32 = arith.constant 0 : i32
    %c0_i32_0 = arith.constant 0 : i32
    %c0_i32_1 = arith.constant 0 : i32
    return %c0_i32, %c0_i32_0 : i32, i32
  }
  func.func @transform_2(%arg0: i32) -> (i32, i32) {
    %c0_i32 = arith.constant 0 : i32
    %c0_i32_0 = arith.constant 0 : i32
    %c0_i32_1 = arith.constant 0 : i32
    return %c0_i32, %c0_i32_0 : i32, i32
  }
  func.func @transform_3(%arg0: i32) -> (i32, i32) {
    %c0_i32 = arith.constant 0 : i32
    %c0_i32_0 = arith.constant 0 : i32
    %c0_i32_1 = arith.constant 0 : i32
    return %c0_i32, %c0_i32_0 : i32, i32
  }
  func.func @transform_4(%arg0: i32) -> (i32, i32) {
    %c0_i32 = arith.constant 0 : i32
    %c0_i32_0 = arith.constant 0 : i32
    %c0_i32_1 = arith.constant 0 : i32
    return %c0_i32, %c0_i32_0 : i32, i32
  }
  func.func @transform_5(%arg0: i32) -> (i32, i32) {
    %c0_i32 = arith.constant 0 : i32
    %c0_i32_0 = arith.constant 0 : i32
    return %arg0, %c0_i32 : i32, i32
  }
}

module attributes {stable_mosaic.version = 11 : i64} {
  func.func @_lang_kernel(%arg0: i32, %arg1: memref<16x64xbf16, #tpu.memory_space<vmem>>, %arg2: memref<64x64xbf16, #tpu.memory_space<vmem>>, %arg3: memref<1x64xf32, #tpu.memory_space<vmem>>, %arg4: memref<1x64xf32, #tpu.memory_space<vmem>>, %arg5: memref<1x64xf32, #tpu.memory_space<vmem>>, %arg6: memref<64x64xbf16, #tpu.memory_space<vmem>>, %arg7: memref<1x64xf32, #tpu.memory_space<vmem>>, %arg8: memref<64x1xf32, #tpu.memory_space<vmem>>, %arg9: memref<1x1xf32, #tpu.memory_space<vmem>>, %arg10: memref<16x64xf32, #tpu.memory_space<vmem>>, %arg11: memref<16x64xbf16, #tpu.memory_space<vmem>>, %arg12: memref<16x1xf32, #tpu.memory_space<vmem>>) attributes {dimension_semantics = [#tpu.dimension_semantics<arbitrary>], iteration_bounds = array<i64: 1>, scalar_prefetch = 0 : i64, scratch_operands = 0 : i64, tpu.core_type = #tpu.core_type<tc>, window_params = [{pipeline_mode = #tpu.pipeline_mode<synchronous>, transform_indices = @transform_0, window_bounds = array<i64: 16, 64>}, {pipeline_mode = #tpu.pipeline_mode<synchronous>, transform_indices = @transform_1, window_bounds = array<i64: 64, 64>}, {pipeline_mode = #tpu.pipeline_mode<synchronous>, transform_indices = @transform_2, window_bounds = array<i64: 1, 64>}, {pipeline_mode = #tpu.pipeline_mode<synchronous>, transform_indices = @transform_3, window_bounds = array<i64: 1, 64>}, {pipeline_mode = #tpu.pipeline_mode<synchronous>, transform_indices = @transform_4, window_bounds = array<i64: 1, 64>}, {pipeline_mode = #tpu.pipeline_mode<synchronous>, transform_indices = @transform_5, window_bounds = array<i64: 64, 64>}, {pipeline_mode = #tpu.pipeline_mode<synchronous>, transform_indices = @transform_6, window_bounds = array<i64: 1, 64>}, {pipeline_mode = #tpu.pipeline_mode<synchronous>, transform_indices = @transform_7, window_bounds = array<i64: 64, 1>}, {pipeline_mode = #tpu.pipeline_mode<synchronous>, transform_indices = @transform_8, window_bounds = array<i64: 1, 1>}, {pipeline_mode = #tpu.pipeline_mode<synchronous>, transform_indices = @transform_9, window_bounds = array<i64: 16, 64>}, {pipeline_mode = #tpu.pipeline_mode<synchronous>, transform_indices = @transform_10, window_bounds = array<i64: 16, 64>}, {pipeline_mode = #tpu.pipeline_mode<synchronous>, transform_indices = @transform_11, window_bounds = array<i64: 16, 1>}]} {
    %c0 = arith.constant 0 : index
    %c0_0 = arith.constant 0 : index
    %0 = vector.load %arg1[%c0, %c0_0] : memref<16x64xbf16, #tpu.memory_space<vmem>>, vector<16x64xbf16>
    %c0_1 = arith.constant 0 : index
    %c0_2 = arith.constant 0 : index
    %1 = vector.load %arg2[%c0_1, %c0_2] : memref<64x64xbf16, #tpu.memory_space<vmem>>, vector<64x64xbf16>
    %cst = arith.constant dense<0.000000e+00> : vector<16x64xf32>
    %2 = tpu.matmul %0, %1, %cst {dimension_numbers = #tpu.dot_dimension_numbers<[1], [0], [0], [1], [0, 0, 1, 1], [], []>} : vector<16x64xbf16>, vector<64x64xbf16>, vector<16x64xf32> -> vector<16x64xf32>
    %c0_3 = arith.constant 0 : index
    %c0_4 = arith.constant 0 : index
    %3 = vector.load %arg3[%c0_3, %c0_4] : memref<1x64xf32, #tpu.memory_space<vmem>>, vector<1x64xf32>
    %4 = vector.broadcast %3 : vector<1x64xf32> to vector<16x64xf32>
    %5 = arith.addf %2, %4 : vector<16x64xf32>
    %6 = math.tanh %5 : vector<16x64xf32>
    %cst_5 = arith.constant dense<0.000000e+00> : vector<16xf32>
    %7 = vector.multi_reduction <add>, %6, %cst_5 [1] : vector<16x64xf32> to vector<16xf32>
    %8 = vector.shape_cast %7 : vector<16xf32> to vector<16x1xf32>
    %cst_6 = arith.constant 6.400000e+01 : f32
    %9 = vector.broadcast %cst_6 : f32 to vector<16x1xf32>
    %10 = arith.divf %8, %9 : vector<16x1xf32>
    %11 = vector.broadcast %10 : vector<16x1xf32> to vector<16x64xf32>
    %12 = arith.subf %6, %11 : vector<16x64xf32>
    %13 = arith.mulf %12, %12 : vector<16x64xf32>
    %cst_7 = arith.constant dense<0.000000e+00> : vector<16xf32>
    %14 = vector.multi_reduction <add>, %13, %cst_7 [1] : vector<16x64xf32> to vector<16xf32>
    %15 = vector.shape_cast %14 : vector<16xf32> to vector<16x1xf32>
    %cst_8 = arith.constant 6.400000e+01 : f32
    %16 = vector.broadcast %cst_8 : f32 to vector<16x1xf32>
    %17 = arith.divf %15, %16 : vector<16x1xf32>
    %18 = vector.broadcast %10 : vector<16x1xf32> to vector<16x64xf32>
    %19 = arith.subf %6, %18 : vector<16x64xf32>
    %cst_9 = arith.constant 9.99999974E-6 : f32
    %20 = vector.broadcast %cst_9 : f32 to vector<16x1xf32>
    %21 = arith.addf %17, %20 : vector<16x1xf32>
    %22 = math.rsqrt %21 : vector<16x1xf32>
    %23 = vector.broadcast %22 : vector<16x1xf32> to vector<16x64xf32>
    %24 = arith.mulf %19, %23 : vector<16x64xf32>
    %c0_10 = arith.constant 0 : index
    %c0_11 = arith.constant 0 : index
    %25 = vector.load %arg4[%c0_10, %c0_11] : memref<1x64xf32, #tpu.memory_space<vmem>>, vector<1x64xf32>
    %26 = vector.broadcast %25 : vector<1x64xf32> to vector<16x64xf32>
    %27 = arith.mulf %24, %26 : vector<16x64xf32>
    %c0_12 = arith.constant 0 : index
    %c0_13 = arith.constant 0 : index
    %28 = vector.load %arg5[%c0_12, %c0_13] : memref<1x64xf32, #tpu.memory_space<vmem>>, vector<1x64xf32>
    %29 = vector.broadcast %28 : vector<1x64xf32> to vector<16x64xf32>
    %30 = arith.addf %27, %29 : vector<16x64xf32>
    %c0_14 = arith.constant 0 : index
    %c0_15 = arith.constant 0 : index
    %31 = vector.load %arg10[%c0_14, %c0_15] : memref<16x64xf32, #tpu.memory_space<vmem>>, vector<16x64xf32>
    tpu.vector_store %arg10[%c0_14, %c0_15], %30 {strides = array<i32>} : memref<16x64xf32, #tpu.memory_space<vmem>>, vector<16x64xf32>,
    %cst_16 = arith.constant 5.000000e-01 : f32
    %32 = vector.broadcast %cst_16 : f32 to vector<16x64xf32>
    %33 = arith.mulf %30, %32 : vector<16x64xf32>
    %34 = arith.truncf %33 : vector<16x64xf32> to vector<16x64xbf16>
    %c0_17 = arith.constant 0 : index
    %c0_18 = arith.constant 0 : index
    %35 = vector.load %arg6[%c0_17, %c0_18] : memref<64x64xbf16, #tpu.memory_space<vmem>>, vector<64x64xbf16>
    %cst_19 = arith.constant dense<0.000000e+00> : vector<16x64xf32>
    %36 = tpu.matmul %34, %35, %cst_19 {dimension_numbers = #tpu.dot_dimension_numbers<[1], [0], [0], [1], [0, 0, 1, 1], [], []>} : vector<16x64xbf16>, vector<64x64xbf16>, vector<16x64xf32> -> vector<16x64xf32>
    %c0_20 = arith.constant 0 : index
    %c0_21 = arith.constant 0 : index
    %37 = vector.load %arg7[%c0_20, %c0_21] : memref<1x64xf32, #tpu.memory_space<vmem>>, vector<1x64xf32>
    %38 = vector.broadcast %37 : vector<1x64xf32> to vector<16x64xf32>
    %39 = arith.addf %36, %38 : vector<16x64xf32>
    %40 = arith.truncf %39 : vector<16x64xf32> to vector<16x64xbf16>
    %c0_22 = arith.constant 0 : index
    %c0_23 = arith.constant 0 : index
    %41 = vector.load %arg11[%c0_22, %c0_23] : memref<16x64xbf16, #tpu.memory_space<vmem>>, vector<16x64xbf16>
    tpu.vector_store %arg11[%c0_22, %c0_23], %40 {strides = array<i32>} : memref<16x64xbf16, #tpu.memory_space<vmem>>, vector<16x64xbf16>,
    %c0_24 = arith.constant 0 : index
    %c0_25 = arith.constant 0 : index
    %42 = vector.load %arg8[%c0_24, %c0_25] : memref<64x1xf32, #tpu.memory_space<vmem>>, vector<64x1xf32>
    %cst_26 = arith.constant dense<0.000000e+00> : vector<16x1xf32>
    %43 = tpu.matmul %30, %42, %cst_26 {dimension_numbers = #tpu.dot_dimension_numbers<[1], [0], [0], [1], [0, 0, 1, 1], [], []>} : vector<16x64xf32>, vector<64x1xf32>, vector<16x1xf32> -> vector<16x1xf32>
    %c0_27 = arith.constant 0 : index
    %c0_28 = arith.constant 0 : index
    %44 = vector.load %arg9[%c0_27, %c0_28] : memref<1x1xf32, #tpu.memory_space<vmem>>, vector<1x1xf32>
    %45 = vector.broadcast %44 : vector<1x1xf32> to vector<16x1xf32>
    %46 = arith.addf %43, %45 : vector<16x1xf32>
    %c0_29 = arith.constant 0 : index
    %c0_30 = arith.constant 0 : index
    %47 = vector.load %arg12[%c0_29, %c0_30] : memref<16x1xf32, #tpu.memory_space<vmem>>, vector<16x1xf32>
    tpu.vector_store %arg12[%c0_29, %c0_30], %46 {strides = array<i32>} : memref<16x1xf32, #tpu.memory_space<vmem>>, vector<16x1xf32>,
    return
  }
  func.func @transform_0(%arg0: i32) -> (i32, i32) {
    %c0_i32 = arith.constant 0 : i32
    %c0_i32_0 = arith.constant 0 : i32
    %c0_i32_1 = arith.constant 0 : i32
    return %c0_i32, %c0_i32_0 : i32, i32
  }
  func.func @transform_1(%arg0: i32) -> (i32, i32) {
    %c0_i32 = arith.constant 0 : i32
    %c0_i32_0 = arith.constant 0 : i32
    %c0_i32_1 = arith.constant 0 : i32
    return %c0_i32, %c0_i32_0 : i32, i32
  }
  func.func @transform_2(%arg0: i32) -> (i32, i32) {
    %c0_i32 = arith.constant 0 : i32
    %c0_i32_0 = arith.constant 0 : i32
    %c0_i32_1 = arith.constant 0 : i32
    return %c0_i32, %c0_i32_0 : i32, i32
  }
  func.func @transform_3(%arg0: i32) -> (i32, i32) {
    %c0_i32 = arith.constant 0 : i32
    %c0_i32_0 = arith.constant 0 : i32
    %c0_i32_1 = arith.constant 0 : i32
    return %c0_i32, %c0_i32_0 : i32, i32
  }
  func.func @transform_4(%arg0: i32) -> (i32, i32) {
    %c0_i32 = arith.constant 0 : i32
    %c0_i32_0 = arith.constant 0 : i32
    %c0_i32_1 = arith.constant 0 : i32
    return %c0_i32, %c0_i32_0 : i32, i32
  }
  func.func @transform_5(%arg0: i32) -> (i32, i32) {
    %c0_i32 = arith.constant 0 : i32
    %c0_i32_0 = arith.constant 0 : i32
    %c0_i32_1 = arith.constant 0 : i32
    return %c0_i32, %c0_i32_0 : i32, i32
  }
  func.func @transform_6(%arg0: i32) -> (i32, i32) {
    %c0_i32 = arith.constant 0 : i32
    %c0_i32_0 = arith.constant 0 : i32
    %c0_i32_1 = arith.constant 0 : i32
    return %c0_i32, %c0_i32_0 : i32, i32
  }
  func.func @transform_7(%arg0: i32) -> (i32, i32) {
    %c0_i32 = arith.constant 0 : i32
    %c0_i32_0 = arith.constant 0 : i32
    %c0_i32_1 = arith.constant 0 : i32
    return %c0_i32, %c0_i32_0 : i32, i32
  }
  func.func @transform_8(%arg0: i32) -> (i32, i32) {
    %c0_i32 = arith.constant 0 : i32
    %c0_i32_0 = arith.constant 0 : i32
    %c0_i32_1 = arith.constant 0 : i32
    return %c0_i32, %c0_i32_0 : i32, i32
  }
  func.func @transform_9(%arg0: i32) -> (i32, i32) {
    %c0_i32 = arith.constant 0 : i32
    %c0_i32_0 = arith.constant 0 : i32
    %c0_i32_1 = arith.constant 0 : i32
    return %c0_i32, %c0_i32_0 : i32, i32
  }
  func.func @transform_10(%arg0: i32) -> (i32, i32) {
    %c0_i32 = arith.constant 0 : i32
    %c0_i32_0 = arith.constant 0 : i32
    %c0_i32_1 = arith.constant 0 : i32
    return %c0_i32, %c0_i32_0 : i32, i32
  }
  func.func @transform_11(%arg0: i32) -> (i32, i32) {
    %c0_i32 = arith.constant 0 : i32
    %c0_i32_0 = arith.constant 0 : i32
    %c0_i32_1 = arith.constant 0 : i32
    return %c0_i32, %c0_i32_0 : i32, i32
  }
}

module attributes {stable_mosaic.version = 11 : i64} {
  func.func @_head_kernel(%arg0: i32, %arg1: memref<1x256x64xbf16, #tpu.memory_space<vmem>>, %arg2: memref<1x64x64xbf16, #tpu.memory_space<vmem>>, %arg3: memref<1x8x64xbf16, #tpu.memory_space<vmem>>, %arg4: memref<1x8x1xf32, #tpu.memory_space<vmem>>, %arg5: memref<1x8x1xf32, #tpu.memory_space<vmem>>, %arg6: memref<64x128xbf16, #tpu.memory_space<vmem>>, %arg7: memref<1x128xf32, #tpu.memory_space<vmem>>, %arg8: memref<1xf32, #tpu.memory_space<smem>>, %arg9: memref<1x384x128xf32, #tpu.memory_space<vmem>>, %arg10: memref<1x8x384xf32, #tpu.memory_space<vmem>>) attributes {dimension_semantics = [#tpu.dimension_semantics<parallel>], iteration_bounds = array<i64: 2>, scalar_prefetch = 0 : i64, scratch_operands = 0 : i64, tpu.core_type = #tpu.core_type<tc>, window_params = [{transform_indices = @transform_0, window_bounds = array<i64: 1, 256, 64>}, {transform_indices = @transform_1, window_bounds = array<i64: 1, 64, 64>}, {transform_indices = @transform_2, window_bounds = array<i64: 1, 8, 64>}, {transform_indices = @transform_3, window_bounds = array<i64: 1, 8, 1>}, {transform_indices = @transform_4, window_bounds = array<i64: 1, 8, 1>}, {pipeline_mode = #tpu.pipeline_mode<synchronous>, transform_indices = @transform_5, window_bounds = array<i64: 64, 128>}, {pipeline_mode = #tpu.pipeline_mode<synchronous>, transform_indices = @transform_6, window_bounds = array<i64: 1, 128>}, {transform_indices = @transform_7, window_bounds = array<i64: 1>}, {transform_indices = @transform_8, window_bounds = array<i64: 1, 384, 128>}, {transform_indices = @transform_9, window_bounds = array<i64: 1, 8, 384>}]} {
    %c0 = arith.constant 0 : index
    %c0_0 = arith.constant 0 : index
    %c0_1 = arith.constant 0 : index
    %0 = vector.load %arg1[%c0, %c0_0, %c0_1] : memref<1x256x64xbf16, #tpu.memory_space<vmem>>, vector<1x256x64xbf16>
    %1 = vector.shape_cast %0 : vector<1x256x64xbf16> to vector<256x64xbf16>
    %c0_2 = arith.constant 0 : index
    %c0_3 = arith.constant 0 : index
    %c0_4 = arith.constant 0 : index
    %2 = vector.load %arg2[%c0_2, %c0_3, %c0_4] : memref<1x64x64xbf16, #tpu.memory_space<vmem>>, vector<1x64x64xbf16>
    %3 = vector.shape_cast %2 : vector<1x64x64xbf16> to vector<64x64xbf16>
    %cst = arith.constant 0.000000e+00 : bf16
    %4 = vector.broadcast %cst : bf16 to vector<64x64xbf16>
    %5 = tpu.concatenate %1, %3, %4 in 0 : vector<256x64xbf16>, vector<64x64xbf16>, vector<64x64xbf16> -> vector<384x64xbf16>
    %c0_5 = arith.constant 0 : index
    %c0_6 = arith.constant 0 : index
    %6 = vector.load %arg6[%c0_5, %c0_6] : memref<64x128xbf16, #tpu.memory_space<vmem>>, vector<64x128xbf16>
    %cst_7 = arith.constant dense<0.000000e+00> : vector<384x128xf32>
    %7 = tpu.matmul %5, %6, %cst_7 {dimension_numbers = #tpu.dot_dimension_numbers<[1], [0], [0], [1], [0, 0, 1, 1], [], []>} : vector<384x64xbf16>, vector<64x128xbf16>, vector<384x128xf32> -> vector<384x128xf32>
    %c0_8 = arith.constant 0 : index
    %c0_9 = arith.constant 0 : index
    %8 = vector.load %arg7[%c0_8, %c0_9] : memref<1x128xf32, #tpu.memory_space<vmem>>, vector<1x128xf32>
    %9 = vector.broadcast %8 : vector<1x128xf32> to vector<384x128xf32>
    %10 = arith.addf %7, %9 : vector<384x128xf32>
    %c0_10 = arith.constant 0 : index
    %c0_11 = arith.constant 0 : index
    %c0_12 = arith.constant 0 : index
    %11 = vector.load %arg9[%c0_10, %c0_11, %c0_12] : memref<1x384x128xf32, #tpu.memory_space<vmem>>, vector<1x384x128xf32>
    %12 = vector.shape_cast %11 : vector<1x384x128xf32> to vector<384x128xf32>
    %13 = vector.shape_cast %10 : vector<384x128xf32> to vector<1x384x128xf32>
    tpu.vector_store %arg9[%c0_10, %c0_11, %c0_12], %13 {strides = array<i32>} : memref<1x384x128xf32, #tpu.memory_space<vmem>>, vector<1x384x128xf32>,
    %14 = vector.extract_strided_slice %10 {offsets = [0, 0], sizes = [384, 64], strides = [1, 1]} : vector<384x128xf32> to vector<384x64xf32>
    %15 = arith.truncf %14 : vector<384x64xf32> to vector<384x64xbf16>
    %c0_13 = arith.constant 0 : index
    %c0_14 = arith.constant 0 : index
    %c0_15 = arith.constant 0 : index
    %16 = vector.load %arg3[%c0_13, %c0_14, %c0_15] : memref<1x8x64xbf16, #tpu.memory_space<vmem>>, vector<1x8x64xbf16>
    %17 = vector.shape_cast %16 : vector<1x8x64xbf16> to vector<8x64xbf16>
    %cst_16 = arith.constant dense<0.000000e+00> : vector<8x384xf32>
    %18 = tpu.matmul %17, %15, %cst_16 {dimension_numbers = #tpu.dot_dimension_numbers<[1], [1], [0], [0], [0, 0, 1, 0], [], []>} : vector<8x64xbf16>, vector<384x64xbf16>, vector<8x384xf32> -> vector<8x384xf32>
    %c0_17 = arith.constant 0 : index
    %19 = memref.load %arg8[%c0_17] : memref<1xf32, #tpu.memory_space<smem>>
    %20 = vector.broadcast %19 : f32 to vector<8x384xf32>
    %21 = arith.mulf %18, %20 : vector<8x384xf32>
    %c0_18 = arith.constant 0 : index
    %c0_19 = arith.constant 0 : index
    %c0_20 = arith.constant 0 : index
    %22 = vector.load %arg4[%c0_18, %c0_19, %c0_20] : memref<1x8x1xf32, #tpu.memory_space<vmem>>, vector<1x8x1xf32>
    %23 = vector.shape_cast %22 : vector<1x8x1xf32> to vector<8x1xf32>
    %24 = vector.broadcast %23 : vector<8x1xf32> to vector<8x384xf32>
    %25 = arith.addf %21, %24 : vector<8x384xf32>
    %cst_21 = arith.constant -5.000000e+04 : f32
    %cst_22 = arith.constant 5.000000e+04 : f32
    %26 = vector.broadcast %cst_21 : f32 to vector<8x384xf32>
    %27 = arith.maximumf %26, %25 : vector<8x384xf32>
    %28 = vector.broadcast %cst_22 : f32 to vector<8x384xf32>
    %29 = arith.minimumf %28, %27 : vector<8x384xf32>
    %c0_23 = arith.constant 0 : index
    %c0_24 = arith.constant 0 : index
    %c0_25 = arith.constant 0 : index
    %30 = vector.load %arg5[%c0_23, %c0_24, %c0_25] : memref<1x8x1xf32, #tpu.memory_space<vmem>>, vector<1x8x1xf32>
    %31 = vector.shape_cast %30 : vector<1x8x1xf32> to vector<8x1xf32>
    %cst_26 = arith.constant 0.000000e+00 : f32
    %32 = vector.broadcast %cst_26 : f32 to vector<8x1xf32>
    %33 = arith.cmpf ogt, %31, %32 : vector<8x1xf32>
    %cst_27 = arith.constant -5.000000e+04 : f32
    %34 = vector.shape_cast %33 : vector<8x1xi1> to vector<8x1xi1>
    %35 = vector.broadcast %34 : vector<8x1xi1> to vector<8x384xi1>
    %36 = vector.broadcast %cst_27 : f32 to vector<8x384xf32>
    %37 = arith.select %35, %29, %36 : vector<8x384xi1>, vector<8x384xf32>
    %c0_28 = arith.constant 0 : index
    %c0_29 = arith.constant 0 : index
    %c0_30 = arith.constant 0 : index
    %38 = vector.load %arg10[%c0_28, %c0_29, %c0_30] : memref<1x8x384xf32, #tpu.memory_space<vmem>>, vector<1x8x384xf32>
    %39 = vector.shape_cast %38 : vector<1x8x384xf32> to vector<8x384xf32>
    %40 = vector.shape_cast %37 : vector<8x384xf32> to vector<1x8x384xf32>
    tpu.vector_store %arg10[%c0_28, %c0_29, %c0_30], %40 {strides = array<i32>} : memref<1x8x384xf32, #tpu.memory_space<vmem>>, vector<1x8x384xf32>,
    return
  }
  func.func @transform_0(%arg0: i32) -> (i32, i32, i32) {
    %c0_i32 = arith.constant 0 : i32
    %c0_i32_0 = arith.constant 0 : i32
    %c0_i32_1 = arith.constant 0 : i32
    return %arg0, %c0_i32, %c0_i32_0 : i32, i32, i32
  }
  func.func @transform_1(%arg0: i32) -> (i32, i32, i32) {
    %c0_i32 = arith.constant 0 : i32
    %c0_i32_0 = arith.constant 0 : i32
    %c0_i32_1 = arith.constant 0 : i32
    return %arg0, %c0_i32, %c0_i32_0 : i32, i32, i32
  }
  func.func @transform_2(%arg0: i32) -> (i32, i32, i32) {
    %c0_i32 = arith.constant 0 : i32
    %c0_i32_0 = arith.constant 0 : i32
    %c0_i32_1 = arith.constant 0 : i32
    return %arg0, %c0_i32, %c0_i32_0 : i32, i32, i32
  }
  func.func @transform_3(%arg0: i32) -> (i32, i32, i32) {
    %c0_i32 = arith.constant 0 : i32
    %c0_i32_0 = arith.constant 0 : i32
    %c0_i32_1 = arith.constant 0 : i32
    return %arg0, %c0_i32, %c0_i32_0 : i32, i32, i32
  }
  func.func @transform_4(%arg0: i32) -> (i32, i32, i32) {
    %c0_i32 = arith.constant 0 : i32
    %c0_i32_0 = arith.constant 0 : i32
    %c0_i32_1 = arith.constant 0 : i32
    return %arg0, %c0_i32, %c0_i32_0 : i32, i32, i32
  }
  func.func @transform_5(%arg0: i32) -> (i32, i32) {
    %c0_i32 = arith.constant 0 : i32
    %c0_i32_0 = arith.constant 0 : i32
    %c0_i32_1 = arith.constant 0 : i32
    return %c0_i32, %c0_i32_0 : i32, i32
  }
  func.func @transform_6(%arg0: i32) -> (i32, i32) {
    %c0_i32 = arith.constant 0 : i32
    %c0_i32_0 = arith.constant 0 : i32
    %c0_i32_1 = arith.constant 0 : i32
    return %c0_i32, %c0_i32_0 : i32, i32
  }
  func.func @transform_7(%arg0: i32) -> i32 {
    %c0_i32 = arith.constant 0 : i32
    %c0_i32_0 = arith.constant 0 : i32
    return %c0_i32 : i32
  }
  func.func @transform_8(%arg0: i32) -> (i32, i32, i32) {
    %c0_i32 = arith.constant 0 : i32
    %c0_i32_0 = arith.constant 0 : i32
    %c0_i32_1 = arith.constant 0 : i32
    return %arg0, %c0_i32, %c0_i32_0 : i32, i32, i32
  }
  func.func @transform_9(%arg0: i32) -> (i32, i32, i32) {
    %c0_i32 = arith.constant 0 : i32
    %c0_i32_0 = arith.constant 0 : i32
    %c0_i32_1 = arith.constant 0 : i32
    return %arg0, %c0_i32, %c0_i32_0 : i32, i32, i32
  }
}

</mosaic_0001>

<bundles_post_ra>
// kernel: generalized_vl_rcnn_forward.5
= control target key start
LH: loop header
LB: loop body
LE: loop exit
PB: predicated region body
PF: predicated region fallthrough
CT: control target
= control target key end

     0   :  { %vm270_vm0 = vcmask 261120   ;;  %vm1384_vm1 = vcmask 257024   ;;  %vm1705_vm2 = vcmask 519168   ;;  %s3233_s1 = inlined_call_operand.vmem [shape: bf16[32,32], index: 1, kind: input, shape index: {}]   ;;  %s3234_s0 = inlined_call_operand.vmem [shape: bf16[512,32], index: 0, kind: input, shape index: {}]   ;;  %s3235_s3 = inlined_call_operand.vmem [shape: bf16[32,64], index: 3, kind: input, shape index: {}]   ;;  %s3236_s2 = inlined_call_operand.vmem [shape: f32[1,32], index: 2, kind: input, shape index: {}]   ;;  %s3237_s5 = inlined_call_operand.vmem [shape: bf16[512,32], index: 5, kind: output, shape index: {0}]   ;;  %s3238_s4 = inlined_call_operand.vmem [shape: f32[1,64], index: 4, kind: input, shape index: {}]   ;;  %s3239_s6 = inlined_call_operand.vmem [shape: bf16[512,64], index: 6, kind: output, shape index: {1}]  }
   0x1   :  { %v2340_v0 = vld [vmem:[%s3233_s1] sm:$0xff]   ;;  %v2341_v1 = vld [vmem:[%s3233_s1 + $0x8] sm:$0xff]   ;;  %v2344_v4 = vld [vmem:[%s3234_s0 + $0x10] sm:$0xff]  }
   0x2   :  { %2204 = vmatprep.subr.bf16.mxu0 %v2340_v0  ;;  %v2342_v2 = vld [vmem:[%s3234_s0] sm:$0xff]   ;;  %v2343_v3 = vld [vmem:[%s3234_s0 + $0x8] sm:$0xff]   ;;  %v2345_v5 = vld [vmem:[%s3234_s0 + $0x18] sm:$0xff]  }
   0x3   :  { %2205 = vmatpush3.bf16.msra.mxu0 %v2340_v0  ;;  %2208 = vmatprep.mubr.msk.bf16.mxu0 %vm270_vm0, %v2342_v2  ;;  %v2346_v6 = vld [vmem:[%s3234_s0 + $0x20] sm:$0xff]   ;;  %v2347_v7 = vld [vmem:[%s3234_s0 + $0x28] sm:$0xff]   ;;  %v2348_v8 = vld [vmem:[%s3234_s0 + $0x30] sm:$0xff]  }
   0x4   :  { %2206 = vmatprep.subr.bf16.mxu0 %v2341_v1  ;;  %v2349_v9 = vld [vmem:[%s3234_s0 + $0x38] sm:$0xff]   ;;  %v2350_v10 = vld [vmem:[%s3234_s0 + $0x40] sm:$0xff]   ;;  %v2351_v11 = vld [vmem:[%s3234_s0 + $0x48] sm:$0xff]  }
   0x5   :  { %v2352_v12 = vld [vmem:[%s3234_s0 + $0x50] sm:$0xff]   ;;  %v2353_v13 = vld [vmem:[%s3234_s0 + $0x58] sm:$0xff]   ;;  %v2354_v14 = vld [vmem:[%s3234_s0 + $0x60] sm:$0xff]  }
   0x6   :  { %v2355_v15 = vld [vmem:[%s3234_s0 + $0x68] sm:$0xff]   ;;  %v2356_v16 = vld [vmem:[%s3234_s0 + $0x70] sm:$0xff]   ;;  %v2357_v17 = vld [vmem:[%s3234_s0 + $0x78] sm:$0xff]  }
   0x7   :  { %2207 = vmatpush3.bf16.msra.mxu0 %v2341_v1  ;;  %v2358_v18 = vld [vmem:[%s3234_s0 + $0x80] sm:$0xff]   ;;  %v2359_v19 = vld [vmem:[%s3234_s0 + $0x88] sm:$0xff]   ;;  %v2360_v20 = vld [vmem:[%s3234_s0 + $0x90] sm:$0xff]  }
   0x8   :  { %v2361_v21 = vld [vmem:[%s3234_s0 + $0x98] sm:$0xff]   ;;  %v2362_v22 = vld [vmem:[%s3234_s0 + $0xa0] sm:$0xff]   ;;  %v2363_v23 = vld [vmem:[%s3234_s0 + $0xa8] sm:$0xff]  }
   0x9   :  { %v2364_v24 = vld [vmem:[%s3234_s0 + $0xb0] sm:$0xff]   ;;  %v2365_v25 = vld [vmem:[%s3234_s0 + $0xb8] sm:$0xff]   ;;  %v2374_v26 = vld [vmem:[%s3235_s3] sm:$0xff]  }
   0xa   :  { %2209 = vmatmul.mubr.msk.bf16.vlgmr.msra.gmra.mrb[0].mxu0 %vm270_vm0, %v2343_v3  ;;  %v2366_v27 = vld [vmem:[%s3234_s0 + $0xc0] sm:$0xff]   ;;  %2272 = vmatprep.subr.bf16.mxu1 %v2374_v26  ;;  %v2375_v28 = vld [vmem:[%s3235_s3 + $0x8] sm:$0xff]   ;;  %v2368_v30 = vld [vmem:[%s3234_s0 + $0xd0] sm:$0xff]  }
   0xb   :  { %2212 = vmatprep.mubr.msk.bf16.mxu0 %vm270_vm0, %v2344_v4  ;;  %2273 = vmatpush3.bf16.msra.mxu1 %v2374_v26  ;;  %v2367_v29 = vld [vmem:[%s3234_s0 + $0xc8] sm:$0xff]   ;;  %v2369_v31 = vld [vmem:[%s3234_s0 + $0xd8] sm:$0xff]   ;;  %v2370_v32 = vld [vmem:[%s3234_s0 + $0xe0] sm:$0xff]  }
   0xc   :  { %2274 = vmatprep.subr.bf16.mxu1 %v2375_v28  ;;  %v2371_v33 = vld [vmem:[%s3234_s0 + $0xe8] sm:$0xff]   ;;  %v2372_v34 = vld [vmem:[%s3234_s0 + $0xf0] sm:$0xff]   ;;  %v2373_v35 = vld [vmem:[%s3234_s0 + $0xf8] sm:$0xff]  }
   0xd   :  { %v2554_v36 = vld [vmem:[%s3236_s2] ss:$0 sm:$0xff] }
   0xf   :  { %2275 = vmatpush3.bf16.msra.mxu1 %v2375_v28 }
  0x12   :  { %2213 = vmatmul.mubr.msk.bf16.gmra.mrb[4].mxu0 %vm270_vm0, %v2345_v5 }
  0x13   :  { %2216 = vmatprep.mubr.msk.bf16.mxu0 %vm270_vm0, %v2346_v6 }
  0x1a   :  { %2217 = vmatmul.mubr.msk.bf16.gmra.mrb[8].mxu0 %vm270_vm0, %v2347_v7 }
  0x1b   :  { %2220 = vmatprep.mubr.msk.bf16.mxu0 %vm270_vm0, %v2348_v8 }
  0x22   :  { %2221 = vmatmul.mubr.msk.bf16.gmra.mrb[12].mxu0 %vm270_vm0, %v2349_v9 }
  0x23   :  { %2224 = vmatprep.mubr.msk.bf16.mxu0 %vm270_vm0, %v2350_v10 }
  0x2a   :  { %2225 = vmatmul.mubr.msk.bf16.gmra.mrb[16].mxu0 %vm270_vm0, %v2351_v11 }
  0x2b   :  { %2228 = vmatprep.mubr.msk.bf16.mxu0 %vm270_vm0, %v2352_v12 }
  0x32   :  { %2229 = vmatmul.mubr.msk.bf16.gmra.mrb[20].mxu0 %vm270_vm0, %v2353_v13 }
  0x33   :  { %2232 = vmatprep.mubr.msk.bf16.mxu0 %vm270_vm0, %v2354_v14 }
  0x3a   :  { %2233 = vmatmul.mubr.msk.bf16.gmra.mrb[24].mxu0 %vm270_vm0, %v2355_v15 }
  0x3b   :  { %2236 = vmatprep.mubr.msk.bf16.mxu0 %vm270_vm0, %v2356_v16 }
  0x42   :  { %2237 = vmatmul.mubr.msk.bf16.gmra.mrb[28].mxu0 %vm270_vm0, %v2357_v17 }
  0x43   :  { %2240 = vmatprep.mubr.msk.bf16.mxu0 %vm270_vm0, %v2358_v18 }
  0x4a   :  { %2241 = vmatmul.mubr.msk.bf16.gmra.mrb[32].mxu0 %vm270_vm0, %v2359_v19 }
  0x4b   :  { %2244 = vmatprep.mubr.msk.bf16.mxu0 %vm270_vm0, %v2360_v20 }
  0x52   :  { %2245 = vmatmul.mubr.msk.bf16.gmra.mrb[36].mxu0 %vm270_vm0, %v2361_v21 }
  0x53   :  { %2248 = vmatprep.mubr.msk.bf16.mxu0 %vm270_vm0, %v2362_v22 }
  0x5a   :  { %2249 = vmatmul.mubr.msk.bf16.gmra.mrb[40].mxu0 %vm270_vm0, %v2363_v23 }
  0x5b   :  { %2252 = vmatprep.mubr.msk.bf16.mxu0 %vm270_vm0, %v2364_v24 }
  0x62   :  { %2253 = vmatmul.mubr.msk.bf16.gmra.mrb[44].mxu0 %vm270_vm0, %v2365_v25 }
  0x63   :  { %2256 = vmatprep.mubr.msk.bf16.mxu0 %vm270_vm0, %v2366_v27 }
  0x6a   :  { %2257 = vmatmul.mubr.msk.bf16.gmra.mrb[48].mxu0 %vm270_vm0, %v2367_v29 }
  0x6b   :  { %2260 = vmatprep.mubr.msk.bf16.mxu0 %vm270_vm0, %v2368_v30 }
  0x72   :  { %2261 = vmatmul.mubr.msk.bf16.gmra.mrb[52].mxu0 %vm270_vm0, %v2369_v31 }
  0x73   :  { %2264 = vmatprep.mubr.msk.bf16.mxu0 %vm270_vm0, %v2370_v32 }
  0x7a   :  { %2265 = vmatmul.mubr.msk.bf16.gmra.mrb[56].mxu0 %vm270_vm0, %v2371_v33 }
  0x7b   :  { %2268 = vmatprep.mubr.msk.bf16.mxu0 %vm270_vm0, %v2372_v34 }
  0x82   :  { %2269 = vmatmul.mubr.msk.bf16.gmra.mrb[60].mxu0 %vm270_vm0, %v2373_v35 }
  0xdd   :  { %v2210_v37 = vpop.f32.mrb[0].mxu0 }
  0xde   :  { %v410_v38 = vadd.f32 %v2210_v37, %v2554_v36  ;;  %v401_v39 = vpop.f32.mrb[1].mxu0 }
  0xdf   :  { %v402_v40 = vadd.f32 %v2554_v36, %v401_v39  ;;  %v2211_v41 = vpop.f32.mrb[2].mxu0 }
  0xe0   :  { %v658_v42 = vmax.f32 %v410_v38, 0.0  ;;  %v413_v43 = vadd.f32 %v2211_v41, %v2554_v36  ;;  %v404_v44 = vpop.f32.mrb[3].mxu0 }
  0xe1   :  { %v656_v45 = vmax.f32 %v402_v40, 0.0  ;;  %v405_v46 = vadd.f32 %v2554_v36, %v404_v44 }
  0xe2   :  { %v2010_v47 = vpack.c.bf16 %v658_v42, %v658_v42  ;;  %v659_v48 = vmax.f32 %v413_v43, 0.0 }
  0xe3   :  { %v2008_v49 = vpack.c.bf16 %v656_v45, %v656_v45  ;;  %v657_v50 = vmax.f32 %v405_v46, 0.0 }
  0xe4   :  { %1387 = vst.msk [vmem:[%s3237_s5 + $0x8] sm:$0xf] %vm1384_vm1, %v2010_v47  ;;  %v721_v51 = vpack.c.bf16 %v659_v48, %v658_v42  ;;  %v2011_v52 = vpack.c.bf16 %v659_v48, %v659_v48 }
  0xe5   :  { %1385 = vst.msk [vmem:[%s3237_s5] sm:$0xf] %vm1384_vm1, %v2008_v49  ;;  %v2009_v53 = vpack.c.bf16 %v657_v50, %v657_v50  ;;  %v2214_v54 = vpop.f32.mrb[4].mxu0  ;;  %v720_v55 = vpack.c.bf16 %v657_v50, %v656_v45 }
  0xe6   :  { %1388 = vst.msk [vmem:[%s3237_s5 + $0xc] sm:$0xf] %vm1384_vm1, %v2011_v52  ;;  %v426_v56 = vadd.f32 %v2214_v54, %v2554_v36  ;;  %v417_v57 = vpop.f32.mrb[5].mxu0 }
  0xe7   :  { %1386 = vst.msk [vmem:[%s3237_s5 + $0x4] sm:$0xf] %vm1384_vm1, %v2009_v53  ;;  %v418_v58 = vadd.f32 %v2554_v36, %v417_v57  ;;  %v2215_v59 = vpop.f32.mrb[6].mxu0  ;;  %2276 = vmatprep.mubr.msk.bf16.mxu1 %vm270_vm0, %v720_v55 }
  0xe8   :  { %v662_v60 = vmax.f32 %v426_v56, 0.0  ;;  %v429_v61 = vadd.f32 %v2215_v59, %v2554_v36  ;;  %v420_v62 = vpop.f32.mrb[7].mxu0  ;;  %2277 = vmatmul.mubr.msk.bf16.vlgmr.msra.gmra.mrb[0].mxu1 %vm270_vm0, %v721_v51 }
  0xe9   :  { %v660_v63 = vmax.f32 %v418_v58, 0.0  ;;  %v421_v0 = vadd.f32 %v2554_v36, %v420_v62 }
  0xea   :  { %v2014_v1 = vpack.c.bf16 %v662_v60, %v662_v60  ;;  %v663_v2 = vmax.f32 %v429_v61, 0.0 }
  0xeb   :  { %v2012_v3 = vpack.c.bf16 %v660_v63, %v660_v63  ;;  %v661_v4 = vmax.f32 %v421_v0, 0.0 }
  0xec   :  { %1391 = vst.msk [vmem:[%s3237_s5 + $0x18] sm:$0xf] %vm1384_vm1, %v2014_v1  ;;  %v723_v5 = vpack.c.bf16 %v663_v2, %v662_v60  ;;  %v2015_v6 = vpack.c.bf16 %v663_v2, %v663_v2 }
  0xed   :  { %1389 = vst.msk [vmem:[%s3237_s5 + $0x10] sm:$0xf] %vm1384_vm1, %v2012_v3  ;;  %v722_v7 = vpack.c.bf16 %v661_v4, %v660_v63  ;;  %v2013_v8 = vpack.c.bf16 %v661_v4, %v661_v4  ;;  %v2218_v9 = vpop.f32.mrb[8].mxu0 }
  0xee   :  { %1392 = vst.msk [vmem:[%s3237_s5 + $0x1c] sm:$0xf] %vm1384_vm1, %v2015_v6  ;;  %v442_v10 = vadd.f32 %v2218_v9, %v2554_v36  ;;  %v433_v11 = vpop.f32.mrb[9].mxu0 }
  0xef   :  { %1390 = vst.msk [vmem:[%s3237_s5 + $0x14] sm:$0xf] %vm1384_vm1, %v2013_v8  ;;  %v434_v12 = vadd.f32 %v2554_v36, %v433_v11  ;;  %v2219_v13 = vpop.f32.mrb[10].mxu0  ;;  %2280 = vmatprep.mubr.msk.bf16.mxu1 %vm270_vm0, %v722_v7 }
  0xf0   :  { %v666_v14 = vmax.f32 %v442_v10, 0.0  ;;  %v445_v15 = vadd.f32 %v2219_v13, %v2554_v36  ;;  %v436_v16 = vpop.f32.mrb[11].mxu0  ;;  %2281 = vmatmul.mubr.msk.bf16.gmra.mrb[4].mxu1 %vm270_vm0, %v723_v5 }
  0xf1   :  { %v664_v17 = vmax.f32 %v434_v12, 0.0  ;;  %v437_v18 = vadd.f32 %v2554_v36, %v436_v16 }
  0xf2   :  { %v2018_v19 = vpack.c.bf16 %v666_v14, %v666_v14  ;;  %v667_v20 = vmax.f32 %v445_v15, 0.0 }
  0xf3   :  { %v2016_v21 = vpack.c.bf16 %v664_v17, %v664_v17  ;;  %v665_v22 = vmax.f32 %v437_v18, 0.0 }
  0xf4   :  { %1395 = vst.msk [vmem:[%s3237_s5 + $0x28] sm:$0xf] %vm1384_vm1, %v2018_v19  ;;  %v725_v23 = vpack.c.bf16 %v667_v20, %v666_v14  ;;  %v2019_v24 = vpack.c.bf16 %v667_v20, %v667_v20 }
  0xf5   :  { %1393 = vst.msk [vmem:[%s3237_s5 + $0x20] sm:$0xf] %vm1384_vm1, %v2016_v21  ;;  %v724_v25 = vpack.c.bf16 %v665_v22, %v664_v17  ;;  %v2017_v26 = vpack.c.bf16 %v665_v22, %v665_v22  ;;  %v2222_v27 = vpop.f32.mrb[12].mxu0 }
  0xf6   :  { %1396 = vst.msk [vmem:[%s3237_s5 + $0x2c] sm:$0xf] %vm1384_vm1, %v2019_v24  ;;  %v458_v28 = vadd.f32 %v2222_v27, %v2554_v36  ;;  %v449_v29 = vpop.f32.mrb[13].mxu0 }
  0xf7   :  { %1394 = vst.msk [vmem:[%s3237_s5 + $0x24] sm:$0xf] %vm1384_vm1, %v2017_v26  ;;  %v450_v30 = vadd.f32 %v2554_v36, %v449_v29  ;;  %v2223_v31 = vpop.f32.mrb[14].mxu0  ;;  %2284 = vmatprep.mubr.msk.bf16.mxu1 %vm270_vm0, %v724_v25 }
  0xf8   :  { %v670_v32 = vmax.f32 %v458_v28, 0.0  ;;  %v461_v33 = vadd.f32 %v2223_v31, %v2554_v36  ;;  %v452_v34 = vpop.f32.mrb[15].mxu0  ;;  %2285 = vmatmul.mubr.msk.bf16.gmra.mrb[8].mxu1 %vm270_vm0, %v725_v23 }
  0xf9   :  { %v668_v35 = vmax.f32 %v450_v30, 0.0  ;;  %v453_v37 = vadd.f32 %v2554_v36, %v452_v34 }
  0xfa   :  { %v2022_v38 = vpack.c.bf16 %v670_v32, %v670_v32  ;;  %v671_v39 = vmax.f32 %v461_v33, 0.0 }
  0xfb   :  { %v2020_v40 = vpack.c.bf16 %v668_v35, %v668_v35  ;;  %v669_v41 = vmax.f32 %v453_v37, 0.0 }
  0xfc   :  { %1399 = vst.msk [vmem:[%s3237_s5 + $0x38] sm:$0xf] %vm1384_vm1, %v2022_v38  ;;  %v727_v42 = vpack.c.bf16 %v671_v39, %v670_v32  ;;  %v2023_v43 = vpack.c.bf16 %v671_v39, %v671_v39 }
  0xfd   :  { %1397 = vst.msk [vmem:[%s3237_s5 + $0x30] sm:$0xf] %vm1384_vm1, %v2020_v40  ;;  %v726_v44 = vpack.c.bf16 %v669_v41, %v668_v35  ;;  %v2021_v45 = vpack.c.bf16 %v669_v41, %v669_v41  ;;  %v2226_v46 = vpop.f32.mrb[16].mxu0 }
  0xfe   :  { %1400 = vst.msk [vmem:[%s3237_s5 + $0x3c] sm:$0xf] %vm1384_vm1, %v2023_v43  ;;  %v474_v47 = vadd.f32 %v2226_v46, %v2554_v36  ;;  %v465_v48 = vpop.f32.mrb[17].mxu0 }
  0xff   :  { %1398 = vst.msk [vmem:[%s3237_s5 + $0x34] sm:$0xf] %vm1384_vm1, %v2021_v45  ;;  %v466_v49 = vadd.f32 %v2554_v36, %v465_v48  ;;  %v2227_v50 = vpop.f32.mrb[18].mxu0  ;;  %2288 = vmatprep.mubr.msk.bf16.mxu1 %vm270_vm0, %v726_v44 }
 0x100   :  { %v674_v51 = vmax.f32 %v474_v47, 0.0  ;;  %v477_v52 = vadd.f32 %v2227_v50, %v2554_v36  ;;  %v468_v53 = vpop.f32.mrb[19].mxu0  ;;  %2289 = vmatmul.mubr.msk.bf16.gmra.mrb[12].mxu1 %vm270_vm0, %v727_v42 }
 0x101   :  { %v672_v54 = vmax.f32 %v466_v49, 0.0  ;;  %v469_v55 = vadd.f32 %v2554_v36, %v468_v53 }
 0x102   :  { %v2026_v56 = vpack.c.bf16 %v674_v51, %v674_v51  ;;  %v675_v57 = vmax.f32 %v477_v52, 0.0 }
 0x103   :  { %v2024_v58 = vpack.c.bf16 %v672_v54, %v672_v54  ;;  %v673_v59 = vmax.f32 %v469_v55, 0.0 }
 0x104   :  { %1403 = vst.msk [vmem:[%s3237_s5 + $0x48] sm:$0xf] %vm1384_vm1, %v2026_v56  ;;  %v729_v60 = vpack.c.bf16 %v675_v57, %v674_v51  ;;  %v2027_v61 = vpack.c.bf16 %v675_v57, %v675_v57 }
 0x105   :  { %1401 = vst.msk [vmem:[%s3237_s5 + $0x40] sm:$0xf] %vm1384_vm1, %v2024_v58  ;;  %v728_v62 = vpack.c.bf16 %v673_v59, %v672_v54  ;;  %v2025_v63 = vpack.c.bf16 %v673_v59, %v673_v59  ;;  %v2230_v0 = vpop.f32.mrb[20].mxu0 }
 0x106   :  { %1404 = vst.msk [vmem:[%s3237_s5 + $0x4c] sm:$0xf] %vm1384_vm1, %v2027_v61  ;;  %v490_v1 = vadd.f32 %v2230_v0, %v2554_v36  ;;  %v481_v2 = vpop.f32.mrb[21].mxu0 }
 0x107   :  { %1402 = vst.msk [vmem:[%s3237_s5 + $0x44] sm:$0xf] %vm1384_vm1, %v2025_v63  ;;  %v482_v3 = vadd.f32 %v2554_v36, %v481_v2  ;;  %v2231_v4 = vpop.f32.mrb[22].mxu0  ;;  %2292 = vmatprep.mubr.msk.bf16.mxu1 %vm270_vm0, %v728_v62 }
 0x108   :  { %v678_v5 = vmax.f32 %v490_v1, 0.0  ;;  %v493_v6 = vadd.f32 %v2231_v4, %v2554_v36  ;;  %v484_v7 = vpop.f32.mrb[23].mxu0  ;;  %2293 = vmatmul.mubr.msk.bf16.gmra.mrb[16].mxu1 %vm270_vm0, %v729_v60 }
 0x109   :  { %v676_v8 = vmax.f32 %v482_v3, 0.0  ;;  %v485_v9 = vadd.f32 %v2554_v36, %v484_v7 }
 0x10a   :  { %v2030_v10 = vpack.c.bf16 %v678_v5, %v678_v5  ;;  %v679_v11 = vmax.f32 %v493_v6, 0.0 }
 0x10b   :  { %v2028_v12 = vpack.c.bf16 %v676_v8, %v676_v8  ;;  %v677_v13 = vmax.f32 %v485_v9, 0.0 }
 0x10c   :  { %1407 = vst.msk [vmem:[%s3237_s5 + $0x58] sm:$0xf] %vm1384_vm1, %v2030_v10  ;;  %v731_v14 = vpack.c.bf16 %v679_v11, %v678_v5  ;;  %v2031_v15 = vpack.c.bf16 %v679_v11, %v679_v11 }
 0x10d   :  { %1405 = vst.msk [vmem:[%s3237_s5 + $0x50] sm:$0xf] %vm1384_vm1, %v2028_v12  ;;  %v730_v16 = vpack.c.bf16 %v677_v13, %v676_v8  ;;  %v2029_v17 = vpack.c.bf16 %v677_v13, %v677_v13  ;;  %v2234_v18 = vpop.f32.mrb[24].mxu0 }
 0x10e   :  { %1408 = vst.msk [vmem:[%s3237_s5 + $0x5c] sm:$0xf] %vm1384_vm1, %v2031_v15  ;;  %v506_v19 = vadd.f32 %v2234_v18, %v2554_v36  ;;  %v497_v20 = vpop.f32.mrb[25].mxu0 }
 0x10f   :  { %1406 = vst.msk [vmem:[%s3237_s5 + $0x54] sm:$0xf] %vm1384_vm1, %v2029_v17  ;;  %v498_v21 = vadd.f32 %v2554_v36, %v497_v20  ;;  %v2235_v22 = vpop.f32.mrb[26].mxu0  ;;  %2296 = vmatprep.mubr.msk.bf16.mxu1 %vm270_vm0, %v730_v16 }
 0x110   :  { %v682_v23 = vmax.f32 %v506_v19, 0.0  ;;  %v509_v24 = vadd.f32 %v2235_v22, %v2554_v36  ;;  %v500_v25 = vpop.f32.mrb[27].mxu0  ;;  %2297 = vmatmul.mubr.msk.bf16.gmra.mrb[20].mxu1 %vm270_vm0, %v731_v14 }
 0x111   :  { %v680_v26 = vmax.f32 %v498_v21, 0.0  ;;  %v501_v27 = vadd.f32 %v2554_v36, %v500_v25 }
 0x112   :  { %v2034_v28 = vpack.c.bf16 %v682_v23, %v682_v23  ;;  %v683_v29 = vmax.f32 %v509_v24, 0.0 }
 0x113   :  { %v2032_v30 = vpack.c.bf16 %v680_v26, %v680_v26  ;;  %v681_v31 = vmax.f32 %v501_v27, 0.0 }
 0x114   :  { %1411 = vst.msk [vmem:[%s3237_s5 + $0x68] sm:$0xf] %vm1384_vm1, %v2034_v28  ;;  %v733_v32 = vpack.c.bf16 %v683_v29, %v682_v23  ;;  %v2035_v33 = vpack.c.bf16 %v683_v29, %v683_v29 }
 0x115   :  { %1409 = vst.msk [vmem:[%s3237_s5 + $0x60] sm:$0xf] %vm1384_vm1, %v2032_v30  ;;  %v732_v34 = vpack.c.bf16 %v681_v31, %v680_v26  ;;  %v2033_v35 = vpack.c.bf16 %v681_v31, %v681_v31  ;;  %v2238_v37 = vpop.f32.mrb[28].mxu0 }
 0x116   :  { %1412 = vst.msk [vmem:[%s3237_s5 + $0x6c] sm:$0xf] %vm1384_vm1, %v2035_v33  ;;  %v522_v38 = vadd.f32 %v2238_v37, %v2554_v36  ;;  %v513_v39 = vpop.f32.mrb[29].mxu0 }
 0x117   :  { %1410 = vst.msk [vmem:[%s3237_s5 + $0x64] sm:$0xf] %vm1384_vm1, %v2033_v35  ;;  %v514_v40 = vadd.f32 %v2554_v36, %v513_v39  ;;  %v2239_v41 = vpop.f32.mrb[30].mxu0  ;;  %2300 = vmatprep.mubr.msk.bf16.mxu1 %vm270_vm0, %v732_v34 }
 0x118   :  { %v686_v42 = vmax.f32 %v522_v38, 0.0  ;;  %v525_v43 = vadd.f32 %v2239_v41, %v2554_v36  ;;  %v516_v44 = vpop.f32.mrb[31].mxu0  ;;  %2301 = vmatmul.mubr.msk.bf16.gmra.mrb[24].mxu1 %vm270_vm0, %v733_v32 }
 0x119   :  { %v684_v45 = vmax.f32 %v514_v40, 0.0  ;;  %v517_v46 = vadd.f32 %v2554_v36, %v516_v44 }
 0x11a   :  { %v2038_v47 = vpack.c.bf16 %v686_v42, %v686_v42  ;;  %v687_v48 = vmax.f32 %v525_v43, 0.0 }
 0x11b   :  { %v2036_v49 = vpack.c.bf16 %v684_v45, %v684_v45  ;;  %v685_v50 = vmax.f32 %v517_v46, 0.0 }
 0x11c   :  { %1415 = vst.msk [vmem:[%s3237_s5 + $0x78] sm:$0xf] %vm1384_vm1, %v2038_v47  ;;  %v735_v51 = vpack.c.bf16 %v687_v48, %v686_v42  ;;  %v2039_v52 = vpack.c.bf16 %v687_v48, %v687_v48 }
 0x11d   :  { %1413 = vst.msk [vmem:[%s3237_s5 + $0x70] sm:$0xf] %vm1384_vm1, %v2036_v49  ;;  %v734_v53 = vpack.c.bf16 %v685_v50, %v684_v45  ;;  %v2037_v54 = vpack.c.bf16 %v685_v50, %v685_v50  ;;  %v2242_v55 = vpop.f32.mrb[32].mxu0 }
 0x11e   :  { %1416 = vst.msk [vmem:[%s3237_s5 + $0x7c] sm:$0xf] %vm1384_vm1, %v2039_v52  ;;  %v538_v56 = vadd.f32 %v2242_v55, %v2554_v36  ;;  %v529_v57 = vpop.f32.mrb[33].mxu0 }
 0x11f   :  { %1414 = vst.msk [vmem:[%s3237_s5 + $0x74] sm:$0xf] %vm1384_vm1, %v2037_v54  ;;  %v530_v58 = vadd.f32 %v2554_v36, %v529_v57  ;;  %v2243_v59 = vpop.f32.mrb[34].mxu0  ;;  %2304 = vmatprep.mubr.msk.bf16.mxu1 %vm270_vm0, %v734_v53 }
 0x120   :  { %v690_v60 = vmax.f32 %v538_v56, 0.0  ;;  %v541_v61 = vadd.f32 %v2243_v59, %v2554_v36  ;;  %v532_v62 = vpop.f32.mrb[35].mxu0  ;;  %2305 = vmatmul.mubr.msk.bf16.gmra.mrb[28].mxu1 %vm270_vm0, %v735_v51 }
 0x121   :  { %v688_v63 = vmax.f32 %v530_v58, 0.0  ;;  %v533_v0 = vadd.f32 %v2554_v36, %v532_v62 }
 0x122   :  { %v2042_v1 = vpack.c.bf16 %v690_v60, %v690_v60  ;;  %v691_v2 = vmax.f32 %v541_v61, 0.0 }
 0x123   :  { %v2040_v3 = vpack.c.bf16 %v688_v63, %v688_v63  ;;  %v689_v4 = vmax.f32 %v533_v0, 0.0 }
 0x124   :  { %1419 = vst.msk [vmem:[%s3237_s5 + $0x88] sm:$0xf] %vm1384_vm1, %v2042_v1  ;;  %v737_v5 = vpack.c.bf16 %v691_v2, %v690_v60  ;;  %v2043_v6 = vpack.c.bf16 %v691_v2, %v691_v2 }
 0x125   :  { %1417 = vst.msk [vmem:[%s3237_s5 + $0x80] sm:$0xf] %vm1384_vm1, %v2040_v3  ;;  %v736_v7 = vpack.c.bf16 %v689_v4, %v688_v63  ;;  %v2041_v8 = vpack.c.bf16 %v689_v4, %v689_v4  ;;  %v2246_v9 = vpop.f32.mrb[36].mxu0 }
 0x126   :  { %1420 = vst.msk [vmem:[%s3237_s5 + $0x8c] sm:$0xf] %vm1384_vm1, %v2043_v6  ;;  %v554_v10 = vadd.f32 %v2246_v9, %v2554_v36  ;;  %v545_v11 = vpop.f32.mrb[37].mxu0 }
 0x127   :  { %1418 = vst.msk [vmem:[%s3237_s5 + $0x84] sm:$0xf] %vm1384_vm1, %v2041_v8  ;;  %v546_v12 = vadd.f32 %v2554_v36, %v545_v11  ;;  %v2247_v13 = vpop.f32.mrb[38].mxu0  ;;  %2308 = vmatprep.mubr.msk.bf16.mxu1 %vm270_vm0, %v736_v7 }
 0x128   :  { %v694_v14 = vmax.f32 %v554_v10, 0.0  ;;  %v557_v15 = vadd.f32 %v2247_v13, %v2554_v36  ;;  %v548_v16 = vpop.f32.mrb[39].mxu0  ;;  %2309 = vmatmul.mubr.msk.bf16.gmra.mrb[32].mxu1 %vm270_vm0, %v737_v5 }
 0x129   :  { %v692_v17 = vmax.f32 %v546_v12, 0.0  ;;  %v549_v18 = vadd.f32 %v2554_v36, %v548_v16 }
 0x12a   :  { %v2046_v19 = vpack.c.bf16 %v694_v14, %v694_v14  ;;  %v695_v20 = vmax.f32 %v557_v15, 0.0 }
 0x12b   :  { %v2044_v21 = vpack.c.bf16 %v692_v17, %v692_v17  ;;  %v693_v22 = vmax.f32 %v549_v18, 0.0 }
 0x12c   :  { %1423 = vst.msk [vmem:[%s3237_s5 + $0x98] sm:$0xf] %vm1384_vm1, %v2046_v19  ;;  %v739_v23 = vpack.c.bf16 %v695_v20, %v694_v14  ;;  %v2047_v24 = vpack.c.bf16 %v695_v20, %v695_v20 }
 0x12d   :  { %1421 = vst.msk [vmem:[%s3237_s5 + $0x90] sm:$0xf] %vm1384_vm1, %v2044_v21  ;;  %v738_v25 = vpack.c.bf16 %v693_v22, %v692_v17  ;;  %v2045_v26 = vpack.c.bf16 %v693_v22, %v693_v22  ;;  %v2250_v27 = vpop.f32.mrb[40].mxu0 }
 0x12e   :  { %1424 = vst.msk [vmem:[%s3237_s5 + $0x9c] sm:$0xf] %vm1384_vm1, %v2047_v24  ;;  %v570_v28 = vadd.f32 %v2250_v27, %v2554_v36  ;;  %v561_v29 = vpop.f32.mrb[41].mxu0 }
 0x12f   :  { %1422 = vst.msk [vmem:[%s3237_s5 + $0x94] sm:$0xf] %vm1384_vm1, %v2045_v26  ;;  %v562_v30 = vadd.f32 %v2554_v36, %v561_v29  ;;  %v2251_v31 = vpop.f32.mrb[42].mxu0  ;;  %2312 = vmatprep.mubr.msk.bf16.mxu1 %vm270_vm0, %v738_v25 }
 0x130   :  { %v698_v32 = vmax.f32 %v570_v28, 0.0  ;;  %v573_v33 = vadd.f32 %v2251_v31, %v2554_v36  ;;  %v564_v34 = vpop.f32.mrb[43].mxu0  ;;  %2313 = vmatmul.mubr.msk.bf16.gmra.mrb[36].mxu1 %vm270_vm0, %v739_v23 }
 0x131   :  { %v696_v35 = vmax.f32 %v562_v30, 0.0  ;;  %v565_v37 = vadd.f32 %v2554_v36, %v564_v34 }
 0x132   :  { %v2050_v38 = vpack.c.bf16 %v698_v32, %v698_v32  ;;  %v699_v39 = vmax.f32 %v573_v33, 0.0 }
 0x133   :  { %v2048_v40 = vpack.c.bf16 %v696_v35, %v696_v35  ;;  %v697_v41 = vmax.f32 %v565_v37, 0.0 }
 0x134   :  { %1427 = vst.msk [vmem:[%s3237_s5 + $0xa8] sm:$0xf] %vm1384_vm1, %v2050_v38  ;;  %v741_v42 = vpack.c.bf16 %v699_v39, %v698_v32  ;;  %v2051_v43 = vpack.c.bf16 %v699_v39, %v699_v39 }
 0x135   :  { %1425 = vst.msk [vmem:[%s3237_s5 + $0xa0] sm:$0xf] %vm1384_vm1, %v2048_v40  ;;  %v740_v44 = vpack.c.bf16 %v697_v41, %v696_v35  ;;  %v2049_v45 = vpack.c.bf16 %v697_v41, %v697_v41  ;;  %v2254_v46 = vpop.f32.mrb[44].mxu0 }
 0x136   :  { %1428 = vst.msk [vmem:[%s3237_s5 + $0xac] sm:$0xf] %vm1384_vm1, %v2051_v43  ;;  %v586_v47 = vadd.f32 %v2254_v46, %v2554_v36  ;;  %v577_v48 = vpop.f32.mrb[45].mxu0 }
 0x137   :  { %1426 = vst.msk [vmem:[%s3237_s5 + $0xa4] sm:$0xf] %vm1384_vm1, %v2049_v45  ;;  %v578_v49 = vadd.f32 %v2554_v36, %v577_v48  ;;  %v2255_v50 = vpop.f32.mrb[46].mxu0  ;;  %2316 = vmatprep.mubr.msk.bf16.mxu1 %vm270_vm0, %v740_v44 }
 0x138   :  { %v702_v51 = vmax.f32 %v586_v47, 0.0  ;;  %v589_v52 = vadd.f32 %v2255_v50, %v2554_v36  ;;  %v580_v53 = vpop.f32.mrb[47].mxu0  ;;  %2317 = vmatmul.mubr.msk.bf16.gmra.mrb[40].mxu1 %vm270_vm0, %v741_v42 }
 0x139   :  { %v700_v54 = vmax.f32 %v578_v49, 0.0  ;;  %v581_v55 = vadd.f32 %v2554_v36, %v580_v53 }
 0x13a   :  { %v2054_v56 = vpack.c.bf16 %v702_v51, %v702_v51  ;;  %v703_v57 = vmax.f32 %v589_v52, 0.0 }
 0x13b   :  { %v2052_v58 = vpack.c.bf16 %v700_v54, %v700_v54  ;;  %v701_v59 = vmax.f32 %v581_v55, 0.0 }
 0x13c   :  { %1431 = vst.msk [vmem:[%s3237_s5 + $0xb8] sm:$0xf] %vm1384_vm1, %v2054_v56  ;;  %v743_v60 = vpack.c.bf16 %v703_v57, %v702_v51  ;;  %v2055_v61 = vpack.c.bf16 %v703_v57, %v703_v57 }
 0x13d   :  { %1429 = vst.msk [vmem:[%s3237_s5 + $0xb0] sm:$0xf] %vm1384_vm1, %v2052_v58  ;;  %v742_v62 = vpack.c.bf16 %v701_v59, %v700_v54  ;;  %v2053_v63 = vpack.c.bf16 %v701_v59, %v701_v59  ;;  %v2258_v0 = vpop.f32.mrb[48].mxu0 }
 0x13e   :  { %1432 = vst.msk [vmem:[%s3237_s5 + $0xbc] sm:$0xf] %vm1384_vm1, %v2055_v61  ;;  %v602_v1 = vadd.f32 %v2258_v0, %v2554_v36  ;;  %v593_v2 = vpop.f32.mrb[49].mxu0 }
 0x13f   :  { %1430 = vst.msk [vmem:[%s3237_s5 + $0xb4] sm:$0xf] %vm1384_vm1, %v2053_v63  ;;  %v594_v3 = vadd.f32 %v2554_v36, %v593_v2  ;;  %v2259_v4 = vpop.f32.mrb[50].mxu0  ;;  %2320 = vmatprep.mubr.msk.bf16.mxu1 %vm270_vm0, %v742_v62 }
 0x140   :  { %v706_v5 = vmax.f32 %v602_v1, 0.0  ;;  %v605_v6 = vadd.f32 %v2259_v4, %v2554_v36  ;;  %v596_v7 = vpop.f32.mrb[51].mxu0  ;;  %2321 = vmatmul.mubr.msk.bf16.gmra.mrb[44].mxu1 %vm270_vm0, %v743_v60 }
 0x141   :  { %v704_v8 = vmax.f32 %v594_v3, 0.0  ;;  %v597_v9 = vadd.f32 %v2554_v36, %v596_v7 }
 0x142   :  { %v2058_v10 = vpack.c.bf16 %v706_v5, %v706_v5  ;;  %v707_v11 = vmax.f32 %v605_v6, 0.0 }
 0x143   :  { %v2056_v12 = vpack.c.bf16 %v704_v8, %v704_v8  ;;  %v705_v13 = vmax.f32 %v597_v9, 0.0 }
 0x144   :  { %1435 = vst.msk [vmem:[%s3237_s5 + $0xc8] sm:$0xf] %vm1384_vm1, %v2058_v10  ;;  %v745_v14 = vpack.c.bf16 %v707_v11, %v706_v5  ;;  %v2059_v15 = vpack.c.bf16 %v707_v11, %v707_v11 }
 0x145   :  { %1433 = vst.msk [vmem:[%s3237_s5 + $0xc0] sm:$0xf] %vm1384_vm1, %v2056_v12  ;;  %v744_v16 = vpack.c.bf16 %v705_v13, %v704_v8  ;;  %v2057_v17 = vpack.c.bf16 %v705_v13, %v705_v13  ;;  %v2262_v18 = vpop.f32.mrb[52].mxu0 }
 0x146   :  { %1436 = vst.msk [vmem:[%s3237_s5 + $0xcc] sm:$0xf] %vm1384_vm1, %v2059_v15  ;;  %v618_v19 = vadd.f32 %v2262_v18, %v2554_v36  ;;  %v609_v20 = vpop.f32.mrb[53].mxu0 }
 0x147   :  { %1434 = vst.msk [vmem:[%s3237_s5 + $0xc4] sm:$0xf] %vm1384_vm1, %v2057_v17  ;;  %v610_v21 = vadd.f32 %v2554_v36, %v609_v20  ;;  %v2263_v22 = vpop.f32.mrb[54].mxu0  ;;  %2324 = vmatprep.mubr.msk.bf16.mxu1 %vm270_vm0, %v744_v16 }
 0x148   :  { %v710_v23 = vmax.f32 %v618_v19, 0.0  ;;  %v621_v24 = vadd.f32 %v2263_v22, %v2554_v36  ;;  %v612_v25 = vpop.f32.mrb[55].mxu0  ;;  %2325 = vmatmul.mubr.msk.bf16.gmra.mrb[48].mxu1 %vm270_vm0, %v745_v14 }
 0x149   :  { %v708_v26 = vmax.f32 %v610_v21, 0.0  ;;  %v613_v27 = vadd.f32 %v2554_v36, %v612_v25 }
 0x14a   :  { %v2062_v28 = vpack.c.bf16 %v710_v23, %v710_v23  ;;  %v711_v29 = vmax.f32 %v621_v24, 0.0 }
 0x14b   :  { %v2060_v30 = vpack.c.bf16 %v708_v26, %v708_v26  ;;  %v709_v31 = vmax.f32 %v613_v27, 0.0 }
 0x14c   :  { %1439 = vst.msk [vmem:[%s3237_s5 + $0xd8] sm:$0xf] %vm1384_vm1, %v2062_v28  ;;  %v747_v32 = vpack.c.bf16 %v711_v29, %v710_v23  ;;  %v2063_v33 = vpack.c.bf16 %v711_v29, %v711_v29 }
 0x14d   :  { %1437 = vst.msk [vmem:[%s3237_s5 + $0xd0] sm:$0xf] %vm1384_vm1, %v2060_v30  ;;  %v746_v34 = vpack.c.bf16 %v709_v31, %v708_v26  ;;  %v2061_v35 = vpack.c.bf16 %v709_v31, %v709_v31  ;;  %v2266_v37 = vpop.f32.mrb[56].mxu0 }
 0x14e   :  { %1440 = vst.msk [vmem:[%s3237_s5 + $0xdc] sm:$0xf] %vm1384_vm1, %v2063_v33  ;;  %v634_v38 = vadd.f32 %v2266_v37, %v2554_v36  ;;  %v625_v39 = vpop.f32.mrb[57].mxu0 }
 0x14f   :  { %1438 = vst.msk [vmem:[%s3237_s5 + $0xd4] sm:$0xf] %vm1384_vm1, %v2061_v35  ;;  %v626_v40 = vadd.f32 %v2554_v36, %v625_v39  ;;  %v2267_v41 = vpop.f32.mrb[58].mxu0  ;;  %2328 = vmatprep.mubr.msk.bf16.mxu1 %vm270_vm0, %v746_v34 }
 0x150   :  { %v714_v42 = vmax.f32 %v634_v38, 0.0  ;;  %v637_v43 = vadd.f32 %v2267_v41, %v2554_v36  ;;  %v628_v44 = vpop.f32.mrb[59].mxu0  ;;  %2329 = vmatmul.mubr.msk.bf16.gmra.mrb[52].mxu1 %vm270_vm0, %v747_v32 }
 0x151   :  { %v712_v45 = vmax.f32 %v626_v40, 0.0  ;;  %v629_v46 = vadd.f32 %v2554_v36, %v628_v44 }
 0x152   :  { %v2066_v47 = vpack.c.bf16 %v714_v42, %v714_v42  ;;  %v715_v48 = vmax.f32 %v637_v43, 0.0 }
 0x153   :  { %v2064_v49 = vpack.c.bf16 %v712_v45, %v712_v45  ;;  %v713_v50 = vmax.f32 %v629_v46, 0.0 }
 0x154   :  { %1443 = vst.msk [vmem:[%s3237_s5 + $0xe8] sm:$0xf] %vm1384_vm1, %v2066_v47  ;;  %v749_v51 = vpack.c.bf16 %v715_v48, %v714_v42  ;;  %v2067_v52 = vpack.c.bf16 %v715_v48, %v715_v48 }
 0x155   :  { %1441 = vst.msk [vmem:[%s3237_s5 + $0xe0] sm:$0xf] %vm1384_vm1, %v2064_v49  ;;  %v748_v53 = vpack.c.bf16 %v713_v50, %v712_v45  ;;  %v2065_v54 = vpack.c.bf16 %v713_v50, %v713_v50  ;;  %v2270_v55 = vpop.f32.mrb[60].mxu0 }
 0x156   :  { %1444 = vst.msk [vmem:[%s3237_s5 + $0xec] sm:$0xf] %vm1384_vm1, %v2067_v52  ;;  %v650_v56 = vadd.f32 %v2270_v55, %v2554_v36  ;;  %v641_v57 = vpop.f32.mrb[61].mxu0 }
 0x157   :  { %1442 = vst.msk [vmem:[%s3237_s5 + $0xe4] sm:$0xf] %vm1384_vm1, %v2065_v54  ;;  %v642_v58 = vadd.f32 %v2554_v36, %v641_v57  ;;  %v2271_v59 = vpop.f32.mrb[62].mxu0  ;;  %2332 = vmatprep.mubr.msk.bf16.mxu1 %vm270_vm0, %v748_v53 }
 0x158   :  { %v718_v60 = vmax.f32 %v650_v56, 0.0  ;;  %v653_v61 = vadd.f32 %v2271_v59, %v2554_v36  ;;  %v644_v62 = vpop.f32.mrb[63].mxu0  ;;  %2333 = vmatmul.mubr.msk.bf16.gmra.mrb[56].mxu1 %vm270_vm0, %v749_v51 }
 0x159   :  { %v716_v63 = vmax.f32 %v642_v58, 0.0  ;;  %v645_v0 = vadd.f32 %v2554_v36, %v644_v62  ;;  %v2911_v36 = vld [vmem:[%s3238_s4] ss:$0 sm:$0xff] }
 0x15a   :  { %v2070_v1 = vpack.c.bf16 %v718_v60, %v718_v60  ;;  %v719_v2 = vmax.f32 %v653_v61, 0.0 }
 0x15b   :  { %v2068_v3 = vpack.c.bf16 %v716_v63, %v716_v63  ;;  %v717_v4 = vmax.f32 %v645_v0, 0.0 }
 0x15c   :  { %1447 = vst.msk [vmem:[%s3237_s5 + $0xf8] sm:$0xf] %vm1384_vm1, %v2070_v1  ;;  %v751_v5 = vpack.c.bf16 %v719_v2, %v718_v60  ;;  %v2071_v6 = vpack.c.bf16 %v719_v2, %v719_v2 }
 0x15d   :  { %1445 = vst.msk [vmem:[%s3237_s5 + $0xf0] sm:$0xf] %vm1384_vm1, %v2068_v3  ;;  %v750_v7 = vpack.c.bf16 %v717_v4, %v716_v63  ;;  %v2069_v8 = vpack.c.bf16 %v717_v4, %v717_v4 }
 0x15e   :  { %1448 = vst.msk [vmem:[%s3237_s5 + $0xfc] sm:$0xf] %vm1384_vm1, %v2071_v6 }
 0x15f   :  { %1446 = vst.msk [vmem:[%s3237_s5 + $0xf4] sm:$0xf] %vm1384_vm1, %v2069_v8  ;;  %2336 = vmatprep.mubr.msk.bf16.mxu1 %vm270_vm0, %v750_v7 }
 0x160   :  { %2337 = vmatmul.mubr.msk.bf16.gmra.mrb[60].mxu1 %vm270_vm0, %v751_v5 }
 0x1bb   :  { %v2278_v9 = vpop.f32.mrb[0].mxu1 }
 0x1bc   :  { %v914_v10 = vadd.f32 %v2278_v9, %v2911_v36  ;;  %v905_v11 = vpop.f32.mrb[1].mxu1 }
 0x1bd   :  { %v906_v12 = vadd.f32 %v2911_v36, %v905_v11  ;;  %v2279_v13 = vpop.f32.mrb[2].mxu1 }
 0x1be   :  { %v2074_v14 = vpack.c.bf16 %v914_v10, %v914_v10  ;;  %v917_v15 = vadd.f32 %v2279_v13, %v2911_v36  ;;  %v908_v16 = vpop.f32.mrb[3].mxu1 }
 0x1bf   :  { %v2072_v17 = vpack.c.bf16 %v906_v12, %v906_v12  ;;  %v909_v18 = vadd.f32 %v2911_v36, %v908_v16 }
 0x1c0   :  { %1708 = vst.msk [vmem:[%s3239_s6 + $0x8] sm:$0xf] %vm1705_vm2, %v2074_v14  ;;  %v2075_v19 = vpack.c.bf16 %v917_v15, %v917_v15 }
 0x1c1   :  { %1706 = vst.msk [vmem:[%s3239_s6] sm:$0xf] %vm1705_vm2, %v2072_v17  ;;  %v2073_v20 = vpack.c.bf16 %v909_v18, %v909_v18 }
 0x1c2   :  { %1709 = vst.msk [vmem:[%s3239_s6 + $0xc] sm:$0xf] %vm1705_vm2, %v2075_v19 }
 0x1c3   :  { %1707 = vst.msk [vmem:[%s3239_s6 + $0x4] sm:$0xf] %vm1705_vm2, %v2073_v20  ;;  %v2282_v21 = vpop.f32.mrb[4].mxu1 }
 0x1c4   :  { %v930_v22 = vadd.f32 %v2282_v21, %v2911_v36  ;;  %v921_v23 = vpop.f32.mrb[5].mxu1 }
 0x1c5   :  { %v922_v24 = vadd.f32 %v2911_v36, %v921_v23  ;;  %v2283_v25 = vpop.f32.mrb[6].mxu1 }
 0x1c6   :  { %v2078_v26 = vpack.c.bf16 %v930_v22, %v930_v22  ;;  %v933_v27 = vadd.f32 %v2283_v25, %v2911_v36  ;;  %v924_v28 = vpop.f32.mrb[7].mxu1 }
 0x1c7   :  { %v2076_v29 = vpack.c.bf16 %v922_v24, %v922_v24  ;;  %v925_v30 = vadd.f32 %v2911_v36, %v924_v28 }
 0x1c8   :  { %1712 = vst.msk [vmem:[%s3239_s6 + $0x18] sm:$0xf] %vm1705_vm2, %v2078_v26  ;;  %v2079_v31 = vpack.c.bf16 %v933_v27, %v933_v27 }
 0x1c9   :  { %1710 = vst.msk [vmem:[%s3239_s6 + $0x10] sm:$0xf] %vm1705_vm2, %v2076_v29  ;;  %v2077_v32 = vpack.c.bf16 %v925_v30, %v925_v30 }
 0x1ca   :  { %1713 = vst.msk [vmem:[%s3239_s6 + $0x1c] sm:$0xf] %vm1705_vm2, %v2079_v31 }
 0x1cb   :  { %1711 = vst.msk [vmem:[%s3239_s6 + $0x14] sm:$0xf] %vm1705_vm2, %v2077_v32  ;;  %v2286_v33 = vpop.f32.mrb[8].mxu1 }
 0x1cc   :  { %v946_v34 = vadd.f32 %v2286_v33, %v2911_v36  ;;  %v937_v35 = vpop.f32.mrb[9].mxu1 }
 0x1cd   :  { %v938_v37 = vadd.f32 %v2911_v36, %v937_v35  ;;  %v2287_v38 = vpop.f32.mrb[10].mxu1 }
 0x1ce   :  { %v2082_v39 = vpack.c.bf16 %v946_v34, %v946_v34  ;;  %v949_v40 = vadd.f32 %v2287_v38, %v2911_v36  ;;  %v940_v41 = vpop.f32.mrb[11].mxu1 }
 0x1cf   :  { %v2080_v42 = vpack.c.bf16 %v938_v37, %v938_v37  ;;  %v941_v43 = vadd.f32 %v2911_v36, %v940_v41 }
 0x1d0   :  { %1716 = vst.msk [vmem:[%s3239_s6 + $0x28] sm:$0xf] %vm1705_vm2, %v2082_v39  ;;  %v2083_v44 = vpack.c.bf16 %v949_v40, %v949_v40 }
 0x1d1   :  { %1714 = vst.msk [vmem:[%s3239_s6 + $0x20] sm:$0xf] %vm1705_vm2, %v2080_v42  ;;  %v2081_v45 = vpack.c.bf16 %v941_v43, %v941_v43 }
 0x1d2   :  { %1717 = vst.msk [vmem:[%s3239_s6 + $0x2c] sm:$0xf] %vm1705_vm2, %v2083_v44 }
 0x1d3   :  { %1715 = vst.msk [vmem:[%s3239_s6 + $0x24] sm:$0xf] %vm1705_vm2, %v2081_v45  ;;  %v2290_v46 = vpop.f32.mrb[12].mxu1 }
 0x1d4   :  { %v962_v47 = vadd.f32 %v2290_v46, %v2911_v36  ;;  %v953_v48 = vpop.f32.mrb[13].mxu1 }
 0x1d5   :  { %v954_v49 = vadd.f32 %v2911_v36, %v953_v48  ;;  %v2291_v50 = vpop.f32.mrb[14].mxu1 }
 0x1d6   :  { %v2086_v51 = vpack.c.bf16 %v962_v47, %v962_v47  ;;  %v965_v52 = vadd.f32 %v2291_v50, %v2911_v36  ;;  %v956_v53 = vpop.f32.mrb[15].mxu1 }
 0x1d7   :  { %v2084_v54 = vpack.c.bf16 %v954_v49, %v954_v49  ;;  %v957_v55 = vadd.f32 %v2911_v36, %v956_v53 }
 0x1d8   :  { %1720 = vst.msk [vmem:[%s3239_s6 + $0x38] sm:$0xf] %vm1705_vm2, %v2086_v51  ;;  %v2087_v56 = vpack.c.bf16 %v965_v52, %v965_v52 }
 0x1d9   :  { %1718 = vst.msk [vmem:[%s3239_s6 + $0x30] sm:$0xf] %vm1705_vm2, %v2084_v54  ;;  %v2085_v57 = vpack.c.bf16 %v957_v55, %v957_v55 }
 0x1da   :  { %1721 = vst.msk [vmem:[%s3239_s6 + $0x3c] sm:$0xf] %vm1705_vm2, %v2087_v56 }
 0x1db   :  { %1719 = vst.msk [vmem:[%s3239_s6 + $0x34] sm:$0xf] %vm1705_vm2, %v2085_v57  ;;  %v2294_v58 = vpop.f32.mrb[16].mxu1 }
 0x1dc   :  { %v978_v59 = vadd.f32 %v2294_v58, %v2911_v36  ;;  %v969_v60 = vpop.f32.mrb[17].mxu1 }
 0x1dd   :  { %v970_v61 = vadd.f32 %v2911_v36, %v969_v60  ;;  %v2295_v62 = vpop.f32.mrb[18].mxu1 }
 0x1de   :  { %v2090_v63 = vpack.c.bf16 %v978_v59, %v978_v59  ;;  %v981_v0 = vadd.f32 %v2295_v62, %v2911_v36  ;;  %v972_v1 = vpop.f32.mrb[19].mxu1 }
 0x1df   :  { %v2088_v2 = vpack.c.bf16 %v970_v61, %v970_v61  ;;  %v973_v3 = vadd.f32 %v2911_v36, %v972_v1 }
 0x1e0   :  { %1724 = vst.msk [vmem:[%s3239_s6 + $0x48] sm:$0xf] %vm1705_vm2, %v2090_v63  ;;  %v2091_v4 = vpack.c.bf16 %v981_v0, %v981_v0 }
 0x1e1   :  { %1722 = vst.msk [vmem:[%s3239_s6 + $0x40] sm:$0xf] %vm1705_vm2, %v2088_v2  ;;  %v2089_v5 = vpack.c.bf16 %v973_v3, %v973_v3 }
 0x1e2   :  { %1725 = vst.msk [vmem:[%s3239_s6 + $0x4c] sm:$0xf] %vm1705_vm2, %v2091_v4 }
 0x1e3   :  { %1723 = vst.msk [vmem:[%s3239_s6 + $0x44] sm:$0xf] %vm1705_vm2, %v2089_v5  ;;  %v2298_v6 = vpop.f32.mrb[20].mxu1 }
 0x1e4   :  { %v994_v7 = vadd.f32 %v2298_v6, %v2911_v36  ;;  %v985_v8 = vpop.f32.mrb[21].mxu1 }
 0x1e5   :  { %v986_v9 = vadd.f32 %v2911_v36, %v985_v8  ;;  %v2299_v10 = vpop.f32.mrb[22].mxu1 }
 0x1e6   :  { %v2094_v11 = vpack.c.bf16 %v994_v7, %v994_v7  ;;  %v997_v12 = vadd.f32 %v2299_v10, %v2911_v36  ;;  %v988_v13 = vpop.f32.mrb[23].mxu1 }
 0x1e7   :  { %v2092_v14 = vpack.c.bf16 %v986_v9, %v986_v9  ;;  %v989_v15 = vadd.f32 %v2911_v36, %v988_v13 }
 0x1e8   :  { %1728 = vst.msk [vmem:[%s3239_s6 + $0x58] sm:$0xf] %vm1705_vm2, %v2094_v11  ;;  %v2095_v16 = vpack.c.bf16 %v997_v12, %v997_v12 }
 0x1e9   :  { %1726 = vst.msk [vmem:[%s3239_s6 + $0x50] sm:$0xf] %vm1705_vm2, %v2092_v14  ;;  %v2093_v17 = vpack.c.bf16 %v989_v15, %v989_v15 }
 0x1ea   :  { %1729 = vst.msk [vmem:[%s3239_s6 + $0x5c] sm:$0xf] %vm1705_vm2, %v2095_v16 }
 0x1eb   :  { %1727 = vst.msk [vmem:[%s3239_s6 + $0x54] sm:$0xf] %vm1705_vm2, %v2093_v17  ;;  %v2302_v18 = vpop.f32.mrb[24].mxu1 }
 0x1ec   :  { %v1010_v19 = vadd.f32 %v2302_v18, %v2911_v36  ;;  %v1001_v20 = vpop.f32.mrb[25].mxu1 }
 0x1ed   :  { %v1002_v21 = vadd.f32 %v2911_v36, %v1001_v20  ;;  %v2303_v22 = vpop.f32.mrb[26].mxu1 }
 0x1ee   :  { %v2098_v23 = vpack.c.bf16 %v1010_v19, %v1010_v19  ;;  %v1013_v24 = vadd.f32 %v2303_v22, %v2911_v36  ;;  %v1004_v25 = vpop.f32.mrb[27].mxu1 }
 0x1ef   :  { %v2096_v26 = vpack.c.bf16 %v1002_v21, %v1002_v21  ;;  %v1005_v27 = vadd.f32 %v2911_v36, %v1004_v25 }
 0x1f0   :  { %1732 = vst.msk [vmem:[%s3239_s6 + $0x68] sm:$0xf] %vm1705_vm2, %v2098_v23  ;;  %v2099_v28 = vpack.c.bf16 %v1013_v24, %v1013_v24 }
 0x1f1   :  { %1730 = vst.msk [vmem:[%s3239_s6 + $0x60] sm:$0xf] %vm1705_vm2, %v2096_v26  ;;  %v2097_v29 = vpack.c.bf16 %v1005_v27, %v1005_v27 }
 0x1f2   :  { %1733 = vst.msk [vmem:[%s3239_s6 + $0x6c] sm:$0xf] %vm1705_vm2, %v2099_v28 }
 0x1f3   :  { %1731 = vst.msk [vmem:[%s3239_s6 + $0x64] sm:$0xf] %vm1705_vm2, %v2097_v29  ;;  %v2306_v30 = vpop.f32.mrb[28].mxu1 }
 0x1f4   :  { %v1026_v31 = vadd.f32 %v2306_v30, %v2911_v36  ;;  %v1017_v32 = vpop.f32.mrb[29].mxu1 }
 0x1f5   :  { %v1018_v33 = vadd.f32 %v2911_v36, %v1017_v32  ;;  %v2307_v34 = vpop.f32.mrb[30].mxu1 }
 0x1f6   :  { %v2102_v35 = vpack.c.bf16 %v1026_v31, %v1026_v31  ;;  %v1029_v37 = vadd.f32 %v2307_v34, %v2911_v36  ;;  %v1020_v38 = vpop.f32.mrb[31].mxu1 }
 0x1f7   :  { %v2100_v39 = vpack.c.bf16 %v1018_v33, %v1018_v33  ;;  %v1021_v40 = vadd.f32 %v2911_v36, %v1020_v38 }
 0x1f8   :  { %1736 = vst.msk [vmem:[%s3239_s6 + $0x78] sm:$0xf] %vm1705_vm2, %v2102_v35  ;;  %v2103_v41 = vpack.c.bf16 %v1029_v37, %v1029_v37 }
 0x1f9   :  { %1734 = vst.msk [vmem:[%s3239_s6 + $0x70] sm:$0xf] %vm1705_vm2, %v2100_v39  ;;  %v2101_v42 = vpack.c.bf16 %v1021_v40, %v1021_v40 }
 0x1fa   :  { %1737 = vst.msk [vmem:[%s3239_s6 + $0x7c] sm:$0xf] %vm1705_vm2, %v2103_v41 }
 0x1fb   :  { %1735 = vst.msk [vmem:[%s3239_s6 + $0x74] sm:$0xf] %vm1705_vm2, %v2101_v42  ;;  %v2310_v43 = vpop.f32.mrb[32].mxu1 }
 0x1fc   :  { %v1042_v44 = vadd.f32 %v2310_v43, %v2911_v36  ;;  %v1033_v45 = vpop.f32.mrb[33].mxu1 }
 0x1fd   :  { %v1034_v46 = vadd.f32 %v2911_v36, %v1033_v45  ;;  %v2311_v47 = vpop.f32.mrb[34].mxu1 }
 0x1fe   :  { %v2106_v48 = vpack.c.bf16 %v1042_v44, %v1042_v44  ;;  %v1045_v49 = vadd.f32 %v2311_v47, %v2911_v36  ;;  %v1036_v50 = vpop.f32.mrb[35].mxu1 }
 0x1ff   :  { %v2104_v51 = vpack.c.bf16 %v1034_v46, %v1034_v46  ;;  %v1037_v52 = vadd.f32 %v2911_v36, %v1036_v50 }
 0x200   :  { %1740 = vst.msk [vmem:[%s3239_s6 + $0x88] sm:$0xf] %vm1705_vm2, %v2106_v48  ;;  %v2107_v53 = vpack.c.bf16 %v1045_v49, %v1045_v49 }
 0x201   :  { %1738 = vst.msk [vmem:[%s3239_s6 + $0x80] sm:$0xf] %vm1705_vm2, %v2104_v51  ;;  %v2105_v54 = vpack.c.bf16 %v1037_v52, %v1037_v52 }
 0x202   :  { %1741 = vst.msk [vmem:[%s3239_s6 + $0x8c] sm:$0xf] %vm1705_vm2, %v2107_v53 }
 0x203   :  { %1739 = vst.msk [vmem:[%s3239_s6 + $0x84] sm:$0xf] %vm1705_vm2, %v2105_v54  ;;  %v2314_v55 = vpop.f32.mrb[36].mxu1 }
 0x204   :  { %v1058_v56 = vadd.f32 %v2314_v55, %v2911_v36  ;;  %v1049_v57 = vpop.f32.mrb[37].mxu1 }
 0x205   :  { %v1050_v58 = vadd.f32 %v2911_v36, %v1049_v57  ;;  %v2315_v59 = vpop.f32.mrb[38].mxu1 }
 0x206   :  { %v2110_v60 = vpack.c.bf16 %v1058_v56, %v1058_v56  ;;  %v1061_v61 = vadd.f32 %v2315_v59, %v2911_v36  ;;  %v1052_v62 = vpop.f32.mrb[39].mxu1 }
 0x207   :  { %v2108_v63 = vpack.c.bf16 %v1050_v58, %v1050_v58  ;;  %v1053_v0 = vadd.f32 %v2911_v36, %v1052_v62 }
 0x208   :  { %1744 = vst.msk [vmem:[%s3239_s6 + $0x98] sm:$0xf] %vm1705_vm2, %v2110_v60  ;;  %v2111_v1 = vpack.c.bf16 %v1061_v61, %v1061_v61 }
 0x209   :  { %1742 = vst.msk [vmem:[%s3239_s6 + $0x90] sm:$0xf] %vm1705_vm2, %v2108_v63  ;;  %v2109_v2 = vpack.c.bf16 %v1053_v0, %v1053_v0 }
 0x20a   :  { %1745 = vst.msk [vmem:[%s3239_s6 + $0x9c] sm:$0xf] %vm1705_vm2, %v2111_v1 }
 0x20b   :  { %1743 = vst.msk [vmem:[%s3239_s6 + $0x94] sm:$0xf] %vm1705_vm2, %v2109_v2  ;;  %v2318_v3 = vpop.f32.mrb[40].mxu1 }
 0x20c   :  { %v1074_v4 = vadd.f32 %v2318_v3, %v2911_v36  ;;  %v1065_v5 = vpop.f32.mrb[41].mxu1 }
 0x20d   :  { %v1066_v6 = vadd.f32 %v2911_v36, %v1065_v5  ;;  %v2319_v7 = vpop.f32.mrb[42].mxu1 }
 0x20e   :  { %v2114_v8 = vpack.c.bf16 %v1074_v4, %v1074_v4  ;;  %v1077_v9 = vadd.f32 %v2319_v7, %v2911_v36  ;;  %v1068_v10 = vpop.f32.mrb[43].mxu1 }
 0x20f   :  { %v2112_v11 = vpack.c.bf16 %v1066_v6, %v1066_v6  ;;  %v1069_v12 = vadd.f32 %v2911_v36, %v1068_v10 }
 0x210   :  { %1748 = vst.msk [vmem:[%s3239_s6 + $0xa8] sm:$0xf] %vm1705_vm2, %v2114_v8  ;;  %v2115_v13 = vpack.c.bf16 %v1077_v9, %v1077_v9 }
 0x211   :  { %1746 = vst.msk [vmem:[%s3239_s6 + $0xa0] sm:$0xf] %vm1705_vm2, %v2112_v11  ;;  %v2113_v14 = vpack.c.bf16 %v1069_v12, %v1069_v12 }
 0x212   :  { %1749 = vst.msk [vmem:[%s3239_s6 + $0xac] sm:$0xf] %vm1705_vm2, %v2115_v13 }
 0x213   :  { %1747 = vst.msk [vmem:[%s3239_s6 + $0xa4] sm:$0xf] %vm1705_vm2, %v2113_v14  ;;  %v2322_v15 = vpop.f32.mrb[44].mxu1 }
 0x214   :  { %v1090_v16 = vadd.f32 %v2322_v15, %v2911_v36  ;;  %v1081_v17 = vpop.f32.mrb[45].mxu1 }
 0x215   :  { %v1082_v18 = vadd.f32 %v2911_v36, %v1081_v17  ;;  %v2323_v19 = vpop.f32.mrb[46].mxu1 }
 0x216   :  { %v2118_v20 = vpack.c.bf16 %v1090_v16, %v1090_v16  ;;  %v1093_v21 = vadd.f32 %v2323_v19, %v2911_v36  ;;  %v1084_v22 = vpop.f32.mrb[47].mxu1 }
 0x217   :  { %v2116_v23 = vpack.c.bf16 %v1082_v18, %v1082_v18  ;;  %v1085_v24 = vadd.f32 %v2911_v36, %v1084_v22 }
 0x218   :  { %1752 = vst.msk [vmem:[%s3239_s6 + $0xb8] sm:$0xf] %vm1705_vm2, %v2118_v20  ;;  %v2119_v25 = vpack.c.bf16 %v1093_v21, %v1093_v21 }
 0x219   :  { %1750 = vst.msk [vmem:[%s3239_s6 + $0xb0] sm:$0xf] %vm1705_vm2, %v2116_v23  ;;  %v2117_v26 = vpack.c.bf16 %v1085_v24, %v1085_v24 }
 0x21a   :  { %1753 = vst.msk [vmem:[%s3239_s6 + $0xbc] sm:$0xf] %vm1705_vm2, %v2119_v25 }
 0x21b   :  { %1751 = vst.msk [vmem:[%s3239_s6 + $0xb4] sm:$0xf] %vm1705_vm2, %v2117_v26  ;;  %v2326_v27 = vpop.f32.mrb[48].mxu1 }
 0x21c   :  { %v1106_v28 = vadd.f32 %v2326_v27, %v2911_v36  ;;  %v1097_v29 = vpop.f32.mrb[49].mxu1 }
 0x21d   :  { %v1098_v30 = vadd.f32 %v2911_v36, %v1097_v29  ;;  %v2327_v31 = vpop.f32.mrb[50].mxu1 }
 0x21e   :  { %v2122_v32 = vpack.c.bf16 %v1106_v28, %v1106_v28  ;;  %v1109_v33 = vadd.f32 %v2327_v31, %v2911_v36  ;;  %v1100_v34 = vpop.f32.mrb[51].mxu1 }
 0x21f   :  { %v2120_v35 = vpack.c.bf16 %v1098_v30, %v1098_v30  ;;  %v1101_v37 = vadd.f32 %v2911_v36, %v1100_v34 }
 0x220   :  { %1756 = vst.msk [vmem:[%s3239_s6 + $0xc8] sm:$0xf] %vm1705_vm2, %v2122_v32  ;;  %v2123_v38 = vpack.c.bf16 %v1109_v33, %v1109_v33 }
 0x221   :  { %1754 = vst.msk [vmem:[%s3239_s6 + $0xc0] sm:$0xf] %vm1705_vm2, %v2120_v35  ;;  %v2121_v39 = vpack.c.bf16 %v1101_v37, %v1101_v37 }
 0x222   :  { %1757 = vst.msk [vmem:[%s3239_s6 + $0xcc] sm:$0xf] %vm1705_vm2, %v2123_v38 }
 0x223   :  { %1755 = vst.msk [vmem:[%s3239_s6 + $0xc4] sm:$0xf] %vm1705_vm2, %v2121_v39  ;;  %v2330_v40 = vpop.f32.mrb[52].mxu1 }
 0x224   :  { %v1122_v41 = vadd.f32 %v2330_v40, %v2911_v36  ;;  %v1113_v42 = vpop.f32.mrb[53].mxu1 }
 0x225   :  { %v1114_v43 = vadd.f32 %v2911_v36, %v1113_v42  ;;  %v2331_v44 = vpop.f32.mrb[54].mxu1 }
 0x226   :  { %v2126_v45 = vpack.c.bf16 %v1122_v41, %v1122_v41  ;;  %v1125_v46 = vadd.f32 %v2331_v44, %v2911_v36  ;;  %v1116_v47 = vpop.f32.mrb[55].mxu1 }
 0x227   :  { %v2124_v48 = vpack.c.bf16 %v1114_v43, %v1114_v43  ;;  %v1117_v49 = vadd.f32 %v2911_v36, %v1116_v47 }
 0x228   :  { %1760 = vst.msk [vmem:[%s3239_s6 + $0xd8] sm:$0xf] %vm1705_vm2, %v2126_v45  ;;  %v2127_v50 = vpack.c.bf16 %v1125_v46, %v1125_v46 }
 0x229   :  { %1758 = vst.msk [vmem:[%s3239_s6 + $0xd0] sm:$0xf] %vm1705_vm2, %v2124_v48  ;;  %v2125_v51 = vpack.c.bf16 %v1117_v49, %v1117_v49 }
 0x22a   :  { %1761 = vst.msk [vmem:[%s3239_s6 + $0xdc] sm:$0xf] %vm1705_vm2, %v2127_v50 }
 0x22b   :  { %1759 = vst.msk [vmem:[%s3239_s6 + $0xd4] sm:$0xf] %vm1705_vm2, %v2125_v51  ;;  %v2334_v52 = vpop.f32.mrb[56].mxu1 }
 0x22c   :  { %v1138_v53 = vadd.f32 %v2334_v52, %v2911_v36  ;;  %v1129_v54 = vpop.f32.mrb[57].mxu1 }
 0x22d   :  { %v1130_v55 = vadd.f32 %v2911_v36, %v1129_v54  ;;  %v2335_v56 = vpop.f32.mrb[58].mxu1 }
 0x22e   :  { %v2130_v57 = vpack.c.bf16 %v1138_v53, %v1138_v53  ;;  %v1141_v58 = vadd.f32 %v2335_v56, %v2911_v36  ;;  %v1132_v59 = vpop.f32.mrb[59].mxu1 }
 0x22f   :  { %v2128_v60 = vpack.c.bf16 %v1130_v55, %v1130_v55  ;;  %v1133_v61 = vadd.f32 %v2911_v36, %v1132_v59 }
 0x230   :  { %1764 = vst.msk [vmem:[%s3239_s6 + $0xe8] sm:$0xf] %vm1705_vm2, %v2130_v57  ;;  %v2131_v62 = vpack.c.bf16 %v1141_v58, %v1141_v58 }
 0x231   :  { %1762 = vst.msk [vmem:[%s3239_s6 + $0xe0] sm:$0xf] %vm1705_vm2, %v2128_v60  ;;  %v2129_v63 = vpack.c.bf16 %v1133_v61, %v1133_v61 }
 0x232   :  { %1765 = vst.msk [vmem:[%s3239_s6 + $0xec] sm:$0xf] %vm1705_vm2, %v2131_v62 }
 0x233   :  { %1763 = vst.msk [vmem:[%s3239_s6 + $0xe4] sm:$0xf] %vm1705_vm2, %v2129_v63  ;;  %v2338_v0 = vpop.f32.mrb[60].mxu1 }
 0x234   :  { %v1154_v1 = vadd.f32 %v2338_v0, %v2911_v36  ;;  %v1145_v2 = vpop.f32.mrb[61].mxu1 }
 0x235   :  { %v1146_v3 = vadd.f32 %v2911_v36, %v1145_v2  ;;  %v2339_v4 = vpop.f32.mrb[62].mxu1 }
 0x236   :  { %v2134_v5 = vpack.c.bf16 %v1154_v1, %v1154_v1  ;;  %v1157_v6 = vadd.f32 %v2339_v4, %v2911_v36  ;;  %v1148_v7 = vpop.f32.mrb[63].mxu1 }
 0x237   :  { %v2132_v8 = vpack.c.bf16 %v1146_v3, %v1146_v3  ;;  %v1149_v9 = vadd.f32 %v2911_v36, %v1148_v7 }
 0x238   :  { %1768 = vst.msk [vmem:[%s3239_s6 + $0xf8] sm:$0xf] %vm1705_vm2, %v2134_v5  ;;  %v2135_v10 = vpack.c.bf16 %v1157_v6, %v1157_v6 }
 0x239   :  { %1766 = vst.msk [vmem:[%s3239_s6 + $0xf0] sm:$0xf] %vm1705_vm2, %v2132_v8  ;;  %v2133_v11 = vpack.c.bf16 %v1149_v9, %v1149_v9 }
 0x23a   :  { %1769 = vst.msk [vmem:[%s3239_s6 + $0xfc] sm:$0xf] %vm1705_vm2, %v2135_v10 }
 0x23b   :  { %1767 = vst.msk [vmem:[%s3239_s6 + $0xf4] sm:$0xf] %vm1705_vm2, %v2133_v11 }

// kernel: generalized_vl_rcnn_forward.6
= control target key start
LH: loop header
LB: loop body
LE: loop exit
PB: predicated region body
PF: predicated region fallthrough
CT: control target
= control target key end

     0   :  { %vm324_vm0 = vcmask 261120   ;;  %vm606_vm1 = vcmask 523264   ;;  %vm792_vm2 = vcmask 519168   ;;  %s1383_s1 = inlined_call_operand.vmem [shape: bf16[288,64], index: 1, kind: input, shape index: {}]   ;;  %s1384_s0 = inlined_call_operand.vmem [shape: bf16[128,288], index: 0, kind: input, shape index: {}]   ;;  %s1385_s3 = inlined_call_operand.vmem [shape: bf16[64,64], index: 3, kind: input, shape index: {}]   ;;  %s1386_s2 = inlined_call_operand.vmem [shape: f32[1,64], index: 2, kind: input, shape index: {}]   ;;  %s1387_s4 = inlined_call_operand.vmem [shape: f32[1,64], index: 4, kind: input, shape index: {}]   ;;  %s1388_s5 = inlined_call_operand.vmem [shape: bf16[128,64], index: 5, kind: output, shape index: {}]  }
   0x1   :  { %v1039_v0 = vld [vmem:[%s1383_s1 + $0x40] sm:$0xff]   ;;  %v1041_v2 = vld [vmem:[%s1383_s1 + $0x48] sm:$0xff]   ;;  %v1043_v4 = vld [vmem:[%s1383_s1 + $0x50] sm:$0xff]  }
   0x2   :  { %v1040_v1 = vld [vmem:[%s1383_s1] sm:$0xff]   ;;  %909 = vmatprep.subr.bf16.mxu0 %v1039_v0  ;;  %v1042_v3 = vld [vmem:[%s1383_s1 + $0x8] sm:$0xff]   ;;  %v1044_v5 = vld [vmem:[%s1383_s1 + $0x10] sm:$0xff]  }
   0x3   :  { %910 = vmatpush3.bf16.msra.mxu0 %v1040_v1  ;;  %v1045_v6 = vld [vmem:[%s1383_s1 + $0x58] sm:$0xff]   ;;  %v1047_v8 = vld [vmem:[%s1383_s1 + $0x60] sm:$0xff]   ;;  %v1049_v11 = vld [vmem:[%s1383_s1 + $0x68] sm:$0xff]  }
   0x4   :  { %911 = vmatprep.subr.bf16.mxu0 %v1041_v2  ;;  %v1046_v7 = vld [vmem:[%s1383_s1 + $0x18] sm:$0xff]   ;;  %v1048_v9 = vld [vmem:[%s1383_s1 + $0x20] sm:$0xff]   ;;  %v1050_v12 = vld [vmem:[%s1383_s1 + $0x28] sm:$0xff]  }
   0x5   :  { %v1054_v10 = vld [vmem:[%s1383_s1 + $0x80] sm:$0xff]   ;;  %v1051_v13 = vld [vmem:[%s1383_s1 + $0x70] sm:$0xff]   ;;  %v1059_v15 = vld [vmem:[%s1383_s1 + $0x88] sm:$0xff]  }
   0x6   :  { %995 = vmatprep.subr.bf16.mxu1 %v1054_v10  ;;  %v1058_v14 = vld [vmem:[%s1384_s0 + $0x4] ss:$12 sps:$4 sm:$0xff]   ;;  %v1060_v16 = vld [vmem:[%s1384_s0 + $0x8] ss:$12 sps:$4 sm:$0xff]   ;;  %v1061_v17 = vld [vmem:[%s1384_s0 + $0x20] ss:$12 sps:$4 sm:$0xff]  }
   0x7   :  { %912 = vmatpush3.bf16.msra.mxu0 %v1042_v3  ;;  %996 = vmatpush3.bf16.msra.mxu1 %v1054_v10  ;;  %v1052_v18 = vld [vmem:[%s1383_s1 + $0x30] sm:$0xff]   ;;  %v1053_v19 = vld [vmem:[%s1383_s1 + $0x78] sm:$0xff]   ;;  %v1056_v22 = vld [vmem:[%s1384_s0] ss:$12 sps:$4 sm:$0xff]  }
   0x8   :  { %913 = vmatprep.subr.bf16.mxu0 %v1043_v4  ;;  %381 = vmatprep.mubr.bf16.mxu0 %v1058_v14  ;;  %v1068_v20 = vld [vmem:[%s1384_s0 + $0x38] ss:$12 sps:$4 sm:$0xff]   ;;  %v1069_v23 = vld [vmem:[%s1384_s0 + $0x50] ss:$12 sps:$4 sm:$0xff]   ;;  %v1076_v24 = vld [vmem:[%s1384_s0 + $0x68] ss:$12 sps:$4 sm:$0xff]  }
   0x9   :  { %997 = vmatprep.subr.bf16.mxu1 %v1059_v15  ;;  %999 = vmatprep.mubr.msk.bf16.mxu1 %vm324_vm0, %v1060_v16  ;;  %v1055_v21 = vld [vmem:[%s1383_s1 + $0x38] sm:$0xff]   ;;  %v1077_v26 = vld [vmem:[%s1384_s0 + $0x80] ss:$12 sps:$4 sm:$0xff]   ;;  %v1072_v33 = vld [vmem:[%s1384_s0 + $0x48] ss:$12 sps:$4 sm:$0xff]  }
   0xa   :  { %v1062_v25 = vld [vmem:[%s1384_s0 + $0x1c] ss:$12 sps:$4 sm:$0xff]   ;;  %v1064_v27 = vld [vmem:[%s1384_s0 + $0x18] ss:$12 sps:$4 sm:$0xff]   ;;  %v1065_v29 = vld [vmem:[%s1384_s0 + $0x34] ss:$12 sps:$4 sm:$0xff]  }
   0xb   :  { %914 = vmatpush3.bf16.msra.mxu0 %v1044_v5  ;;  %998 = vmatpush3.bf16.msra.mxu1 %v1059_v15  ;;  %v1084_v28 = vld [vmem:[%s1384_s0 + $0x98] ss:$12 sps:$4 sm:$0xff]   ;;  %v1085_v30 = vld [vmem:[%s1384_s0 + $0xb0] ss:$12 sps:$4 sm:$0xff]   ;;  %v1075_v35 = vld [vmem:[%s1384_s0 + $0x60] ss:$12 sps:$4 sm:$0xff]  }
   0xc   :  { %915 = vmatprep.subr.bf16.mxu0 %v1045_v6  ;;  %v1067_v31 = vld [vmem:[%s1384_s0 + $0x30] ss:$12 sps:$4 sm:$0xff]   ;;  %v1070_v32 = vld [vmem:[%s1384_s0 + $0x4c] ss:$12 sps:$4 sm:$0xff]   ;;  %v1081_v38 = vld [vmem:[%s1384_s0 + $0x94] ss:$12 sps:$4 sm:$0xff]  }
   0xd   :  { %v1073_v34 = vld [vmem:[%s1384_s0 + $0x64] ss:$12 sps:$4 sm:$0xff]   ;;  %v1078_v36 = vld [vmem:[%s1384_s0 + $0x7c] ss:$12 sps:$4 sm:$0xff]   ;;  %v1086_v40 = vld [vmem:[%s1384_s0 + $0xac] ss:$12 sps:$4 sm:$0xff]  }
   0xe   :  { %1000 = vmatmul.mubr.msk.bf16.vlgmr.msra.gmra.mrb[0].mxu1 %vm324_vm0, %v1061_v17  ;;  %v1080_v37 = vld [vmem:[%s1384_s0 + $0x78] ss:$12 sps:$4 sm:$0xff]   ;;  %v1083_v39 = vld [vmem:[%s1384_s0 + $0x90] ss:$12 sps:$4 sm:$0xff]   ;;  %v1088_v41 = vld [vmem:[%s1384_s0 + $0xa8] ss:$12 sps:$4 sm:$0xff]  }
   0xf   :  { %916 = vmatpush3.bf16.msra.mxu0 %v1046_v7  ;;  %1003 = vmatprep.mubr.msk.bf16.mxu1 %vm324_vm0, %v1068_v20  ;;  %v1089_v42 = vld [vmem:[%s1385_s3] sm:$0xff]   ;;  %v1090_v43 = vld [vmem:[%s1385_s3 + $0x8] sm:$0xff]   ;;  %v1091_v44 = vld [vmem:[%s1385_s3 + $0x10] sm:$0xff]  }
  0x10   :  { %917 = vmatprep.subr.bf16.mxu0 %v1047_v8  ;;  %1015 = vmatprep.subr.bf16.mxu1 %v1089_v42  ;;  %v1092_v45 = vld [vmem:[%s1385_s3 + $0x18] sm:$0xff]   ;;  %v1272_v54 = vld [vmem:[%s1386_s2] ss:$0 sm:$0xff] }
  0x11   :  { %1016 = vmatpush3.bf16.msra.mxu1 %v1089_v42 }
  0x12   :  { %1017 = vmatprep.subr.bf16.mxu1 %v1090_v43 }
  0x13   :  { %918 = vmatpush3.bf16.msra.mxu0 %v1048_v9 }
  0x14   :  { %919 = vmatprep.subr.bf16.mxu0 %v1049_v11 }
  0x15   :  { %1018 = vmatpush3.bf16.msra.mxu1 %v1090_v43 }
  0x16   :  { %1004 = vmatmul.mubr.msk.bf16.gmra.mrb[4].mxu1 %vm324_vm0, %v1069_v23  ;;  %1019 = vmatprep.subr.bf16.mxu1 %v1091_v44 }
  0x17   :  { %920 = vmatpush3.bf16.msra.mxu0 %v1050_v12  ;;  %1007 = vmatprep.mubr.msk.bf16.mxu1 %vm324_vm0, %v1076_v24 }
  0x18   :  { %921 = vmatprep.subr.bf16.mxu0 %v1051_v13 }
  0x19   :  { %1020 = vmatpush3.bf16.msra.mxu1 %v1091_v44 }
  0x1a   :  { %1021 = vmatprep.subr.bf16.mxu1 %v1092_v45 }
  0x1b   :  { %922 = vmatpush3.bf16.msra.mxu0 %v1052_v18 }
  0x1c   :  { %923 = vmatprep.subr.bf16.mxu0 %v1053_v19 }
  0x1d   :  { %1022 = vmatpush3.bf16.msra.mxu1 %v1092_v45 }
  0x1e   :  { %1008 = vmatmul.mubr.msk.bf16.gmra.mrb[8].mxu1 %vm324_vm0, %v1077_v26 }
  0x1f   :  { %924 = vmatpush3.bf16.msra.mxu0 %v1055_v21  ;;  %1011 = vmatprep.mubr.msk.bf16.mxu1 %vm324_vm0, %v1084_v28 }
  0x22   :  { %382 = vmatmul.mubr.bf16.vlgmr.msra.gmra.mrb[0].mxu0 %v1056_v22 }
  0x23   :  { %389 = vmatprep.mubr.bf16.mxu0 %v1062_v25 }
  0x26   :  { %1012 = vmatmul.mubr.msk.bf16.gmra.mrb[12].mxu1 %vm324_vm0, %v1085_v30 }
  0x2a   :  { %390 = vmatmul.mubr.bf16.gmra.mrb[4].mxu0 %v1064_v27 }
  0x2b   :  { %397 = vmatprep.mubr.bf16.mxu0 %v1065_v29 }
  0x32   :  { %398 = vmatmul.mubr.bf16.gmra.mrb[8].mxu0 %v1067_v31 }
  0x33   :  { %405 = vmatprep.mubr.bf16.mxu0 %v1070_v32 }
  0x3a   :  { %406 = vmatmul.mubr.bf16.gmra.mrb[12].mxu0 %v1072_v33 }
  0x3b   :  { %413 = vmatprep.mubr.bf16.mxu0 %v1073_v34 }
  0x42   :  { %414 = vmatmul.mubr.bf16.gmra.mrb[16].mxu0 %v1075_v35 }
  0x43   :  { %421 = vmatprep.mubr.bf16.mxu0 %v1078_v36 }
  0x4a   :  { %422 = vmatmul.mubr.bf16.gmra.mrb[20].mxu0 %v1080_v37 }
  0x4b   :  { %429 = vmatprep.mubr.bf16.mxu0 %v1081_v38 }
  0x52   :  { %430 = vmatmul.mubr.bf16.gmra.mrb[24].mxu0 %v1083_v39 }
  0x53   :  { %437 = vmatprep.mubr.bf16.mxu0 %v1086_v40 }
  0x5a   :  { %438 = vmatmul.mubr.bf16.gmra.mrb[28].mxu0 %v1088_v41 }
  0xe1   :  { %v1001_v46 = vpop.f32.mrb[0].mxu1 }
  0xe2   :  { %v480_v47 = vpop.f32.mrb[1].mxu1 }
  0xe3   :  { %v1002_v48 = vpop.f32.mrb[2].mxu1 }
  0xe4   :  { %v483_v49 = vpop.f32.mrb[3].mxu1 }
  0xe9   :  { %v1005_v50 = vpop.f32.mrb[4].mxu1 }
  0xea   :  { %v496_v52 = vpop.f32.mrb[5].mxu1 }
  0xeb   :  { %v1006_v55 = vpop.f32.mrb[6].mxu1 }
  0xec   :  { %v499_v58 = vpop.f32.mrb[7].mxu1 }
  0xf1   :  { %v1276_v0 = vpop.f32.mrb[8].mxu1 }
  0xf2   :  { %v512_v3 = vpop.f32.mrb[9].mxu1 }
  0xf3   :  { %v1278_v5 = vpop.f32.mrb[10].mxu1 }
  0xf4   :  { %v515_v10 = vpop.f32.mrb[11].mxu1 }
  0xf5   :  { %v925_v51 = vpop.f32.mrb[0].mxu0 }
  0xf6   :  { %v926_v53 = vpop.f32.mrb[1].mxu0 }
  0xf7   :  { %v927_v56 = vadd.f32 %v926_v53, %v925_v51  ;;  %v928_v57 = vpop.f32.mrb[2].mxu0 }
  0xf8   :  { %v929_v59 = vpop.f32.mrb[3].mxu0 }
  0xf9   :  { %v930_v60 = vadd.f32 %v929_v59, %v928_v57  ;;  %v384_v61 = vadd.f32 %v927_v56, %v1272_v54  ;;  %v1283_v17 = vpop.f32.mrb[12].mxu1 }
  0xfa   :  { %v1285_v20 = vpop.f32.mrb[13].mxu1 }
  0xfb   :  { %v481_v62 = vadd.f32 %v480_v47, %v384_v61  ;;  %v387_v63 = vadd.f32 %v930_v60, %v1272_v54  ;;  %v1287_v22 = vpop.f32.mrb[14].mxu1 }
  0xfc   :  { %v1289_v27 = vpop.f32.mrb[15].mxu1 }
  0xfd   :  { %v484_v1 = vadd.f32 %v483_v49, %v387_v63  ;;  %v931_v2 = vpop.f32.mrb[4].mxu0  ;;  %v543_v6 = vmax.f32 %v481_v62, 0.0 }
  0xfe   :  { %v932_v4 = vpop.f32.mrb[5].mxu0 }
  0xff   :  { %v544_v7 = vmax.f32 %v484_v1, 0.0  ;;  %v933_v8 = vadd.f32 %v932_v4, %v931_v2  ;;  %v934_v9 = vpop.f32.mrb[6].mxu0 }
 0x100   :  { %v935_v11 = vpop.f32.mrb[7].mxu0 }
 0x101   :  { %v559_v12 = vpack.c.bf16 %v544_v7, %v543_v6  ;;  %v392_v13 = vadd.f32 %v933_v8, %v1272_v54  ;;  %v936_v14 = vadd.f32 %v935_v11, %v934_v9 }
 0x103   :  { %v489_v15 = vadd.f32 %v1001_v46, %v392_v13  ;;  %v395_v16 = vadd.f32 %v936_v14, %v1272_v54  ;;  %1023 = vmatprep.mubr.msk.bf16.mxu1 %vm606_vm1, %v559_v12 }
 0x105   :  { %v492_v18 = vadd.f32 %v1002_v48, %v395_v16  ;;  %v937_v19 = vpop.f32.mrb[8].mxu0  ;;  %v545_v23 = vmax.f32 %v489_v15, 0.0 }
 0x106   :  { %v938_v21 = vpop.f32.mrb[9].mxu0 }
 0x107   :  { %v546_v24 = vmax.f32 %v492_v18, 0.0  ;;  %v939_v25 = vadd.f32 %v938_v21, %v937_v19  ;;  %v940_v26 = vpop.f32.mrb[10].mxu0 }
 0x108   :  { %v941_v28 = vpop.f32.mrb[11].mxu0 }
 0x109   :  { %v560_v29 = vpack.c.bf16 %v546_v24, %v545_v23  ;;  %v942_v30 = vadd.f32 %v941_v28, %v940_v26  ;;  %v400_v31 = vadd.f32 %v939_v25, %v1272_v54 }
 0x10b   :  { %v497_v32 = vadd.f32 %v496_v52, %v400_v31  ;;  %1024 = vmatmul.mubr.msk.bf16.vlgmr.msra.gmra.mrb[16].mxu1 %vm606_vm1, %v560_v29  ;;  %v403_v33 = vadd.f32 %v942_v30, %v1272_v54 }
 0x10d   :  { %v500_v34 = vadd.f32 %v499_v58, %v403_v33  ;;  %v943_v35 = vpop.f32.mrb[12].mxu0  ;;  %v547_v37 = vmax.f32 %v497_v32, 0.0 }
 0x10e   :  { %v944_v36 = vpop.f32.mrb[13].mxu0 }
 0x10f   :  { %v548_v38 = vmax.f32 %v500_v34, 0.0  ;;  %v945_v39 = vadd.f32 %v944_v36, %v943_v35  ;;  %v946_v40 = vpop.f32.mrb[14].mxu0 }
 0x110   :  { %v947_v41 = vpop.f32.mrb[15].mxu0 }
 0x111   :  { %v561_v42 = vpack.c.bf16 %v548_v38, %v547_v37  ;;  %v408_v43 = vadd.f32 %v945_v39, %v1272_v54  ;;  %v948_v44 = vadd.f32 %v947_v41, %v946_v40 }
 0x113   :  { %v505_v45 = vadd.f32 %v1005_v50, %v408_v43  ;;  %v411_v46 = vadd.f32 %v948_v44, %v1272_v54  ;;  %1027 = vmatprep.mubr.msk.bf16.mxu1 %vm606_vm1, %v561_v42  ;;  %v864_v42 = vld [vmem:[%s1387_s4] ss:$0 sm:$0xff] }
 0x115   :  { %v508_v47 = vadd.f32 %v1006_v55, %v411_v46  ;;  %v949_v48 = vpop.f32.mrb[16].mxu0  ;;  %v549_v51 = vmax.f32 %v505_v45, 0.0 }
 0x116   :  { %v950_v49 = vpop.f32.mrb[17].mxu0 }
 0x117   :  { %v550_v52 = vmax.f32 %v508_v47, 0.0  ;;  %v951_v53 = vadd.f32 %v950_v49, %v949_v48  ;;  %v952_v56 = vpop.f32.mrb[18].mxu0 }
 0x118   :  { %v953_v57 = vpop.f32.mrb[19].mxu0 }
 0x119   :  { %v562_v58 = vpack.c.bf16 %v550_v52, %v549_v51  ;;  %v954_v59 = vadd.f32 %v953_v57, %v952_v56  ;;  %v416_v60 = vadd.f32 %v951_v53, %v1272_v54 }
 0x11b   :  { %v513_v61 = vadd.f32 %v512_v3, %v416_v60  ;;  %1028 = vmatmul.mubr.msk.bf16.gmra.mrb[20].mxu1 %vm606_vm1, %v562_v58  ;;  %v419_v50 = vadd.f32 %v954_v59, %v1272_v54 }
 0x11d   :  { %v516_v62 = vadd.f32 %v515_v10, %v419_v50  ;;  %v955_v63 = vpop.f32.mrb[20].mxu0  ;;  %v551_v55 = vmax.f32 %v513_v61, 0.0 }
 0x11e   :  { %v956_v1 = vpop.f32.mrb[21].mxu0 }
 0x11f   :  { %v552_v2 = vmax.f32 %v516_v62, 0.0  ;;  %v957_v4 = vadd.f32 %v956_v1, %v955_v63  ;;  %v958_v6 = vpop.f32.mrb[22].mxu0 }
 0x120   :  { %v959_v7 = vpop.f32.mrb[23].mxu0 }
 0x121   :  { %v563_v8 = vpack.c.bf16 %v552_v2, %v551_v55  ;;  %v424_v9 = vadd.f32 %v957_v4, %v1272_v54  ;;  %v960_v11 = vadd.f32 %v959_v7, %v958_v6 }
 0x123   :  { %v521_v12 = vadd.f32 %v1276_v0, %v424_v9  ;;  %v427_v3 = vadd.f32 %v960_v11, %v1272_v54  ;;  %1031 = vmatprep.mubr.msk.bf16.mxu1 %vm606_vm1, %v563_v8 }
 0x125   :  { %v524_v13 = vadd.f32 %v1278_v5, %v427_v3  ;;  %v961_v10 = vpop.f32.mrb[24].mxu0  ;;  %v553_v15 = vmax.f32 %v521_v12, 0.0 }
 0x126   :  { %v962_v14 = vpop.f32.mrb[25].mxu0 }
 0x127   :  { %v554_v16 = vmax.f32 %v524_v13, 0.0  ;;  %v963_v18 = vadd.f32 %v962_v14, %v961_v10  ;;  %v964_v19 = vpop.f32.mrb[26].mxu0 }
 0x128   :  { %v965_v21 = vpop.f32.mrb[27].mxu0 }
 0x129   :  { %v564_v23 = vpack.c.bf16 %v554_v16, %v553_v15  ;;  %v966_v24 = vadd.f32 %v965_v21, %v964_v19  ;;  %v432_v25 = vadd.f32 %v963_v18, %v1272_v54 }
 0x12b   :  { %v529_v26 = vadd.f32 %v1285_v20, %v432_v25  ;;  %1032 = vmatmul.mubr.msk.bf16.gmra.mrb[24].mxu1 %vm606_vm1, %v564_v23  ;;  %v435_v0 = vadd.f32 %v966_v24, %v1272_v54 }
 0x12d   :  { %v532_v28 = vadd.f32 %v1289_v27, %v435_v0  ;;  %v967_v5 = vpop.f32.mrb[28].mxu0  ;;  %v555_v30 = vmax.f32 %v529_v26, 0.0 }
 0x12e   :  { %v968_v29 = vpop.f32.mrb[29].mxu0 }
 0x12f   :  { %v556_v31 = vmax.f32 %v532_v28, 0.0  ;;  %v969_v32 = vadd.f32 %v968_v29, %v967_v5  ;;  %v970_v33 = vpop.f32.mrb[30].mxu0 }
 0x130   :  { %v971_v34 = vpop.f32.mrb[31].mxu0 }
 0x131   :  { %v565_v35 = vpack.c.bf16 %v556_v31, %v555_v30  ;;  %v440_v36 = vadd.f32 %v969_v32, %v1272_v54  ;;  %v972_v37 = vadd.f32 %v971_v34, %v970_v33 }
 0x133   :  { %v537_v38 = vadd.f32 %v1283_v17, %v440_v36  ;;  %v443_v20 = vadd.f32 %v972_v37, %v1272_v54  ;;  %1035 = vmatprep.mubr.msk.bf16.mxu1 %vm606_vm1, %v565_v35 }
 0x135   :  { %v540_v39 = vadd.f32 %v1287_v22, %v443_v20  ;;  %v557_v27 = vmax.f32 %v537_v38, 0.0 }
 0x137   :  { %v558_v40 = vmax.f32 %v540_v39, 0.0 }
 0x139   :  { %v566_v41 = vpack.c.bf16 %v558_v40, %v557_v27 }
 0x13b   :  { %1036 = vmatmul.mubr.msk.bf16.gmra.mrb[28].mxu1 %vm606_vm1, %v566_v41 }
 0x1de   :  { %v1025_v43 = vpop.f32.mrb[16].mxu1 }
 0x1df   :  { %v674_v44 = vadd.f32 %v1025_v43, %v864_v42  ;;  %v665_v45 = vpop.f32.mrb[17].mxu1 }
 0x1e0   :  { %v666_v17 = vadd.f32 %v864_v42, %v665_v45  ;;  %v1026_v46 = vpop.f32.mrb[18].mxu1 }
 0x1e1   :  { %v895_v54 = vpack.c.bf16 %v674_v44, %v674_v44  ;;  %v677_v47 = vadd.f32 %v1026_v46, %v864_v42  ;;  %v668_v48 = vpop.f32.mrb[19].mxu1 }
 0x1e2   :  { %v893_v49 = vpack.c.bf16 %v666_v17, %v666_v17  ;;  %v669_v22 = vadd.f32 %v864_v42, %v668_v48 }
 0x1e3   :  { %795 = vst.msk [vmem:[%s1388_s5 + $0x8] sm:$0xf] %vm792_vm2, %v895_v54  ;;  %v896_v51 = vpack.c.bf16 %v677_v47, %v677_v47 }
 0x1e4   :  { %793 = vst.msk [vmem:[%s1388_s5] sm:$0xf] %vm792_vm2, %v893_v49  ;;  %v894_v52 = vpack.c.bf16 %v669_v22, %v669_v22 }
 0x1e5   :  { %796 = vst.msk [vmem:[%s1388_s5 + $0xc] sm:$0xf] %vm792_vm2, %v896_v51 }
 0x1e6   :  { %794 = vst.msk [vmem:[%s1388_s5 + $0x4] sm:$0xf] %vm792_vm2, %v894_v52 }
 0x1ee   :  { %v1029_v53 = vpop.f32.mrb[20].mxu1 }
 0x1ef   :  { %v690_v56 = vadd.f32 %v1029_v53, %v864_v42  ;;  %v681_v57 = vpop.f32.mrb[21].mxu1 }
 0x1f0   :  { %v682_v58 = vadd.f32 %v864_v42, %v681_v57  ;;  %v1030_v59 = vpop.f32.mrb[22].mxu1 }
 0x1f1   :  { %v899_v60 = vpack.c.bf16 %v690_v56, %v690_v56  ;;  %v693_v61 = vadd.f32 %v1030_v59, %v864_v42  ;;  %v684_v50 = vpop.f32.mrb[23].mxu1 }
 0x1f2   :  { %v897_v62 = vpack.c.bf16 %v682_v58, %v682_v58  ;;  %v685_v63 = vadd.f32 %v864_v42, %v684_v50 }
 0x1f3   :  { %799 = vst.msk [vmem:[%s1388_s5 + $0x18] sm:$0xf] %vm792_vm2, %v899_v60  ;;  %v900_v1 = vpack.c.bf16 %v693_v61, %v693_v61 }
 0x1f4   :  { %797 = vst.msk [vmem:[%s1388_s5 + $0x10] sm:$0xf] %vm792_vm2, %v897_v62  ;;  %v898_v55 = vpack.c.bf16 %v685_v63, %v685_v63 }
 0x1f5   :  { %800 = vst.msk [vmem:[%s1388_s5 + $0x1c] sm:$0xf] %vm792_vm2, %v900_v1 }
 0x1f6   :  { %798 = vst.msk [vmem:[%s1388_s5 + $0x14] sm:$0xf] %vm792_vm2, %v898_v55 }
 0x1fe   :  { %v1033_v2 = vpop.f32.mrb[24].mxu1 }
 0x1ff   :  { %v706_v4 = vadd.f32 %v1033_v2, %v864_v42  ;;  %v697_v6 = vpop.f32.mrb[25].mxu1 }
 0x200   :  { %v698_v7 = vadd.f32 %v864_v42, %v697_v6  ;;  %v1034_v8 = vpop.f32.mrb[26].mxu1 }
 0x201   :  { %v903_v9 = vpack.c.bf16 %v706_v4, %v706_v4  ;;  %v709_v11 = vadd.f32 %v1034_v8, %v864_v42  ;;  %v700_v12 = vpop.f32.mrb[27].mxu1 }
 0x202   :  { %v901_v3 = vpack.c.bf16 %v698_v7, %v698_v7  ;;  %v701_v13 = vadd.f32 %v864_v42, %v700_v12 }
 0x203   :  { %803 = vst.msk [vmem:[%s1388_s5 + $0x28] sm:$0xf] %vm792_vm2, %v903_v9  ;;  %v904_v10 = vpack.c.bf16 %v709_v11, %v709_v11 }
 0x204   :  { %801 = vst.msk [vmem:[%s1388_s5 + $0x20] sm:$0xf] %vm792_vm2, %v901_v3  ;;  %v902_v14 = vpack.c.bf16 %v701_v13, %v701_v13 }
 0x205   :  { %804 = vst.msk [vmem:[%s1388_s5 + $0x2c] sm:$0xf] %vm792_vm2, %v904_v10 }
 0x206   :  { %802 = vst.msk [vmem:[%s1388_s5 + $0x24] sm:$0xf] %vm792_vm2, %v902_v14 }
 0x20e   :  { %v1037_v15 = vpop.f32.mrb[28].mxu1 }
 0x20f   :  { %v722_v16 = vadd.f32 %v1037_v15, %v864_v42  ;;  %v713_v18 = vpop.f32.mrb[29].mxu1 }
 0x210   :  { %v714_v19 = vadd.f32 %v864_v42, %v713_v18  ;;  %v1038_v21 = vpop.f32.mrb[30].mxu1 }
 0x211   :  { %v907_v23 = vpack.c.bf16 %v722_v16, %v722_v16  ;;  %v725_v24 = vadd.f32 %v1038_v21, %v864_v42  ;;  %v716_v25 = vpop.f32.mrb[31].mxu1 }
 0x212   :  { %v905_v26 = vpack.c.bf16 %v714_v19, %v714_v19  ;;  %v717_v0 = vadd.f32 %v864_v42, %v716_v25 }
 0x213   :  { %807 = vst.msk [vmem:[%s1388_s5 + $0x38] sm:$0xf] %vm792_vm2, %v907_v23  ;;  %v908_v28 = vpack.c.bf16 %v725_v24, %v725_v24 }
 0x214   :  { %805 = vst.msk [vmem:[%s1388_s5 + $0x30] sm:$0xf] %vm792_vm2, %v905_v26  ;;  %v906_v5 = vpack.c.bf16 %v717_v0, %v717_v0 }
 0x215   :  { %808 = vst.msk [vmem:[%s1388_s5 + $0x3c] sm:$0xf] %vm792_vm2, %v908_v28 }
 0x216   :  { %806 = vst.msk [vmem:[%s1388_s5 + $0x34] sm:$0xf] %vm792_vm2, %v906_v5 }

// kernel: generalized_vl_rcnn_forward.4
= control target key start
LH: loop header
LB: loop body
LE: loop exit
PB: predicated region body
PF: predicated region fallthrough
CT: control target
= control target key end

     0   :  { %v506_v0 = vmov 0.0   ;;  %vm507_vm0 = vmmov 0   ;;  %vm84_vm1 = vcmask 523264   ;;  %vm371_vm2 = vcmask 7168   ;;  %s672_s1 = inlined_call_operand.vmem [shape: bf16[64,64], index: 1, kind: input, shape index: {}]   ;;  %s673_s0 = inlined_call_operand.vmem [shape: bf16[16,64], index: 0, kind: input, shape index: {}]   ;;  %s674_s2 = inlined_call_operand.vmem [shape: f32[1,64], index: 2, kind: input, shape index: {}]   ;;  %s675_s7 = inlined_call_operand.vmem [shape: f32[64,1], index: 7, kind: input, shape index: {}]   ;;  %s676_s5 = inlined_call_operand.vmem [shape: bf16[64,64], index: 5, kind: input, shape index: {}]   ;;  %s677_s8 = inlined_call_operand.<no memory space> [shape: f32[1,1], index: 8, kind: input, shape index: {}]   ;;  %s678_s3 = inlined_call_operand.vmem [shape: f32[1,64], index: 3, kind: input, shape index: {}]   ;;  %s679_s4 = inlined_call_operand.vmem [shape: f32[1,64], index: 4, kind: input, shape index: {}]   ;;  %s680_s9 = inlined_call_operand.vmem [shape: f32[16,64], index: 9, kind: output, shape index: {0}]   ;;  %s681_s6 = inlined_call_operand.vmem [shape: f32[1,64], index: 6, kind: input, shape index: {}]   ;;  %s682_s11 = inlined_call_operand.vmem [shape: f32[16,1], index: 11, kind: output, shape index: {2}]   ;;  %s683_s10 = inlined_call_operand.vmem [shape: bf16[16,64], index: 10, kind: output, shape index: {1}]  }
   0x1   :  { %428 = vmatprep.subr.bf16.mxu0 %v506_v0  ;;  %v489_v1 = vld [vmem:[%s672_s1] sm:$0xff]   ;;  %436 = vmatprep.mubr.msk.bf16.mxu0 %vm507_vm0, %v506_v0  ;;  %v490_v2 = vld [vmem:[%s672_s1 + $0x8] sm:$0xff]   ;;  %v491_v3 = vld [vmem:[%s672_s1 + $0x10] sm:$0xff]   ;;  %v17_v43 = vstv %s677_s8  ;;  %vm272_vm3 = vcmask 519168  }
   0x2   :  { %440 = vmatprep.subr.bf16.mxu1 %v506_v0  ;;  %448 = vmatprep.mubr.msk.bf16.mxu1 %vm507_vm0, %v506_v0  ;;  %v492_v4 = vld [vmem:[%s672_s1 + $0x18] sm:$0xff]   ;;  %v493_v5 = vld [vmem:[%s673_s0] sm:$0xff]   ;;  %v276_v28 = vld [vmem:[%s675_s7 + $0x8] sm:$0xff]  ;;  %18 = vst [vmem:[#allocation2] sm:$0x1] %v17_v43 }
   0x3   :  { %429 = vmatpush3.bf16.msra.mxu0 %v489_v1  ;;  %v386_v6 = vld [vmem:[%s674_s2] ss:$0 sm:$0xff]  ;;  %v277_v30 = vld [vmem:[%s675_s7 + $0x10] sm:$0xff]  ;;  %v278_v31 = vld [vmem:[%s675_s7 + $0x18] sm:$0xff] }
   0x4   :  { %430 = vmatprep.subr.bf16.mxu0 %v506_v0  ;;  %v275_v27 = vld [vmem:[%s675_s7] sm:$0xff]  ;;  %v475_v32 = vpack.c.bf16 %v278_v31, %v277_v30  ;;  %v280_v35 = vld [vmem:[%s675_s7 + $0x28] sm:$0xff]  ;;  %v281_v38 = vld [vmem:[%s675_s7 + $0x30] sm:$0xff] }
   0x5   :  { %v471_v29 = vpack.c.bf16 %v276_v28, %v275_v27  ;;  %v494_v33 = vld [vmem:[%s676_s5] sm:$0xff]   ;;  %v495_v37 = vld [vmem:[%s676_s5 + $0x8] sm:$0xff]   ;;  %v282_v39 = vld [vmem:[%s675_s7 + $0x38] sm:$0xff] }
   0x6   :  { %441 = vmatpush3.bf16.msra.mxu1 %v494_v33  ;;  %v279_v34 = vld [vmem:[%s675_s7 + $0x20] sm:$0xff]  ;;  %v483_v40 = vpack.c.bf16 %v282_v39, %v281_v38  ;;  %v496_v41 = vld [vmem:[%s676_s5 + $0x10] sm:$0xff]   ;;  %v497_v42 = vld [vmem:[%s676_s5 + $0x18] sm:$0xff]  }
   0x7   :  { %431 = vmatpush3.bf16.msra.mxu0 %v490_v2  ;;  %442 = vmatprep.subr.bf16.mxu1 %v506_v0  ;;  %v479_v36 = vpack.c.bf16 %v280_v35, %v279_v34  ;;  %v393_v51 = vld [vmem:[%s678_s3] ss:$0 sm:$0xff] }
   0x8   :  { %432 = vmatprep.subr.bf16.mxu0 %v506_v0  ;;  %v394_v53 = vld [vmem:[%s679_s4] ss:$0 sm:$0xff] }
   0x9   :  { %v403_v63 = vld [vmem:[#allocation2] ss:$0 sm:$0xff] }
   0xa   :  { %443 = vmatpush3.bf16.msra.mxu1 %v495_v37 }
   0xb   :  { %433 = vmatpush3.bf16.msra.mxu0 %v491_v3  ;;  %444 = vmatprep.subr.bf16.mxu1 %v506_v0 }
   0xc   :  { %434 = vmatprep.subr.bf16.mxu0 %v506_v0 }
   0xe   :  { %445 = vmatpush3.bf16.msra.mxu1 %v496_v41 }
   0xf   :  { %435 = vmatpush3.bf16.msra.mxu0 %v492_v4  ;;  %446 = vmatprep.subr.bf16.mxu1 %v506_v0  ;;  %v395_v4 = vld [vmem:[%s681_s6] ss:$0 sm:$0xff] }
  0x10   :  { %472 = vmatprep.subr.bf16.mxu0 %v471_v29 }
  0x12   :  { %437 = vmatmul.mubr.msk.bf16.vlgmr.msra.gmra.mrb[0].mxu0 %vm84_vm1, %v493_v5  ;;  %447 = vmatpush3.bf16.msra.mxu1 %v497_v42 }
  0x13   :  { %474 = vmatpush3.bf16.msra.mxu0 %v471_v29 }
  0x14   :  { %476 = vmatprep.subr.bf16.mxu0 %v475_v32 }
  0x17   :  { %478 = vmatpush3.bf16.msra.mxu0 %v475_v32 }
  0x18   :  { %480 = vmatprep.subr.bf16.mxu0 %v479_v36 }
  0x1b   :  { %482 = vmatpush3.bf16.msra.mxu0 %v479_v36 }
  0x1c   :  { %484 = vmatprep.subr.bf16.mxu0 %v483_v40 }
  0x1f   :  { %486 = vmatpush3.bf16.msra.mxu0 %v483_v40 }
  0xe5   :  { %v122_v7 = vpop.f32.mrb[0].mxu0 }
  0xe6   :  { %v123_v8 = vadd.f32 %v386_v6, %v122_v7  ;;  %v438_v9 = vpop.f32.mrb[1].mxu0 }
  0xe7   :  { %v125_v10 = vpop.f32.mrb[2].mxu0 }
  0xe8   :  { %498 = vtanh.f32 %v123_v8  ;;  %v126_v11 = vadd.f32 %v386_v6, %v125_v10  ;;  %v439_v12 = vpop.f32.mrb[3].mxu0 }
  0xea   :  { %500 = vtanh.f32 %v126_v11 }
  0xf2   :  { %v499_v13 = vpop.eup %498 }
  0xf3   :  { %v131_v14 = vsel %vm84_vm1, %v499_v13, 0.0 }
  0xf4   :  { %v501_v15 = vpop.eup %500  ;;  %132 = vadd.xlane.f32.xlu0 %v131_v14 }
  0xf5   :  { %v134_v16 = vsel %vm84_vm1, %v501_v15, 0.0 }
  0xf8   :  { %135 = vadd.xlane.f32.xlu0 %v134_v16 }
 0x181   :  { %v133_v17 = vpop.xlane.xlu0 %132 }
 0x182   :  { %v138_v18 = vmul.f32 0.015625, %v133_v17 }
 0x184   :  { %v140_v19 = vsub.f32 %v499_v13, %v138_v18 }
 0x185   :  { %v136_v20 = vpop.xlane.xlu0 %135 }
 0x186   :  { %v139_v21 = vmul.f32 0.015625, %v136_v20  ;;  %v142_v22 = vmul.f32 %v140_v19, %v140_v19 }
 0x188   :  { %v141_v23 = vsub.f32 %v501_v15, %v139_v21  ;;  %v144_v24 = vsel %vm84_vm1, %v142_v22, 0.0 }
 0x189   :  { %145 = vadd.xlane.f32.xlu1 %v144_v24 }
 0x18a   :  { %v143_v25 = vmul.f32 %v141_v23, %v141_v23 }
 0x18c   :  { %v147_v26 = vsel %vm84_vm1, %v143_v25, 0.0 }
 0x18d   :  { %148 = vadd.xlane.f32.xlu1 %v147_v26 }
 0x216   :  { %v146_v44 = vpop.xlane.xlu1 %145 }
 0x217   :  { %v150_v45 = vmul.f32 0.015625, %v146_v44 }
 0x219   :  { %v152_v46 = vadd.f32 1e-05, %v150_v45 }
 0x21a   :  { %v149_v47 = vpop.xlane.xlu1 %148 }
 0x21b   :  { %502 = vrsqrt.f32 %v152_v46  ;;  %v151_v48 = vmul.f32 0.015625, %v149_v47 }
 0x21d   :  { %v153_v49 = vadd.f32 1e-05, %v151_v48 }
 0x21f   :  { %504 = vrsqrt.f32 %v153_v49 }
 0x225   :  { %v503_v50 = vpop.eup %502 }
 0x226   :  { %v156_v52 = vmul.f32 %v503_v50, %v140_v19 }
 0x228   :  { %v165_v54 = vmul.f32 %v393_v51, %v156_v52 }
 0x229   :  { %v505_v55 = vpop.eup %504 }
 0x22a   :  { %v157_v56 = vmul.f32 %v505_v55, %v141_v23  ;;  %v174_v57 = vadd.f32 %v394_v53, %v165_v54 }
 0x22c   :  { %v166_v58 = vmul.f32 %v393_v51, %v157_v56  ;;  %176 = vst.msk [vmem:[%s680_s9] sm:$0xff] %vm84_vm1, %v174_v57  ;;  %468 = vmatprep.mubr.msk.f32.mxu0 %vm84_vm1, %v174_v57  ;;  %v178_v60 = vmul.f32 0.5, %v174_v57 }
 0x22e   :  { %v175_v59 = vadd.f32 %v394_v53, %v166_v58 }
 0x230   :  { %177 = vst.msk [vmem:[%s680_s9 + $0x8] sm:$0xff] %vm84_vm1, %v175_v59  ;;  %469 = vmatmul.mubr.msk.f32.vlgmr.msra.gmra.mrb[4].mxu0 %vm84_vm1, %v175_v59  ;;  %v179_v61 = vmul.f32 0.5, %v175_v59 }
 0x232   :  { %v180_v62 = vpack.c.bf16 %v179_v61, %v178_v60 }
 0x234   :  { %449 = vmatmul.mubr.msk.bf16.vlgmr.msra.gmra.mrb[0].mxu1 %vm84_vm1, %v180_v62 }
 0x303   :  { %v470_v0 = vpop.f32.mrb[4].mxu0 }
 0x304   :  { %v368_v1 = vadd.f32 %v470_v0, %v403_v63  ;;  %v362_v2 = vpop.f32.mrb[5].mxu0 }
 0x305   :  { %v363_v3 = vadd.f32 %v403_v63, %v362_v2 }
 0x306   :  { %373 = vst.msk [vmem:[%s682_s11 + $0x8] sm:$0xff] %vm371_vm2, %v368_v1 }
 0x307   :  { %372 = vst.msk [vmem:[%s682_s11] sm:$0xff] %vm371_vm2, %v363_v3  ;;  %v257_v5 = vpop.f32.mrb[0].mxu1 }
 0x308   :  { %v258_v6 = vadd.f32 %v395_v4, %v257_v5  ;;  %v450_v7 = vpop.f32.mrb[1].mxu1 }
 0x309   :  { %v260_v8 = vpop.f32.mrb[2].mxu1 }
 0x30a   :  { %v406_v9 = vpack.c.bf16 %v258_v6, %v258_v6  ;;  %v261_v10 = vadd.f32 %v395_v4, %v260_v8  ;;  %v451_v11 = vpop.f32.mrb[3].mxu1 }
 0x30c   :  { %273 = vst.msk [vmem:[%s683_s10] sm:$0xf] %vm272_vm3, %v406_v9  ;;  %v407_v12 = vpack.c.bf16 %v261_v10, %v261_v10 }
 0x30e   :  { %274 = vst.msk [vmem:[%s683_s10 + $0x4] sm:$0xf] %vm272_vm3, %v407_v12 }

// kernel: generalized_vl_rcnn_forward.7
= control target key start
LH: loop header
LB: loop body
LE: loop exit
PB: predicated region body
PF: predicated region fallthrough
CT: control target
= control target key end

     0   :  { %s1602_s11 = smov 0   ;;  %s1978_s0 = inlined_call_operand.vmem [shape: bf16[2,256,64], index: 0, kind: input, shape index: {}]   ;;  %s1979_s1 = inlined_call_operand.vmem [shape: bf16[2,64,64], index: 1, kind: input, shape index: {}]   ;;  %s1980_s2 = inlined_call_operand.vmem [shape: bf16[2,8,64], index: 2, kind: input, shape index: {}]   ;;  %s1981_s3 = inlined_call_operand.vmem [shape: f32[2,8,1], index: 3, kind: input, shape index: {}]   ;;  %s1982_s4 = inlined_call_operand.vmem [shape: f32[2,8,1], index: 4, kind: input, shape index: {}]   ;;  %s1983_s5 = inlined_call_operand.vmem [shape: bf16[64,128], index: 5, kind: input, shape index: {}]   ;;  %s1984_s6 = inlined_call_operand.vmem [shape: f32[1,128], index: 6, kind: input, shape index: {}]   ;;  %s1985_s7 = inlined_call_operand.<no memory space> [shape: f32[1], index: 7, kind: input, shape index: {}]   ;;  %s1986_s8 = inlined_call_operand.vmem [shape: f32[2,384,128], index: 8, kind: output, shape index: {0}]   ;;  %s1987_s9 = inlined_call_operand.vmem [shape: f32[2,8,384], index: 9, kind: output, shape index: {1}]  }
   0x1   :  { %15 = sst [smem:[#allocation2]] %s1985_s7 }
   0x2 LB: > { %s1285_s12 = sadd.s32 4294967295, %s1544_s11   ;;  %p1289_p0 = scmp.ge.s32.totalorder %s1544_s11, 1  ;;  %s1544_s11 = sphi %s1602_s11, %s21_s11  }
   0x3   : > { %p328_p1 = scmp.lt.s32.totalorder %s1544_s11, 3 }
   0x5   : > { %p329_p2 = pnand %p1289_p0, %p328_p1 }
   0x6   : > { %v1514_v0 = vld [vmem:[%s1983_s5] sm:$0xff] (!%p329_p2)   ;;  %p386_p3 = scmp.lt.s32.totalorder (!%p329_p2), %s1285_s12, 1  ;;  %v1515_v1 = vld [vmem:[%s1983_s5 + $0x8] sm:$0xff] (!%p329_p2)   ;;  %v1516_v2 = vld [vmem:[%s1983_s5 + $0x10] sm:$0xff] (!%p329_p2)   ;;  %vm598_vm0 = vcmask (!%p329_p2), 523264   ;;  %v1546_v3 = vmov (!%p329_p2), 0  }
   0x7   : > { %332 = sbr.rel (%p329_p2) target bundleno = 559 (0x22f), region = 52  ;;  %1408 = vmatprep.subr.bf16.mxu0 (!%p329_p2), %v1514_v0  ;;  %1484 = vmatprep.subr.bf16.mxu1 (!%p329_p2), %v1514_v0  ;;  %v1517_v5 = vld [vmem:[%s1983_s5 + $0x18] sm:$0xff] (!%p329_p2)   ;;  %v1547_v25 = vmov (!%p329_p2), 0.0   ;;  %vm1548_vm1 = vmmov (!%p329_p2), 0   ;;  %v1697_v30 = vld [vmem:[%s1984_s6] ss:$0 sm:$0xff] (!%p329_p2) }
   0x8   : > { %1409 = vmatpush3.bf16.msra.mxu0 (!%p329_p2), %v1514_v0  ;;  %1488 = vmatpush3.bf16.msra.mxu1 (!%p329_p2), %v1514_v0  ;;  %s1116_s25 = sld [smem:[#allocation2]] (!%p329_p2) }
   0x9   : > { %1410 = vmatprep.subr.bf16.mxu0 (!%p329_p2), %v1515_v1  ;;  %1485 = vmatprep.subr.bf16.mxu1 (!%p329_p2), %v1515_v1 }
   0xa   : > { %1513 = vset.pattern.permute.xlu0 (!%p329_p2), %v1546_v3 }
   0xc   : > { %1411 = vmatpush3.bf16.msra.mxu0 (!%p329_p2), %v1515_v1  ;;  %1489 = vmatpush3.bf16.msra.mxu1 (!%p329_p2), %v1515_v1 }
   0xd   : > { %1412 = vmatprep.subr.bf16.mxu0 (!%p329_p2), %v1516_v2  ;;  %1486 = vmatprep.subr.bf16.mxu1 (!%p329_p2), %v1516_v2 }
   0xe   : > { %s1989_s12 = smov (!%p386_p3, %s1285_s12), 1 }
   0xf   : > { %s1351_s18 = sshll.u32 %s1989_s12, 7  ;;  %s1352_s22 = sshll.u32 %s1989_s12, 5 }
  0x10   : > { %s1625_s21 = scalar_lea.vmem %s1978_s0, %s1351_s18  ;;  %s395_s27 = scalar_lea.vmem %s1979_s1, %s1352_s22  ;;  %1413 = vmatpush3.bf16.msra.mxu0 %v1516_v2  ;;  %1490 = vmatpush3.bf16.msra.mxu1 %v1516_v2 }
  0x11   : > { %v1518_v4 = vld [vmem:[%s1625_s21] sm:$0xff]   ;;  %1414 = vmatprep.subr.bf16.mxu0 %v1517_v5  ;;  %1487 = vmatprep.subr.bf16.mxu1 %v1517_v5  ;;  %v1519_v7 = vld [vmem:[%s1625_s21 + $0x8] sm:$0xff]   ;;  %v1520_v9 = vld [vmem:[%s1625_s21 + $0x10] sm:$0xff]   ;;  %s1294_s28 = sshll.u32 %s1989_s12, 2  ;;  %s1295_s13 = sshll.u32 %s1989_s12, 3 }
  0x12   : > { %1416 = vmatprep.mubr.msk.bf16.mxu0 %vm598_vm0, %v1518_v4  ;;  %v1524_v6 = vld [vmem:[%s395_s27] sm:$0xff]   ;;  %v1525_v8 = vld [vmem:[%s395_s27 + $0x8] sm:$0xff]   ;;  %v1530_v10 = vld [vmem:[%s395_s27 + $0x10] sm:$0xff]   ;;  %s399_s10 = scalar_lea.vmem %s1980_s2, %s1294_s28  ;;  %s403_s15 = scalar_lea.vmem %s1981_s3, %s1295_s13 }
  0x13   : > { %1448 = vmatprep.mubr.msk.bf16.mxu1 %vm598_vm0, %v1524_v6  ;;  %v1521_v11 = vld [vmem:[%s1625_s21 + $0x18] sm:$0xff]   ;;  %v1522_v13 = vld [vmem:[%s1625_s21 + $0x20] sm:$0xff]   ;;  %v1523_v14 = vld [vmem:[%s1625_s21 + $0x28] sm:$0xff]   ;;  %s407_s18 = scalar_lea.vmem %s1982_s4, %s1295_s13  ;;  %s1500_s19 = smul.u32 384, %s1989_s12 }
  0x14   : > { %1415 = vmatpush3.bf16.msra.mxu0 %v1517_v5  ;;  %1491 = vmatpush3.bf16.msra.mxu1 %v1517_v5  ;;  %v1531_v12 = vld [vmem:[%s395_s27 + $0x18] sm:$0xff]   ;;  %v1526_v15 = vld [vmem:[%s1625_s21 + $0x30] sm:$0xff]   ;;  %v1528_v17 = vld [vmem:[%s1625_s21 + $0x40] sm:$0xff]   ;;  %s1501_s26 = smul.u32 24, %s1989_s12 }
  0x15   : > { %v1527_v16 = vld [vmem:[%s1625_s21 + $0x38] sm:$0xff]   ;;  %v1529_v18 = vld [vmem:[%s1625_s21 + $0x48] sm:$0xff]   ;;  %v1532_v19 = vld [vmem:[%s1625_s21 + $0x50] sm:$0xff]   ;;  %1464 = vmatprep.subr.bf16.mxu0 %v1547_v25  ;;  %s1702_s24 = scalar_lea.vmem %s1986_s8, %s1500_s19 }
  0x16   : > { %v1533_v20 = vld [vmem:[%s1625_s21 + $0x58] sm:$0xff]   ;;  %v1534_v21 = vld [vmem:[%s1625_s21 + $0x60] sm:$0xff]   ;;  %v1535_v22 = vld [vmem:[%s1625_s21 + $0x68] sm:$0xff]   ;;  %s417_s29 = scalar_lea.vmem %s1987_s9, %s1501_s26 }
  0x17   : > { %1417 = vmatmul.mubr.msk.bf16.vlgmr.msra.gmra.mrb[0].mxu0 %vm598_vm0, %v1519_v7  ;;  %1449 = vmatmul.mubr.msk.bf16.vlgmr.msra.gmra.mrb[0].mxu1 %vm598_vm0, %v1525_v8  ;;  %v1536_v23 = vld [vmem:[%s1625_s21 + $0x70] sm:$0xff]   ;;  %v1537_v24 = vld [vmem:[%s1625_s21 + $0x78] sm:$0xff]   ;;  %v1681_v26 = vld [vmem:[%s399_s10] sm:$0xf] }
  0x18   : > { %1420 = vmatprep.mubr.msk.bf16.mxu0 %vm598_vm0, %v1520_v9  ;;  %1452 = vmatprep.mubr.msk.bf16.mxu1 %vm598_vm0, %v1530_v10  ;;  %v1121_v27 = vld [vmem:[%s403_s15] sm:$0xff] }
  0x19   : > { %v1136_v28 = vld [vmem:[%s407_s18] sm:$0xff]  ;;  %1124 = vperm.xlu0 %1513, %v1121_v27  }
  0x1a   : > { %vm1137_vm2 = vcmp.gt.f32.partialorder %v1136_v28, 0.0 }
  0x1b   : > { %v1138_v29 = vsel %vm1137_vm2, 1, %v1546_v3 }
  0x1d   : > { %1140 = vperm.xlu0 %1513, %v1138_v29  }
  0x1f   : > { %1421 = vmatmul.mubr.msk.bf16.gmra.mrb[4].mxu0 %vm598_vm0, %v1521_v11  ;;  %1453 = vmatmul.mubr.msk.bf16.gmra.mrb[4].mxu1 %vm598_vm0, %v1531_v12 }
  0x20   : > { %1424 = vmatprep.mubr.msk.bf16.mxu0 %vm598_vm0, %v1522_v13  ;;  %1456 = vmatprep.mubr.bf16.mxu1 %v1546_v3 }
  0x27   : > { %1425 = vmatmul.mubr.msk.bf16.gmra.mrb[8].mxu0 %vm598_vm0, %v1523_v14  ;;  %1457 = vmatmul.mubr.bf16.gmra.mrb[8].mxu1 %v1546_v3 }
  0x28   : > { %1428 = vmatprep.mubr.msk.bf16.mxu0 %vm598_vm0, %v1526_v15  ;;  %1460 = vmatprep.mubr.bf16.mxu1 %v1546_v3 }
  0x2f   : > { %1429 = vmatmul.mubr.msk.bf16.gmra.mrb[12].mxu0 %vm598_vm0, %v1527_v16  ;;  %1461 = vmatmul.mubr.bf16.gmra.mrb[12].mxu1 %v1546_v3 }
  0x30   : > { %1432 = vmatprep.mubr.msk.bf16.mxu0 %vm598_vm0, %v1528_v17  ;;  %1397 = vmatprep.mubr.msk.bf16.mxu1 %vm598_vm0, %v1681_v26 }
  0x37   : > { %1433 = vmatmul.mubr.msk.bf16.gmra.mrb[16].mxu0 %vm598_vm0, %v1529_v18 }
  0x38   : > { %1436 = vmatprep.mubr.msk.bf16.mxu0 %vm598_vm0, %v1532_v19 }
  0x3f   : > { %1437 = vmatmul.mubr.msk.bf16.gmra.mrb[20].mxu0 %vm598_vm0, %v1533_v20 }
  0x40   : > { %1440 = vmatprep.mubr.msk.bf16.mxu0 %vm598_vm0, %v1534_v21 }
  0x47   : > { %1441 = vmatmul.mubr.msk.bf16.gmra.mrb[24].mxu0 %vm598_vm0, %v1535_v22 }
  0x48   : > { %1444 = vmatprep.mubr.msk.bf16.mxu0 %vm598_vm0, %v1536_v23 }
  0x4f   : > { %1445 = vmatmul.mubr.msk.bf16.gmra.mrb[28].mxu0 %vm598_vm0, %v1537_v24 }
  0x50   : > { %1480 = vmatprep.mubr.msk.bf16.mxu0 %vm1548_vm1, %v1547_v25 }
  0xea   : > { %v1418_v31 = vpop.f32.mrb[0].mxu0  ;;  %v1450_v32 = vpop.f32.mrb[0].mxu1 }
  0xeb   : > { %v1705_v33 = vadd.f32 %v1418_v31, %v1697_v30  ;;  %v696_v34 = vpop.f32.mrb[1].mxu0  ;;  %v833_v35 = vadd.f32 %v1450_v32, %v1697_v30  ;;  %v824_v36 = vpop.f32.mrb[1].mxu1 }
  0xec   : > { %v1709_v37 = vadd.f32 %v1697_v30, %v696_v34  ;;  %v1419_v38 = vpop.f32.mrb[2].mxu0  ;;  %v825_v39 = vadd.f32 %v1697_v30, %v824_v36  ;;  %v1451_v40 = vpop.f32.mrb[2].mxu1 }
  0xed   : > { %889 = vst [vmem:[%s1702_s24 + $0x10] sm:$0xff] %v1705_v33  ;;  %v1715_v41 = vadd.f32 %v1419_v38, %v1697_v30  ;;  %v699_v42 = vpop.f32.mrb[3].mxu0  ;;  %921 = vst [vmem:[%s1702_s24 + $0x110] sm:$0xff] %v833_v35  ;;  %v836_v43 = vadd.f32 %v1451_v40, %v1697_v30  ;;  %v827_v44 = vpop.f32.mrb[3].mxu1 }
  0xee   : > { %887 = vst [vmem:[%s1702_s24] sm:$0xff] %v1709_v37  ;;  %v1722_v45 = vadd.f32 %v1697_v30, %v699_v42  ;;  %919 = vst [vmem:[%s1702_s24 + $0x100] sm:$0xff] %v825_v39  ;;  %v828_v46 = vadd.f32 %v1697_v30, %v827_v44 }
  0xef   : > { %890 = vst [vmem:[%s1702_s24 + $0x18] sm:$0xff] %v1715_v41  ;;  %v936_v47 = vpack.c.bf16 %v1715_v41, %v1705_v33  ;;  %922 = vst [vmem:[%s1702_s24 + $0x118] sm:$0xff] %v836_v43  ;;  %v952_v48 = vpack.c.bf16 %v836_v43, %v833_v35 }
  0xf0   : > { %888 = vst [vmem:[%s1702_s24 + $0x8] sm:$0xff] %v1722_v45  ;;  %v935_v49 = vpack.c.bf16 %v1722_v45, %v1709_v37  ;;  %920 = vst [vmem:[%s1702_s24 + $0x108] sm:$0xff] %v828_v46  ;;  %v951_v50 = vpack.c.bf16 %v828_v46, %v825_v39 }
  0xf1   : > { %v1015_v7 = vsel %vm598_vm0, %v952_v48, 0 }
  0xf2   : > { %v1422_v51 = vpop.f32.mrb[4].mxu0  ;;  %v1012_v52 = vsel %vm598_vm0, %v951_v50, 0  ;;  %v1454_v53 = vpop.f32.mrb[4].mxu1 }
  0xf3   : > { %v1738_v54 = vadd.f32 %v1422_v51, %v1697_v30  ;;  %v712_v55 = vpop.f32.mrb[5].mxu0  ;;  %1465 = vmatpush3.bf16.xpose.msra.mxu0 %v1012_v52  ;;  %v1741_v56 = vadd.f32 %v1454_v53, %v1697_v30  ;;  %v840_v57 = vpop.f32.mrb[5].mxu1 }
  0xf4   : > { %v1744_v58 = vadd.f32 %v1697_v30, %v712_v55  ;;  %v1423_v59 = vpop.f32.mrb[6].mxu0  ;;  %1466 = vmatprep.subr.bf16.mxu0 %v1547_v25  ;;  %v841_v60 = vadd.f32 %v1697_v30, %v840_v57  ;;  %v1455_v61 = vpop.f32.mrb[6].mxu1 }
  0xf5   : > { %893 = vst [vmem:[%s1702_s24 + $0x30] sm:$0xff] %v1738_v54  ;;  %v1751_v62 = vadd.f32 %v1423_v59, %v1697_v30  ;;  %v715_v63 = vpop.f32.mrb[7].mxu0  ;;  %925 = vst [vmem:[%s1702_s24 + $0x130] sm:$0xff] %v1741_v56  ;;  %v1756_v0 = vadd.f32 %v1455_v61, %v1697_v30  ;;  %v843_v1 = vpop.f32.mrb[7].mxu1 }
  0xf6   : > { %891 = vst [vmem:[%s1702_s24 + $0x20] sm:$0xff] %v1744_v58  ;;  %v1761_v2 = vadd.f32 %v1697_v30, %v715_v63  ;;  %923 = vst [vmem:[%s1702_s24 + $0x120] sm:$0xff] %v841_v60  ;;  %v844_v3 = vadd.f32 %v1697_v30, %v843_v1 }
  0xf7   : > { %894 = vst [vmem:[%s1702_s24 + $0x38] sm:$0xff] %v1751_v62  ;;  %v938_v4 = vpack.c.bf16 %v1751_v62, %v1738_v54  ;;  %926 = vst [vmem:[%s1702_s24 + $0x138] sm:$0xff] %v1756_v0  ;;  %v954_v5 = vpack.c.bf16 %v1756_v0, %v1741_v56 }
  0xf8   : > { %892 = vst [vmem:[%s1702_s24 + $0x28] sm:$0xff] %v1761_v2  ;;  %v937_v6 = vpack.c.bf16 %v1761_v2, %v1744_v58  ;;  %924 = vst [vmem:[%s1702_s24 + $0x128] sm:$0xff] %v844_v3  ;;  %v953_v8 = vpack.c.bf16 %v844_v3, %v841_v60 }
  0xf9   : > { %v1021_v61 = vsel %vm598_vm0, %v954_v5, 0 }
  0xfa   : > { %v1426_v9 = vpop.f32.mrb[8].mxu0  ;;  %v1458_v10 = vpop.f32.mrb[8].mxu1  ;;  %v1018_v31 = vsel %vm598_vm0, %v953_v8, 0 }
  0xfb   : > { %v1780_v11 = vadd.f32 %v1426_v9, %v1697_v30  ;;  %v728_v12 = vpop.f32.mrb[9].mxu0  ;;  %1467 = vmatpush3.bf16.xpose.msra.mxu0 %v1015_v7  ;;  %v1783_v13 = vadd.f32 %v1458_v10, %v1697_v30  ;;  %v856_v14 = vpop.f32.mrb[9].mxu1 }
  0xfc   : > { %v1786_v15 = vadd.f32 %v1697_v30, %v728_v12  ;;  %v1427_v16 = vpop.f32.mrb[10].mxu0  ;;  %1468 = vmatprep.subr.bf16.mxu0 %v1547_v25  ;;  %v1790_v17 = vadd.f32 %v1697_v30, %v856_v14  ;;  %v1459_v18 = vpop.f32.mrb[10].mxu1 }
  0xfd   : > { %897 = vst [vmem:[%s1702_s24 + $0x50] sm:$0xff] %v1780_v11  ;;  %v1795_v19 = vadd.f32 %v1427_v16, %v1697_v30  ;;  %v731_v20 = vpop.f32.mrb[11].mxu0  ;;  %929 = vst [vmem:[%s1702_s24 + $0x150] sm:$0xff] %v1783_v13  ;;  %v1800_v21 = vadd.f32 %v1459_v18, %v1697_v30  ;;  %v859_v22 = vpop.f32.mrb[11].mxu1  ;;  %v964_v16 = vsel %vm598_vm0, %v935_v49, 0 }
  0xfe   : > { %895 = vst [vmem:[%s1702_s24 + $0x40] sm:$0xff] %v1786_v15  ;;  %v1805_v23 = vadd.f32 %v1697_v30, %v731_v20  ;;  %927 = vst [vmem:[%s1702_s24 + $0x140] sm:$0xff] %v1790_v17  ;;  %v860_v24 = vadd.f32 %v1697_v30, %v859_v22 }
  0xff   : > { %898 = vst [vmem:[%s1702_s24 + $0x58] sm:$0xff] %v1795_v19  ;;  %v940_v27 = vpack.c.bf16 %v1795_v19, %v1780_v11  ;;  %930 = vst [vmem:[%s1702_s24 + $0x158] sm:$0xff] %v1800_v21  ;;  %v956_v28 = vpack.c.bf16 %v1800_v21, %v1783_v13  ;;  %v1125_v11 = vpop.permute.xlu0 %1124 }
 0x100   : > { %896 = vst [vmem:[%s1702_s24 + $0x48] sm:$0xff] %v1805_v23  ;;  %v939_v29 = vpack.c.bf16 %v1805_v23, %v1786_v15  ;;  %928 = vst [vmem:[%s1702_s24 + $0x148] sm:$0xff] %v860_v24  ;;  %v955_v32 = vpack.c.bf16 %v860_v24, %v1790_v17  ;;  %v1117_v15 = vstv %s1116_s25 }
 0x101   : > { %v979_v54 = vsel %vm598_vm0, %v940_v27, 0 }
 0x102   : > { %v1430_v34 = vpop.f32.mrb[12].mxu0  ;;  %v1462_v35 = vpop.f32.mrb[12].mxu1  ;;  %v1024_v14 = vsel %vm598_vm0, %v955_v32, 0 }
 0x103   : > { %v1826_v36 = vadd.f32 %v1430_v34, %v1697_v30  ;;  %v744_v38 = vpop.f32.mrb[13].mxu0  ;;  %1469 = vmatpush3.bf16.xpose.msra.mxu0 %v1018_v31  ;;  %v1829_v39 = vadd.f32 %v1462_v35, %v1697_v30  ;;  %v872_v40 = vpop.f32.mrb[13].mxu1  ;;  %v1027_v34 = vsel %vm598_vm0, %v956_v28, 0  ;;  %v967_v35 = vsel %vm598_vm0, %v936_v47, 0 }
 0x104   : > { %v1832_v42 = vadd.f32 %v1697_v30, %v744_v38  ;;  %v1431_v43 = vpop.f32.mrb[14].mxu0  ;;  %1470 = vmatprep.subr.bf16.mxu0 %v1547_v25  ;;  %v1836_v44 = vadd.f32 %v1697_v30, %v872_v40  ;;  %v1463_v46 = vpop.f32.mrb[14].mxu1 }
 0x105   : > { %901 = vst [vmem:[%s1702_s24 + $0x70] sm:$0xff] %v1826_v36  ;;  %v1841_v48 = vadd.f32 %v1431_v43, %v1697_v30  ;;  %v747_v50 = vpop.f32.mrb[15].mxu0  ;;  %933 = vst [vmem:[%s1702_s24 + $0x170] sm:$0xff] %v1829_v39  ;;  %v1846_v51 = vadd.f32 %v1463_v46, %v1697_v30  ;;  %v875_v52 = vpop.f32.mrb[15].mxu1 }
 0x106   : > { %899 = vst [vmem:[%s1702_s24 + $0x60] sm:$0xff] %v1832_v42  ;;  %v1851_v53 = vadd.f32 %v1697_v30, %v747_v50  ;;  %931 = vst [vmem:[%s1702_s24 + $0x160] sm:$0xff] %v1836_v44  ;;  %v1856_v55 = vadd.f32 %v1697_v30, %v875_v52  ;;  %v970_v50 = vsel %vm598_vm0, %v937_v6, 0 }
 0x107   : > { %902 = vst [vmem:[%s1702_s24 + $0x78] sm:$0xff] %v1841_v48  ;;  %v942_v57 = vpack.c.bf16 %v1841_v48, %v1826_v36  ;;  %934 = vst [vmem:[%s1702_s24 + $0x178] sm:$0xff] %v1846_v51  ;;  %v958_v59 = vpack.c.bf16 %v1846_v51, %v1829_v39 }
 0x108   : > { %900 = vst [vmem:[%s1702_s24 + $0x68] sm:$0xff] %v1851_v53  ;;  %v941_v60 = vpack.c.bf16 %v1851_v53, %v1832_v42  ;;  %932 = vst [vmem:[%s1702_s24 + $0x168] sm:$0xff] %v1856_v55  ;;  %v957_v63 = vpack.c.bf16 %v1856_v55, %v1836_v44 }
 0x10a   : > { %v1434_v1 = vpop.f32.mrb[16].mxu0  ;;  %v1030_v46 = vsel %vm598_vm0, %v957_v63, 0  ;;  %v982_v62 = vsel %vm598_vm0, %v941_v60, 0 }
 0x10b   : > { %v769_v3 = vadd.f32 %v1434_v1, %v1697_v30  ;;  %v760_v7 = vpop.f32.mrb[17].mxu0  ;;  %1471 = vmatpush3.bf16.xpose.msra.mxu0 %v1021_v61 }
 0x10c   : > { %v761_v8 = vadd.f32 %v1697_v30, %v760_v7  ;;  %v1435_v9 = vpop.f32.mrb[18].mxu0  ;;  %1472 = vmatprep.subr.bf16.mxu0 %v1547_v25 }
 0x10d   : > { %905 = vst [vmem:[%s1702_s24 + $0x90] sm:$0xff] %v769_v3  ;;  %v772_v56 = vadd.f32 %v1435_v9, %v1697_v30  ;;  %v763_v0 = vpop.f32.mrb[19].mxu0 }
 0x10e   : > { %903 = vst [vmem:[%s1702_s24 + $0x80] sm:$0xff] %v761_v8  ;;  %v764_v5 = vadd.f32 %v1697_v30, %v763_v0 }
 0x10f   : > { %906 = vst [vmem:[%s1702_s24 + $0x98] sm:$0xff] %v772_v56  ;;  %v944_v10 = vpack.c.bf16 %v772_v56, %v769_v3 }
 0x110   : > { %904 = vst [vmem:[%s1702_s24 + $0x88] sm:$0xff] %v764_v5  ;;  %v943_v12 = vpack.c.bf16 %v764_v5, %v761_v8  ;;  %v1033_v8 = vsel %vm598_vm0, %v958_v59, 0 }
 0x112   : > { %1492 = vmatprep.subr.msk.bf16.mxu1 %vm598_vm0, %v943_v12  ;;  %v1438_v17 = vpop.f32.mrb[20].mxu0 }
 0x113   : > { %1382 = vmatpush3.bf16.xpose.msra.mxu1 %v964_v16  ;;  %v785_v18 = vadd.f32 %v1438_v17, %v1697_v30  ;;  %v776_v20 = vpop.f32.mrb[21].mxu0  ;;  %1473 = vmatpush3.bf16.xpose.msra.mxu0 %v1024_v14 }
 0x114   : > { %1493 = vmatprep.subr.msk.bf16.mxu1 %vm598_vm0, %v944_v10  ;;  %v777_v22 = vadd.f32 %v1697_v30, %v776_v20  ;;  %v1439_v24 = vpop.f32.mrb[22].mxu0  ;;  %1474 = vmatprep.subr.bf16.mxu0 %v1547_v25 }
 0x115   : > { %909 = vst [vmem:[%s1702_s24 + $0xb0] sm:$0xff] %v785_v18  ;;  %v788_v37 = vadd.f32 %v1439_v24, %v1697_v30  ;;  %v779_v45 = vpop.f32.mrb[23].mxu0 }
 0x116   : > { %907 = vst [vmem:[%s1702_s24 + $0xa0] sm:$0xff] %v777_v22  ;;  %v780_v49 = vadd.f32 %v1697_v30, %v779_v45 }
 0x117   : > { %910 = vst [vmem:[%s1702_s24 + $0xb8] sm:$0xff] %v788_v37  ;;  %v946_v31 = vpack.c.bf16 %v788_v37, %v785_v18 }
 0x118   : > { %908 = vst [vmem:[%s1702_s24 + $0xa8] sm:$0xff] %v780_v49  ;;  %v945_v32 = vpack.c.bf16 %v780_v49, %v777_v22 }
 0x11a   : > { %v1442_v38 = vpop.f32.mrb[24].mxu0 }
 0x11b   : > { %1384 = vmatpush3.bf16.xpose.msra.mxu1 %v967_v35  ;;  %v801_v40 = vadd.f32 %v1442_v38, %v1697_v30  ;;  %v792_v43 = vpop.f32.mrb[25].mxu0  ;;  %1475 = vmatpush3.bf16.xpose.msra.mxu0 %v1027_v34 }
 0x11c   : > { %1494 = vmatprep.subr.msk.bf16.mxu1 %vm598_vm0, %v945_v32  ;;  %v793_v44 = vadd.f32 %v1697_v30, %v792_v43  ;;  %v1443_v13 = vpop.f32.mrb[26].mxu0  ;;  %1476 = vmatprep.subr.bf16.mxu0 %v1547_v25 }
 0x11d   : > { %913 = vst [vmem:[%s1702_s24 + $0xd0] sm:$0xff] %v801_v40  ;;  %v804_v33 = vadd.f32 %v1443_v13, %v1697_v30  ;;  %v795_v41 = vpop.f32.mrb[27].mxu0 }
 0x11e   : > { %911 = vst [vmem:[%s1702_s24 + $0xc0] sm:$0xff] %v793_v44  ;;  %v796_v47 = vadd.f32 %v1697_v30, %v795_v41 }
 0x11f   : > { %914 = vst [vmem:[%s1702_s24 + $0xd8] sm:$0xff] %v804_v33  ;;  %v948_v21 = vpack.c.bf16 %v804_v33, %v801_v40 }
 0x120   : > { %912 = vst [vmem:[%s1702_s24 + $0xc8] sm:$0xff] %v796_v47  ;;  %v947_v28 = vpack.c.bf16 %v796_v47, %v793_v44 }
 0x122   : > { %v1446_v52 = vpop.f32.mrb[28].mxu0 }
 0x123   : > { %1386 = vmatpush3.bf16.xpose.msra.mxu1 %v970_v50  ;;  %v817_v55 = vadd.f32 %v1446_v52, %v1697_v30  ;;  %v808_v61 = vpop.f32.mrb[29].mxu0  ;;  %1477 = vmatpush3.bf16.xpose.msra.mxu0 %v1030_v46 }
 0x124   : > { %1495 = vmatprep.subr.msk.bf16.mxu1 %vm598_vm0, %v946_v31  ;;  %v809_v1 = vadd.f32 %v1697_v30, %v808_v61  ;;  %v1447_v3 = vpop.f32.mrb[30].mxu0  ;;  %1478 = vmatprep.subr.bf16.mxu0 %v1547_v25  ;;  %v973_v25 = vsel %vm598_vm0, %v938_v4, 0  ;;  %v985_v4 = vsel %vm598_vm0, %v942_v57, 0 }
 0x125   : > { %917 = vst [vmem:[%s1702_s24 + $0xf0] sm:$0xff] %v817_v55  ;;  %v820_v58 = vadd.f32 %v1447_v3, %v1697_v30  ;;  %v811_v2 = vpop.f32.mrb[31].mxu0 }
 0x126   : > { %915 = vst [vmem:[%s1702_s24 + $0xe0] sm:$0xff] %v809_v1  ;;  %v812_v6 = vadd.f32 %v1697_v30, %v811_v2  ;;  %v976_v30 = vsel %vm598_vm0, %v939_v29, 0  ;;  %v1141_v29 = vpop.permute.xlu0 %1140 }
 0x127   : > { %918 = vst [vmem:[%s1702_s24 + $0xf8] sm:$0xff] %v820_v58  ;;  %v950_v63 = vpack.c.bf16 %v820_v58, %v817_v55  ;;  %vm1142_vm3 = vcmp.eq.s32.totalorder %v1141_v29, 1 }
 0x128   : > { %916 = vst [vmem:[%s1702_s24 + $0xe8] sm:$0xff] %v812_v6  ;;  %v949_v7 = vpack.c.bf16 %v812_v6, %v809_v1 }
 0x12b   : > { %1388 = vmatpush3.bf16.xpose.msra.mxu1 %v973_v25  ;;  %1479 = vmatpush3.bf16.xpose.msra.mxu0 %v1033_v8 }
 0x12c   : > { %1496 = vmatprep.subr.msk.bf16.mxu1 %vm598_vm0, %v947_v28 }
 0x132   : > { %1481 = vmatmul.mubr.msk.bf16.vlgmr.msra.gmra.mrb[32].mxu0 %vm598_vm0, %v1681_v26 }
 0x133   : > { %1390 = vmatpush3.bf16.xpose.msra.mxu1 %v976_v30 }
 0x134   : > { %1497 = vmatprep.subr.msk.bf16.mxu1 %vm598_vm0, %v948_v21 }
 0x13b   : > { %1392 = vmatpush3.bf16.xpose.msra.mxu1 %v979_v54 }
 0x13c   : > { %1498 = vmatprep.subr.msk.bf16.mxu1 %vm598_vm0, %v949_v7 }
 0x143   : > { %1394 = vmatpush3.bf16.xpose.msra.mxu1 %v982_v62 }
 0x144   : > { %1499 = vmatprep.subr.msk.bf16.mxu1 %vm598_vm0, %v950_v63 }
 0x14b   : > { %1396 = vmatpush3.bf16.xpose.msra.mxu1 %v985_v4 }
 0x152   : > { %1398 = vmatmul.mubr.msk.bf16.vlgmr.msra.gmra.mrb[16].mxu1 %vm598_vm0, %v1681_v26 }
 0x205   : > { %v1110_v19 = vpop.f32.mrb[32].mxu0 }
 0x206   : > { %v1120_v23 = vmul.f32 %v1117_v15, %v1110_v19  ;;  %v1482_v27 = vpop.f32.mrb[33].mxu0 }
 0x207   : > { %v1113_v39 = vpop.f32.mrb[34].mxu0 }
 0x208   : > { %v1129_v42 = vadd.f32 %v1125_v11, %v1120_v23  ;;  %v1483_v51 = vpop.f32.mrb[35].mxu0 }
 0x20a   : > { %v1348_v36 = vclamps-f32 %v1129_v42, 50000.0 }
 0x20c   : > { %v1145_v48 = vsel %vm1142_vm3, %v1348_v36, -50000.0 }
 0x20d   : > { %1148 = vst [vmem:[%s417_s29 + $0x10] sm:$0xff] %v1145_v48 }
 0x225   : > { %v1069_v26 = vpop.f32.mrb[16].mxu1 }
 0x226   : > { %v1118_v53 = vmul.f32 %v1117_v15, %v1069_v26  ;;  %v1071_v57 = vpop.f32.mrb[17].mxu1 }
 0x227   : > { %v1119_v59 = vmul.f32 %v1117_v15, %v1071_v57  ;;  %v1073_v60 = vpop.f32.mrb[18].mxu1 }
 0x228   : > { %v1127_v9 = vadd.f32 %v1125_v11, %v1118_v53  ;;  %v1074_v56 = vpop.f32.mrb[19].mxu1 }
 0x229   : > { %v1128_v0 = vadd.f32 %v1125_v11, %v1119_v59 }
 0x22a   : > { %v1346_v5 = vclamps-f32 %v1127_v9, 50000.0 }
 0x22b   : > { %v1347_v10 = vclamps-f32 %v1128_v0, 50000.0 }
 0x22c   : > { %v1143_v12 = vsel %vm1142_vm3, %v1346_v5, -50000.0 }
 0x22d   : > { %v1144_v14 = vsel %vm1142_vm3, %v1347_v10, -50000.0  ;;  %1146 = vst [vmem:[%s417_s29] sm:$0xff] %v1143_v12 }
 0x22e   : > { %1147 = vst [vmem:[%s417_s29 + $0x8] sm:$0xff] %v1144_v14 }
 0x22f PF: > { %s21_s11 = sadd.s32 1, %s1544_s11  }
 0x230   : > { %p18_p4 = scmp.ge.s32.totalorder %s21_s11, 4  }
 0x232   :  { %20 = sbr.rel (!%p18_p4) target bundleno = 2 (0x2), region = 106 }

</bundles_post_ra>
